<compile_context>
chip_gen: v7x
topology: tpu7x:2x2x1
jax: 0.10.0
libtpu: 0.0.40
codegen_flags: <defaults>
</compile_context>

<pallas_src>
import functools

import numpy as np

import jax
import jax.numpy as jnp
from jax import lax
from jax.experimental import pallas as pl
from jax.experimental.pallas import tpu as pltpu


# ----------------------------------------------------------------------------
# Host-side constant operators (built once per static shape, at trace time).
# ----------------------------------------------------------------------------
def _gather_ops_conv(h, w, k, stride, pad):
    """0/1 gather ops G[t] of shape (H*W, OH*OW) for Conv2d.

    G[t, ih*W+iw, oh*OW+ow] = 1  iff input pixel (ih, iw) is read by output
    pixel (oh, ow) at tap t = kh*k + kw (padding taps simply stay zero)."""
    oh = (h + 2 * pad - k) // stride + 1
    ow = (w + 2 * pad - k) // stride + 1
    g = np.zeros((k * k, h * w, oh * ow), np.float32)
    for kh in range(k):
        for kw in range(k):
            t = kh * k + kw
            for r in range(oh):
                ih = r * stride + kh - pad
                if ih < 0 or ih >= h:
                    continue
                for c in range(ow):
                    iw = c * stride + kw - pad
                    if iw < 0 or iw >= w:
                        continue
                    g[t, ih * w + iw, r * ow + c] = 1.0
    return g, oh, ow


def _gather_ops_convt(h, w, k, stride, pad, out_pad):
    """Gather ops for ConvTranspose2d via the direct transposed-conv relation
    oh = ih*stride - pad + kh  (no dilated input is ever materialized)."""
    oh = (h - 1) * stride - 2 * pad + k + out_pad
    ow = (w - 1) * stride - 2 * pad + k + out_pad
    g = np.zeros((k * k, h * w, oh * ow), np.float32)
    for kh in range(k):
        for kw in range(k):
            t = kh * k + kw
            for r in range(oh):
                nh = r + pad - kh
                if nh % stride != 0:
                    continue
                ih = nh // stride
                if ih < 0 or ih >= h:
                    continue
                for c in range(ow):
                    nw = c + pad - kw
                    if nw % stride != 0:
                        continue
                    iw = nw // stride
                    if iw < 0 or iw >= w:
                        continue
                    g[t, ih * w + iw, r * ow + c] = 1.0
    return g, oh, ow


def _batch_pool_matrix(n, c):
    """(n*c, n*c) 0/1 matrix that sums each channel across its batch replicas
    (result is already tiled per row, ready to broadcast over lanes)."""
    idx = np.arange(n * c)
    return (idx[:, None] % c == idx[None, :] % c).astype(np.float32)


# ----------------------------------------------------------------------------
# Weight / parameter preparation (tiny wrapper-side ops).
# ----------------------------------------------------------------------------
def _conv_weight_taps(w_oihw):                 # Conv2d weight: (out, in, kH, kW)
    co, ci, kh, kw = w_oihw.shape
    return jnp.transpose(w_oihw, (2, 3, 0, 1)).reshape(kh * kw, co, ci)


def _convt_weight_taps(w_iohw):                # ConvTranspose2d weight: (in, out, kH, kW)
    ci, co, kh, kw = w_iohw.shape
    return jnp.transpose(w_iohw, (2, 3, 1, 0)).reshape(kh * kw, co, ci)


def _block_diag_over_batch(w_taps, n):
    """(T, Co, Ci) -> (T, n*Co, n*Ci), block-diagonal over the batch dim."""
    t, co, ci = w_taps.shape
    eye = jnp.eye(n, dtype=w_taps.dtype)
    blk = jnp.einsum("nm,tij->tnimj", eye, w_taps)
    return blk.reshape(t, n * co, n * ci)


def _pack_affine(bias, gamma, beta, n):
    """Pack bias/gamma/beta into one (3, n*C, 1) operand, tiled over batch."""
    stacked = jnp.stack([bias, gamma, beta], axis=0)        # (3, C)
    tiled = jnp.tile(stacked, (1, n))                        # (3, n*C)
    return tiled.reshape(3, -1, 1).astype(jnp.float32)


# ----------------------------------------------------------------------------
# The fused Pallas kernel: entire 4-layer autoencoder in one invocation.
# ----------------------------------------------------------------------------
def _cae_kernel(x_ref, pool_ref,
                g1_ref, w1_ref, q1_ref,
                g2_ref, w2_ref, q2_ref,
                g3_ref, w3_ref, q3_ref,
                g4_ref, w4_ref, q4_ref,
                o_ref, *, batch, eps):
    f32 = jnp.float32
    pool = pool_ref[...]                                     # (N*Cbn, N*Cbn)

    def layer(a, g_ref, w_ref, q_ref, relu, bn):
        # a: (N*C_in, P_in) resident activation; out: (N*C_out, P_out)
        n_taps = g_ref.shape[0]
        acc = None
        for t in range(n_taps):                              # static 3x3 tap loop
            proj = jnp.dot(w_ref[t], a, preferred_element_type=f32)    # (N*Co, P_in)
            y_t = jnp.dot(proj, g_ref[t], preferred_element_type=f32)  # (N*Co, P_out)
            acc = y_t if acc is None else acc + y_t
        y = acc + q_ref[0]                                   # + bias (per row)
        if relu:
            y = jnp.maximum(y, 0.0)
        if bn:
            # Training-mode BatchNorm2d: biased variance over (N, H, W).
            # One-pass sum / sum-of-squares; batch pooling via a tiny matmul
            # so the stats come back already tiled per row.
            cnt = float(batch * g_ref.shape[2])
            tot = jnp.dot(pool, y, preferred_element_type=f32)
            tot_sq = jnp.dot(pool, y * y, preferred_element_type=f32)
            mean = jnp.sum(tot, axis=1, keepdims=True) / cnt             # (N*Co, 1)
            ex2 = jnp.sum(tot_sq, axis=1, keepdims=True) / cnt
            var = jnp.maximum(ex2 - mean * mean, 0.0)
            scale = lax.rsqrt(var + eps) * q_ref[1]                      # * gamma
            shift = q_ref[2] - mean * scale                              # + beta
            y = y * scale + shift
        return y

    a = x_ref[...]                                           # (N*1, H0*W0)
    a = layer(a, g1_ref, w1_ref, q1_ref, True, True)         # Conv  1->8, ReLU, BN
    a = layer(a, g2_ref, w2_ref, q2_ref, True, True)         # Conv  8->8, ReLU, BN
    a = layer(a, g3_ref, w3_ref, q3_ref, True, True)         # ConvT 8->8, ReLU, BN
    a = layer(a, g4_ref, w4_ref, q4_ref, False, False)       # ConvT 8->1
    o_ref[...] = a.astype(o_ref.dtype)                       # lane-dense final store


# ----------------------------------------------------------------------------
# Model wrapper.
# ----------------------------------------------------------------------------
def init_params(key):
    ks = jax.random.split(key, 14)
    s = 0.2
    f32 = jnp.float32
    return {
        # encoder (Conv2d weights: (out, in, kH, kW))
        "conv1_w": jax.random.normal(ks[0], (8, 1, 3, 3), f32) * s,
        "conv1_b": jax.random.normal(ks[1], (8,), f32) * s,
        "bn1_g": 1.0 + 0.1 * jax.random.normal(ks[2], (8,), f32),
        "bn1_b": 0.1 * jax.random.normal(ks[3], (8,), f32),
        "conv2_w": jax.random.normal(ks[4], (8, 8, 3, 3), f32) * s,
        "conv2_b": jax.random.normal(ks[5], (8,), f32) * s,
        "bn2_g": 1.0 + 0.1 * jax.random.normal(ks[6], (8,), f32),
        "bn2_b": 0.1 * jax.random.normal(ks[7], (8,), f32),
        # decoder (ConvTranspose2d weights: (in, out, kH, kW))
        "deconv1_w": jax.random.normal(ks[8], (8, 8, 3, 3), f32) * s,
        "deconv1_b": jax.random.normal(ks[9], (8,), f32) * s,
        "bn3_g": 1.0 + 0.1 * jax.random.normal(ks[10], (8,), f32),
        "bn3_b": 0.1 * jax.random.normal(ks[11], (8,), f32),
        "deconv2_w": jax.random.normal(ks[12], (8, 1, 3, 3), f32) * s,
        "deconv2_b": jax.random.normal(ks[13], (1,), f32) * s,
    }


@jax.jit
def conv_autoencoder_forward(x_nchw, params):
    n, c_in, h0, w0 = x_nchw.shape
    f32 = jnp.float32
    # NCHW is the native layout for the kernel's (N*C, H*W) representation:
    # this reshape is free (no transpose anywhere in the model).
    x2 = x_nchw.astype(f32).reshape(n * c_in, h0 * w0)

    k = 3
    g1, h1, w1 = _gather_ops_conv(h0, w0, k, 2, 1)
    g2, h2, w2 = _gather_ops_conv(h1, w1, k, 2, 1)
    g3, h3, w3 = _gather_ops_convt(h2, w2, k, 2, 1, 1)
    g4, h4, w4 = _gather_ops_convt(h3, w3, k, 2, 1, 1)

    wt1 = _block_diag_over_batch(_conv_weight_taps(params["conv1_w"].astype(f32)), n)
    wt2 = _block_diag_over_batch(_conv_weight_taps(params["conv2_w"].astype(f32)), n)
    wt3 = _block_diag_over_batch(_convt_weight_taps(params["deconv1_w"].astype(f32)), n)
    wt4 = _block_diag_over_batch(_convt_weight_taps(params["deconv2_w"].astype(f32)), n)

    q1 = _pack_affine(params["conv1_b"], params["bn1_g"], params["bn1_b"], n)
    q2 = _pack_affine(params["conv2_b"], params["bn2_g"], params["bn2_b"], n)
    q3 = _pack_affine(params["deconv1_b"], params["bn3_g"], params["bn3_b"], n)
    q4 = _pack_affine(params["deconv2_b"],
                      jnp.ones_like(params["deconv2_b"]),
                      jnp.zeros_like(params["deconv2_b"]), n)

    c_bn = params["bn1_g"].shape[0]
    pool = _batch_pool_matrix(n, c_bn)

    vmem_spec = pl.BlockSpec(memory_space=pltpu.MemorySpace.VMEM)
    kernel = functools.partial(_cae_kernel, batch=n, eps=1e-5)
    y = pl.pallas_call(
        kernel,
        out_shape=jax.ShapeDtypeStruct((n * 1, h4 * w4), f32),
        in_specs=[vmem_spec] * 14,
        out_specs=vmem_spec,
    )(x2, pool,
      g1, wt1, q1,
      g2, wt2, q2,
      g3, wt3, q3,
      g4, wt4, q4)
    return y.reshape(n, 1, h4, w4)


# ----------------------------------------------------------------------------
# Pure-JAX reference (structural correctness check only).
# ----------------------------------------------------------------------------
def _reference_forward(x, p):
    hp = lax.Precision.HIGHEST

    def bn(y, g, b):
        mean = jnp.mean(y, axis=(0, 2, 3), keepdims=True)
        var = jnp.mean(jnp.square(y - mean), axis=(0, 2, 3), keepdims=True)
        inv = lax.rsqrt(var + 1e-5)
        return (y - mean) * inv * g.reshape(1, -1, 1, 1) + b.reshape(1, -1, 1, 1)

    def conv(y, w, b, stride, pad):
        out = lax.conv_general_dilated(
            y, w, (stride, stride), ((pad, pad), (pad, pad)),
            dimension_numbers=("NCHW", "OIHW", "NCHW"), precision=hp)
        return out + b.reshape(1, -1, 1, 1)

    def convt(y, w, b, stride, pad, opad):
        k = w.shape[2]
        w2 = jnp.transpose(w[:, :, ::-1, ::-1], (1, 0, 2, 3))
        lo = k - 1 - pad
        hi = k - 1 - pad + opad
        out = lax.conv_general_dilated(
            y, w2, (1, 1), ((lo, hi), (lo, hi)),
            lhs_dilation=(stride, stride),
            dimension_numbers=("NCHW", "OIHW", "NCHW"), precision=hp)
        return out + b.reshape(1, -1, 1, 1)

    y = bn(jnp.maximum(conv(x, p["conv1_w"], p["conv1_b"], 2, 1), 0.0),
           p["bn1_g"], p["bn1_b"])
    y = bn(jnp.maximum(conv(y, p["conv2_w"], p["conv2_b"], 2, 1), 0.0),
           p["bn2_g"], p["bn2_b"])
    y = bn(jnp.maximum(convt(y, p["deconv1_w"], p["deconv1_b"], 2, 1, 1), 0.0),
           p["bn3_g"], p["bn3_b"])
    y = convt(y, p["deconv2_w"], p["deconv2_b"], 2, 1, 1)
    return y


if __name__ == "__main__":
    key = jax.random.PRNGKey(0)
    k_x, k_p = jax.random.split(key)
    x = jax.random.normal(k_x, (2, 1, 16, 16), jnp.float32)   # NCHW, as in PyTorch
    params = init_params(k_p)

    out = conv_autoencoder_forward(x, params)
    jax.block_until_ready(out)

    assert out.shape == (2, 1, 16, 16), out.shape
    assert out.dtype == jnp.float32

    # Structural check vs. a pure-JAX reference.  Tolerance is loose so that
    # TPU matmul-precision-mode differences can never trip it; wiring bugs
    # (wrong taps / padding / BN) would produce O(1) deviations.
    ref = _reference_forward(x, params)
    max_err = float(jnp.max(jnp.abs(out - ref)))
    assert max_err < 1e-1, f"kernel deviates from reference: max_err={max_err}"

    print("KERNEL_OK")
</pallas_src>

<mosaic_0001>
module attributes {stable_mosaic.version = 11 : i64} {
  func.func @_cae_kernel(%arg0: memref<2x256xf32, #tpu.memory_space<vmem>>, %arg1: memref<16x16xf32, #tpu.memory_space<vmem>>, %arg2: memref<9x256x64xf32, #tpu.memory_space<vmem>>, %arg3: memref<9x16x2xf32, #tpu.memory_space<vmem>>, %arg4: memref<3x16x1xf32, #tpu.memory_space<vmem>>, %arg5: memref<9x64x16xf32, #tpu.memory_space<vmem>>, %arg6: memref<9x16x16xf32, #tpu.memory_space<vmem>>, %arg7: memref<3x16x1xf32, #tpu.memory_space<vmem>>, %arg8: memref<9x16x64xf32, #tpu.memory_space<vmem>>, %arg9: memref<9x16x16xf32, #tpu.memory_space<vmem>>, %arg10: memref<3x16x1xf32, #tpu.memory_space<vmem>>, %arg11: memref<9x64x256xf32, #tpu.memory_space<vmem>>, %arg12: memref<9x2x16xf32, #tpu.memory_space<vmem>>, %arg13: memref<3x2x1xf32, #tpu.memory_space<vmem>>, %arg14: memref<2x256xf32, #tpu.memory_space<vmem>>) attributes {dimension_semantics = [], scalar_prefetch = 0 : i64, scratch_operands = 0 : i64, tpu.core_type = #tpu.core_type<tc>} {
    %c0 = arith.constant 0 : index
    %c0_0 = arith.constant 0 : index
    %0 = vector.load %arg1[%c0, %c0_0] : memref<16x16xf32, #tpu.memory_space<vmem>>, vector<16x16xf32>
    %c0_1 = arith.constant 0 : index
    %c0_2 = arith.constant 0 : index
    %1 = vector.load %arg0[%c0_1, %c0_2] : memref<2x256xf32, #tpu.memory_space<vmem>>, vector<2x256xf32>
    %c0_3 = arith.constant 0 : index
    %c0_4 = arith.constant 0 : index
    %c0_5 = arith.constant 0 : index
    %2 = vector.load %arg3[%c0_3, %c0_4, %c0_5] : memref<9x16x2xf32, #tpu.memory_space<vmem>>, vector<1x16x2xf32>
    %3 = vector.shape_cast %2 : vector<1x16x2xf32> to vector<16x2xf32>
    %cst = arith.constant dense<0.000000e+00> : vector<16x256xf32>
    %4 = tpu.matmul %3, %1, %cst {dimension_numbers = #tpu.dot_dimension_numbers<[1], [0], [0], [1], [0, 0, 1, 1], [], []>} : vector<16x2xf32>, vector<2x256xf32>, vector<16x256xf32> -> vector<16x256xf32>
    %c0_6 = arith.constant 0 : index
    %c0_7 = arith.constant 0 : index
    %c0_8 = arith.constant 0 : index
    %5 = vector.load %arg2[%c0_6, %c0_7, %c0_8] : memref<9x256x64xf32, #tpu.memory_space<vmem>>, vector<1x256x64xf32>
    %6 = vector.shape_cast %5 : vector<1x256x64xf32> to vector<256x64xf32>
    %cst_9 = arith.constant dense<0.000000e+00> : vector<16x64xf32>
    %7 = tpu.matmul %4, %6, %cst_9 {dimension_numbers = #tpu.dot_dimension_numbers<[1], [0], [0], [1], [0, 0, 1, 1], [], []>} : vector<16x256xf32>, vector<256x64xf32>, vector<16x64xf32> -> vector<16x64xf32>
    %c1 = arith.constant 1 : index
    %c0_10 = arith.constant 0 : index
    %c0_11 = arith.constant 0 : index
    %8 = vector.load %arg3[%c1, %c0_10, %c0_11] : memref<9x16x2xf32, #tpu.memory_space<vmem>>, vector<1x16x2xf32>
    %9 = vector.shape_cast %8 : vector<1x16x2xf32> to vector<16x2xf32>
    %cst_12 = arith.constant dense<0.000000e+00> : vector<16x256xf32>
    %10 = tpu.matmul %9, %1, %cst_12 {dimension_numbers = #tpu.dot_dimension_numbers<[1], [0], [0], [1], [0, 0, 1, 1], [], []>} : vector<16x2xf32>, vector<2x256xf32>, vector<16x256xf32> -> vector<16x256xf32>
    %c1_13 = arith.constant 1 : index
    %c0_14 = arith.constant 0 : index
    %c0_15 = arith.constant 0 : index
    %11 = vector.load %arg2[%c1_13, %c0_14, %c0_15] : memref<9x256x64xf32, #tpu.memory_space<vmem>>, vector<1x256x64xf32>
    %12 = vector.shape_cast %11 : vector<1x256x64xf32> to vector<256x64xf32>
    %cst_16 = arith.constant dense<0.000000e+00> : vector<16x64xf32>
    %13 = tpu.matmul %10, %12, %cst_16 {dimension_numbers = #tpu.dot_dimension_numbers<[1], [0], [0], [1], [0, 0, 1, 1], [], []>} : vector<16x256xf32>, vector<256x64xf32>, vector<16x64xf32> -> vector<16x64xf32>
    %14 = arith.addf %7, %13 : vector<16x64xf32>
    %c2 = arith.constant 2 : index
    %c0_17 = arith.constant 0 : index
    %c0_18 = arith.constant 0 : index
    %15 = vector.load %arg3[%c2, %c0_17, %c0_18] : memref<9x16x2xf32, #tpu.memory_space<vmem>>, vector<1x16x2xf32>
    %16 = vector.shape_cast %15 : vector<1x16x2xf32> to vector<16x2xf32>
    %cst_19 = arith.constant dense<0.000000e+00> : vector<16x256xf32>
    %17 = tpu.matmul %16, %1, %cst_19 {dimension_numbers = #tpu.dot_dimension_numbers<[1], [0], [0], [1], [0, 0, 1, 1], [], []>} : vector<16x2xf32>, vector<2x256xf32>, vector<16x256xf32> -> vector<16x256xf32>
    %c2_20 = arith.constant 2 : index
    %c0_21 = arith.constant 0 : index
    %c0_22 = arith.constant 0 : index
    %18 = vector.load %arg2[%c2_20, %c0_21, %c0_22] : memref<9x256x64xf32, #tpu.memory_space<vmem>>, vector<1x256x64xf32>
    %19 = vector.shape_cast %18 : vector<1x256x64xf32> to vector<256x64xf32>
    %cst_23 = arith.constant dense<0.000000e+00> : vector<16x64xf32>
    %20 = tpu.matmul %17, %19, %cst_23 {dimension_numbers = #tpu.dot_dimension_numbers<[1], [0], [0], [1], [0, 0, 1, 1], [], []>} : vector<16x256xf32>, vector<256x64xf32>, vector<16x64xf32> -> vector<16x64xf32>
    %21 = arith.addf %14, %20 : vector<16x64xf32>
    %c3 = arith.constant 3 : index
    %c0_24 = arith.constant 0 : index
    %c0_25 = arith.constant 0 : index
    %22 = vector.load %arg3[%c3, %c0_24, %c0_25] : memref<9x16x2xf32, #tpu.memory_space<vmem>>, vector<1x16x2xf32>
    %23 = vector.shape_cast %22 : vector<1x16x2xf32> to vector<16x2xf32>
    %cst_26 = arith.constant dense<0.000000e+00> : vector<16x256xf32>
    %24 = tpu.matmul %23, %1, %cst_26 {dimension_numbers = #tpu.dot_dimension_numbers<[1], [0], [0], [1], [0, 0, 1, 1], [], []>} : vector<16x2xf32>, vector<2x256xf32>, vector<16x256xf32> -> vector<16x256xf32>
    %c3_27 = arith.constant 3 : index
    %c0_28 = arith.constant 0 : index
    %c0_29 = arith.constant 0 : index
    %25 = vector.load %arg2[%c3_27, %c0_28, %c0_29] : memref<9x256x64xf32, #tpu.memory_space<vmem>>, vector<1x256x64xf32>
    %26 = vector.shape_cast %25 : vector<1x256x64xf32> to vector<256x64xf32>
    %cst_30 = arith.constant dense<0.000000e+00> : vector<16x64xf32>
    %27 = tpu.matmul %24, %26, %cst_30 {dimension_numbers = #tpu.dot_dimension_numbers<[1], [0], [0], [1], [0, 0, 1, 1], [], []>} : vector<16x256xf32>, vector<256x64xf32>, vector<16x64xf32> -> vector<16x64xf32>
    %28 = arith.addf %21, %27 : vector<16x64xf32>
    %c4 = arith.constant 4 : index
    %c0_31 = arith.constant 0 : index
    %c0_32 = arith.constant 0 : index
    %29 = vector.load %arg3[%c4, %c0_31, %c0_32] : memref<9x16x2xf32, #tpu.memory_space<vmem>>, vector<1x16x2xf32>
    %30 = vector.shape_cast %29 : vector<1x16x2xf32> to vector<16x2xf32>
    %cst_33 = arith.constant dense<0.000000e+00> : vector<16x256xf32>
    %31 = tpu.matmul %30, %1, %cst_33 {dimension_numbers = #tpu.dot_dimension_numbers<[1], [0], [0], [1], [0, 0, 1, 1], [], []>} : vector<16x2xf32>, vector<2x256xf32>, vector<16x256xf32> -> vector<16x256xf32>
    %c4_34 = arith.constant 4 : index
    %c0_35 = arith.constant 0 : index
    %c0_36 = arith.constant 0 : index
    %32 = vector.load %arg2[%c4_34, %c0_35, %c0_36] : memref<9x256x64xf32, #tpu.memory_space<vmem>>, vector<1x256x64xf32>
    %33 = vector.shape_cast %32 : vector<1x256x64xf32> to vector<256x64xf32>
    %cst_37 = arith.constant dense<0.000000e+00> : vector<16x64xf32>
    %34 = tpu.matmul %31, %33, %cst_37 {dimension_numbers = #tpu.dot_dimension_numbers<[1], [0], [0], [1], [0, 0, 1, 1], [], []>} : vector<16x256xf32>, vector<256x64xf32>, vector<16x64xf32> -> vector<16x64xf32>
    %35 = arith.addf %28, %34 : vector<16x64xf32>
    %c5 = arith.constant 5 : index
    %c0_38 = arith.constant 0 : index
    %c0_39 = arith.constant 0 : index
    %36 = vector.load %arg3[%c5, %c0_38, %c0_39] : memref<9x16x2xf32, #tpu.memory_space<vmem>>, vector<1x16x2xf32>
    %37 = vector.shape_cast %36 : vector<1x16x2xf32> to vector<16x2xf32>
    %cst_40 = arith.constant dense<0.000000e+00> : vector<16x256xf32>
    %38 = tpu.matmul %37, %1, %cst_40 {dimension_numbers = #tpu.dot_dimension_numbers<[1], [0], [0], [1], [0, 0, 1, 1], [], []>} : vector<16x2xf32>, vector<2x256xf32>, vector<16x256xf32> -> vector<16x256xf32>
    %c5_41 = arith.constant 5 : index
    %c0_42 = arith.constant 0 : index
    %c0_43 = arith.constant 0 : index
    %39 = vector.load %arg2[%c5_41, %c0_42, %c0_43] : memref<9x256x64xf32, #tpu.memory_space<vmem>>, vector<1x256x64xf32>
    %40 = vector.shape_cast %39 : vector<1x256x64xf32> to vector<256x64xf32>
    %cst_44 = arith.constant dense<0.000000e+00> : vector<16x64xf32>
    %41 = tpu.matmul %38, %40, %cst_44 {dimension_numbers = #tpu.dot_dimension_numbers<[1], [0], [0], [1], [0, 0, 1, 1], [], []>} : vector<16x256xf32>, vector<256x64xf32>, vector<16x64xf32> -> vector<16x64xf32>
    %42 = arith.addf %35, %41 : vector<16x64xf32>
    %c6 = arith.constant 6 : index
    %c0_45 = arith.constant 0 : index
    %c0_46 = arith.constant 0 : index
    %43 = vector.load %arg3[%c6, %c0_45, %c0_46] : memref<9x16x2xf32, #tpu.memory_space<vmem>>, vector<1x16x2xf32>
    %44 = vector.shape_cast %43 : vector<1x16x2xf32> to vector<16x2xf32>
    %cst_47 = arith.constant dense<0.000000e+00> : vector<16x256xf32>
    %45 = tpu.matmul %44, %1, %cst_47 {dimension_numbers = #tpu.dot_dimension_numbers<[1], [0], [0], [1], [0, 0, 1, 1], [], []>} : vector<16x2xf32>, vector<2x256xf32>, vector<16x256xf32> -> vector<16x256xf32>
    %c6_48 = arith.constant 6 : index
    %c0_49 = arith.constant 0 : index
    %c0_50 = arith.constant 0 : index
    %46 = vector.load %arg2[%c6_48, %c0_49, %c0_50] : memref<9x256x64xf32, #tpu.memory_space<vmem>>, vector<1x256x64xf32>
    %47 = vector.shape_cast %46 : vector<1x256x64xf32> to vector<256x64xf32>
    %cst_51 = arith.constant dense<0.000000e+00> : vector<16x64xf32>
    %48 = tpu.matmul %45, %47, %cst_51 {dimension_numbers = #tpu.dot_dimension_numbers<[1], [0], [0], [1], [0, 0, 1, 1], [], []>} : vector<16x256xf32>, vector<256x64xf32>, vector<16x64xf32> -> vector<16x64xf32>
    %49 = arith.addf %42, %48 : vector<16x64xf32>
    %c7 = arith.constant 7 : index
    %c0_52 = arith.constant 0 : index
    %c0_53 = arith.constant 0 : index
    %50 = vector.load %arg3[%c7, %c0_52, %c0_53] : memref<9x16x2xf32, #tpu.memory_space<vmem>>, vector<1x16x2xf32>
    %51 = vector.shape_cast %50 : vector<1x16x2xf32> to vector<16x2xf32>
    %cst_54 = arith.constant dense<0.000000e+00> : vector<16x256xf32>
    %52 = tpu.matmul %51, %1, %cst_54 {dimension_numbers = #tpu.dot_dimension_numbers<[1], [0], [0], [1], [0, 0, 1, 1], [], []>} : vector<16x2xf32>, vector<2x256xf32>, vector<16x256xf32> -> vector<16x256xf32>
    %c7_55 = arith.constant 7 : index
    %c0_56 = arith.constant 0 : index
    %c0_57 = arith.constant 0 : index
    %53 = vector.load %arg2[%c7_55, %c0_56, %c0_57] : memref<9x256x64xf32, #tpu.memory_space<vmem>>, vector<1x256x64xf32>
    %54 = vector.shape_cast %53 : vector<1x256x64xf32> to vector<256x64xf32>
    %cst_58 = arith.constant dense<0.000000e+00> : vector<16x64xf32>
    %55 = tpu.matmul %52, %54, %cst_58 {dimension_numbers = #tpu.dot_dimension_numbers<[1], [0], [0], [1], [0, 0, 1, 1], [], []>} : vector<16x256xf32>, vector<256x64xf32>, vector<16x64xf32> -> vector<16x64xf32>
    %56 = arith.addf %49, %55 : vector<16x64xf32>
    %c8 = arith.constant 8 : index
    %c0_59 = arith.constant 0 : index
    %c0_60 = arith.constant 0 : index
    %57 = vector.load %arg3[%c8, %c0_59, %c0_60] : memref<9x16x2xf32, #tpu.memory_space<vmem>>, vector<1x16x2xf32>
    %58 = vector.shape_cast %57 : vector<1x16x2xf32> to vector<16x2xf32>
    %cst_61 = arith.constant dense<0.000000e+00> : vector<16x256xf32>
    %59 = tpu.matmul %58, %1, %cst_61 {dimension_numbers = #tpu.dot_dimension_numbers<[1], [0], [0], [1], [0, 0, 1, 1], [], []>} : vector<16x2xf32>, vector<2x256xf32>, vector<16x256xf32> -> vector<16x256xf32>
    %c8_62 = arith.constant 8 : index
    %c0_63 = arith.constant 0 : index
    %c0_64 = arith.constant 0 : index
    %60 = vector.load %arg2[%c8_62, %c0_63, %c0_64] : memref<9x256x64xf32, #tpu.memory_space<vmem>>, vector<1x256x64xf32>
    %61 = vector.shape_cast %60 : vector<1x256x64xf32> to vector<256x64xf32>
    %cst_65 = arith.constant dense<0.000000e+00> : vector<16x64xf32>
    %62 = tpu.matmul %59, %61, %cst_65 {dimension_numbers = #tpu.dot_dimension_numbers<[1], [0], [0], [1], [0, 0, 1, 1], [], []>} : vector<16x256xf32>, vector<256x64xf32>, vector<16x64xf32> -> vector<16x64xf32>
    %63 = arith.addf %56, %62 : vector<16x64xf32>
    %c0_66 = arith.constant 0 : index
    %c0_67 = arith.constant 0 : index
    %c0_68 = arith.constant 0 : index
    %64 = vector.load %arg4[%c0_66, %c0_67, %c0_68] : memref<3x16x1xf32, #tpu.memory_space<vmem>>, vector<1x16x1xf32>
    %65 = vector.shape_cast %64 : vector<1x16x1xf32> to vector<16x1xf32>
    %66 = vector.broadcast %65 : vector<16x1xf32> to vector<16x64xf32>
    %67 = arith.addf %63, %66 : vector<16x64xf32>
    %cst_69 = arith.constant 0.000000e+00 : f32
    %68 = vector.broadcast %cst_69 : f32 to vector<16x64xf32>
    %69 = arith.maximumf %67, %68 : vector<16x64xf32>
    %cst_70 = arith.constant dense<0.000000e+00> : vector<16x64xf32>
    %70 = tpu.matmul %0, %69, %cst_70 {dimension_numbers = #tpu.dot_dimension_numbers<[1], [0], [0], [1], [0, 0, 1, 1], [], []>} : vector<16x16xf32>, vector<16x64xf32>, vector<16x64xf32> -> vector<16x64xf32>
    %71 = arith.mulf %69, %69 : vector<16x64xf32>
    %cst_71 = arith.constant dense<0.000000e+00> : vector<16x64xf32>
    %72 = tpu.matmul %0, %71, %cst_71 {dimension_numbers = #tpu.dot_dimension_numbers<[1], [0], [0], [1], [0, 0, 1, 1], [], []>} : vector<16x16xf32>, vector<16x64xf32>, vector<16x64xf32> -> vector<16x64xf32>
    %cst_72 = arith.constant dense<0.000000e+00> : vector<16xf32>
    %73 = vector.multi_reduction <add>, %70, %cst_72 [1] : vector<16x64xf32> to vector<16xf32>
    %74 = vector.shape_cast %73 : vector<16xf32> to vector<16x1xf32>
    %cst_73 = arith.constant 1.280000e+02 : f32
    %75 = vector.broadcast %cst_73 : f32 to vector<16x1xf32>
    %76 = arith.divf %74, %75 : vector<16x1xf32>
    %cst_74 = arith.constant dense<0.000000e+00> : vector<16xf32>
    %77 = vector.multi_reduction <add>, %72, %cst_74 [1] : vector<16x64xf32> to vector<16xf32>
    %78 = vector.shape_cast %77 : vector<16xf32> to vector<16x1xf32>
    %cst_75 = arith.constant 1.280000e+02 : f32
    %79 = vector.broadcast %cst_75 : f32 to vector<16x1xf32>
    %80 = arith.divf %78, %79 : vector<16x1xf32>
    %81 = arith.mulf %76, %76 : vector<16x1xf32>
    %82 = arith.subf %80, %81 : vector<16x1xf32>
    %cst_76 = arith.constant 0.000000e+00 : f32
    %83 = vector.broadcast %cst_76 : f32 to vector<16x1xf32>
    %84 = arith.maximumf %82, %83 : vector<16x1xf32>
    %cst_77 = arith.constant 9.99999974E-6 : f32
    %85 = vector.broadcast %cst_77 : f32 to vector<16x1xf32>
    %86 = arith.addf %84, %85 : vector<16x1xf32>
    %87 = math.rsqrt %86 : vector<16x1xf32>
    %c1_78 = arith.constant 1 : index
    %c0_79 = arith.constant 0 : index
    %c0_80 = arith.constant 0 : index
    %88 = vector.load %arg4[%c1_78, %c0_79, %c0_80] : memref<3x16x1xf32, #tpu.memory_space<vmem>>, vector<1x16x1xf32>
    %89 = vector.shape_cast %88 : vector<1x16x1xf32> to vector<16x1xf32>
    %90 = arith.mulf %87, %89 : vector<16x1xf32>
    %c2_81 = arith.constant 2 : index
    %c0_82 = arith.constant 0 : index
    %c0_83 = arith.constant 0 : index
    %91 = vector.load %arg4[%c2_81, %c0_82, %c0_83] : memref<3x16x1xf32, #tpu.memory_space<vmem>>, vector<1x16x1xf32>
    %92 = vector.shape_cast %91 : vector<1x16x1xf32> to vector<16x1xf32>
    %93 = arith.mulf %76, %90 : vector<16x1xf32>
    %94 = arith.subf %92, %93 : vector<16x1xf32>
    %95 = vector.broadcast %90 : vector<16x1xf32> to vector<16x64xf32>
    %96 = arith.mulf %69, %95 : vector<16x64xf32>
    %97 = vector.broadcast %94 : vector<16x1xf32> to vector<16x64xf32>
    %98 = arith.addf %96, %97 : vector<16x64xf32>
    %c0_84 = arith.constant 0 : index
    %c0_85 = arith.constant 0 : index
    %c0_86 = arith.constant 0 : index
    %99 = vector.load %arg6[%c0_84, %c0_85, %c0_86] : memref<9x16x16xf32, #tpu.memory_space<vmem>>, vector<1x16x16xf32>
    %100 = vector.shape_cast %99 : vector<1x16x16xf32> to vector<16x16xf32>
    %cst_87 = arith.constant dense<0.000000e+00> : vector<16x64xf32>
    %101 = tpu.matmul %100, %98, %cst_87 {dimension_numbers = #tpu.dot_dimension_numbers<[1], [0], [0], [1], [0, 0, 1, 1], [], []>} : vector<16x16xf32>, vector<16x64xf32>, vector<16x64xf32> -> vector<16x64xf32>
    %c0_88 = arith.constant 0 : index
    %c0_89 = arith.constant 0 : index
    %c0_90 = arith.constant 0 : index
    %102 = vector.load %arg5[%c0_88, %c0_89, %c0_90] : memref<9x64x16xf32, #tpu.memory_space<vmem>>, vector<1x64x16xf32>
    %103 = vector.shape_cast %102 : vector<1x64x16xf32> to vector<64x16xf32>
    %cst_91 = arith.constant dense<0.000000e+00> : vector<16x16xf32>
    %104 = tpu.matmul %101, %103, %cst_91 {dimension_numbers = #tpu.dot_dimension_numbers<[1], [0], [0], [1], [0, 0, 1, 1], [], []>} : vector<16x64xf32>, vector<64x16xf32>, vector<16x16xf32> -> vector<16x16xf32>
    %c1_92 = arith.constant 1 : index
    %c0_93 = arith.constant 0 : index
    %c0_94 = arith.constant 0 : index
    %105 = vector.load %arg6[%c1_92, %c0_93, %c0_94] : memref<9x16x16xf32, #tpu.memory_space<vmem>>, vector<1x16x16xf32>
    %106 = vector.shape_cast %105 : vector<1x16x16xf32> to vector<16x16xf32>
    %cst_95 = arith.constant dense<0.000000e+00> : vector<16x64xf32>
    %107 = tpu.matmul %106, %98, %cst_95 {dimension_numbers = #tpu.dot_dimension_numbers<[1], [0], [0], [1], [0, 0, 1, 1], [], []>} : vector<16x16xf32>, vector<16x64xf32>, vector<16x64xf32> -> vector<16x64xf32>
    %c1_96 = arith.constant 1 : index
    %c0_97 = arith.constant 0 : index
    %c0_98 = arith.constant 0 : index
    %108 = vector.load %arg5[%c1_96, %c0_97, %c0_98] : memref<9x64x16xf32, #tpu.memory_space<vmem>>, vector<1x64x16xf32>
    %109 = vector.shape_cast %108 : vector<1x64x16xf32> to vector<64x16xf32>
    %cst_99 = arith.constant dense<0.000000e+00> : vector<16x16xf32>
    %110 = tpu.matmul %107, %109, %cst_99 {dimension_numbers = #tpu.dot_dimension_numbers<[1], [0], [0], [1], [0, 0, 1, 1], [], []>} : vector<16x64xf32>, vector<64x16xf32>, vector<16x16xf32> -> vector<16x16xf32>
    %111 = arith.addf %104, %110 : vector<16x16xf32>
    %c2_100 = arith.constant 2 : index
    %c0_101 = arith.constant 0 : index
    %c0_102 = arith.constant 0 : index
    %112 = vector.load %arg6[%c2_100, %c0_101, %c0_102] : memref<9x16x16xf32, #tpu.memory_space<vmem>>, vector<1x16x16xf32>
    %113 = vector.shape_cast %112 : vector<1x16x16xf32> to vector<16x16xf32>
    %cst_103 = arith.constant dense<0.000000e+00> : vector<16x64xf32>
    %114 = tpu.matmul %113, %98, %cst_103 {dimension_numbers = #tpu.dot_dimension_numbers<[1], [0], [0], [1], [0, 0, 1, 1], [], []>} : vector<16x16xf32>, vector<16x64xf32>, vector<16x64xf32> -> vector<16x64xf32>
    %c2_104 = arith.constant 2 : index
    %c0_105 = arith.constant 0 : index
    %c0_106 = arith.constant 0 : index
    %115 = vector.load %arg5[%c2_104, %c0_105, %c0_106] : memref<9x64x16xf32, #tpu.memory_space<vmem>>, vector<1x64x16xf32>
    %116 = vector.shape_cast %115 : vector<1x64x16xf32> to vector<64x16xf32>
    %cst_107 = arith.constant dense<0.000000e+00> : vector<16x16xf32>
    %117 = tpu.matmul %114, %116, %cst_107 {dimension_numbers = #tpu.dot_dimension_numbers<[1], [0], [0], [1], [0, 0, 1, 1], [], []>} : vector<16x64xf32>, vector<64x16xf32>, vector<16x16xf32> -> vector<16x16xf32>
    %118 = arith.addf %111, %117 : vector<16x16xf32>
    %c3_108 = arith.constant 3 : index
    %c0_109 = arith.constant 0 : index
    %c0_110 = arith.constant 0 : index
    %119 = vector.load %arg6[%c3_108, %c0_109, %c0_110] : memref<9x16x16xf32, #tpu.memory_space<vmem>>, vector<1x16x16xf32>
    %120 = vector.shape_cast %119 : vector<1x16x16xf32> to vector<16x16xf32>
    %cst_111 = arith.constant dense<0.000000e+00> : vector<16x64xf32>
    %121 = tpu.matmul %120, %98, %cst_111 {dimension_numbers = #tpu.dot_dimension_numbers<[1], [0], [0], [1], [0, 0, 1, 1], [], []>} : vector<16x16xf32>, vector<16x64xf32>, vector<16x64xf32> -> vector<16x64xf32>
    %c3_112 = arith.constant 3 : index
    %c0_113 = arith.constant 0 : index
    %c0_114 = arith.constant 0 : index
    %122 = vector.load %arg5[%c3_112, %c0_113, %c0_114] : memref<9x64x16xf32, #tpu.memory_space<vmem>>, vector<1x64x16xf32>
    %123 = vector.shape_cast %122 : vector<1x64x16xf32> to vector<64x16xf32>
    %cst_115 = arith.constant dense<0.000000e+00> : vector<16x16xf32>
    %124 = tpu.matmul %121, %123, %cst_115 {dimension_numbers = #tpu.dot_dimension_numbers<[1], [0], [0], [1], [0, 0, 1, 1], [], []>} : vector<16x64xf32>, vector<64x16xf32>, vector<16x16xf32> -> vector<16x16xf32>
    %125 = arith.addf %118, %124 : vector<16x16xf32>
    %c4_116 = arith.constant 4 : index
    %c0_117 = arith.constant 0 : index
    %c0_118 = arith.constant 0 : index
    %126 = vector.load %arg6[%c4_116, %c0_117, %c0_118] : memref<9x16x16xf32, #tpu.memory_space<vmem>>, vector<1x16x16xf32>
    %127 = vector.shape_cast %126 : vector<1x16x16xf32> to vector<16x16xf32>
    %cst_119 = arith.constant dense<0.000000e+00> : vector<16x64xf32>
    %128 = tpu.matmul %127, %98, %cst_119 {dimension_numbers = #tpu.dot_dimension_numbers<[1], [0], [0], [1], [0, 0, 1, 1], [], []>} : vector<16x16xf32>, vector<16x64xf32>, vector<16x64xf32> -> vector<16x64xf32>
    %c4_120 = arith.constant 4 : index
    %c0_121 = arith.constant 0 : index
    %c0_122 = arith.constant 0 : index
    %129 = vector.load %arg5[%c4_120, %c0_121, %c0_122] : memref<9x64x16xf32, #tpu.memory_space<vmem>>, vector<1x64x16xf32>
    %130 = vector.shape_cast %129 : vector<1x64x16xf32> to vector<64x16xf32>
    %cst_123 = arith.constant dense<0.000000e+00> : vector<16x16xf32>
    %131 = tpu.matmul %128, %130, %cst_123 {dimension_numbers = #tpu.dot_dimension_numbers<[1], [0], [0], [1], [0, 0, 1, 1], [], []>} : vector<16x64xf32>, vector<64x16xf32>, vector<16x16xf32> -> vector<16x16xf32>
    %132 = arith.addf %125, %131 : vector<16x16xf32>
    %c5_124 = arith.constant 5 : index
    %c0_125 = arith.constant 0 : index
    %c0_126 = arith.constant 0 : index
    %133 = vector.load %arg6[%c5_124, %c0_125, %c0_126] : memref<9x16x16xf32, #tpu.memory_space<vmem>>, vector<1x16x16xf32>
    %134 = vector.shape_cast %133 : vector<1x16x16xf32> to vector<16x16xf32>
    %cst_127 = arith.constant dense<0.000000e+00> : vector<16x64xf32>
    %135 = tpu.matmul %134, %98, %cst_127 {dimension_numbers = #tpu.dot_dimension_numbers<[1], [0], [0], [1], [0, 0, 1, 1], [], []>} : vector<16x16xf32>, vector<16x64xf32>, vector<16x64xf32> -> vector<16x64xf32>
    %c5_128 = arith.constant 5 : index
    %c0_129 = arith.constant 0 : index
    %c0_130 = arith.constant 0 : index
    %136 = vector.load %arg5[%c5_128, %c0_129, %c0_130] : memref<9x64x16xf32, #tpu.memory_space<vmem>>, vector<1x64x16xf32>
    %137 = vector.shape_cast %136 : vector<1x64x16xf32> to vector<64x16xf32>
    %cst_131 = arith.constant dense<0.000000e+00> : vector<16x16xf32>
    %138 = tpu.matmul %135, %137, %cst_131 {dimension_numbers = #tpu.dot_dimension_numbers<[1], [0], [0], [1], [0, 0, 1, 1], [], []>} : vector<16x64xf32>, vector<64x16xf32>, vector<16x16xf32> -> vector<16x16xf32>
    %139 = arith.addf %132, %138 : vector<16x16xf32>
    %c6_132 = arith.constant 6 : index
    %c0_133 = arith.constant 0 : index
    %c0_134 = arith.constant 0 : index
    %140 = vector.load %arg6[%c6_132, %c0_133, %c0_134] : memref<9x16x16xf32, #tpu.memory_space<vmem>>, vector<1x16x16xf32>
    %141 = vector.shape_cast %140 : vector<1x16x16xf32> to vector<16x16xf32>
    %cst_135 = arith.constant dense<0.000000e+00> : vector<16x64xf32>
    %142 = tpu.matmul %141, %98, %cst_135 {dimension_numbers = #tpu.dot_dimension_numbers<[1], [0], [0], [1], [0, 0, 1, 1], [], []>} : vector<16x16xf32>, vector<16x64xf32>, vector<16x64xf32> -> vector<16x64xf32>
    %c6_136 = arith.constant 6 : index
    %c0_137 = arith.constant 0 : index
    %c0_138 = arith.constant 0 : index
    %143 = vector.load %arg5[%c6_136, %c0_137, %c0_138] : memref<9x64x16xf32, #tpu.memory_space<vmem>>, vector<1x64x16xf32>
    %144 = vector.shape_cast %143 : vector<1x64x16xf32> to vector<64x16xf32>
    %cst_139 = arith.constant dense<0.000000e+00> : vector<16x16xf32>
    %145 = tpu.matmul %142, %144, %cst_139 {dimension_numbers = #tpu.dot_dimension_numbers<[1], [0], [0], [1], [0, 0, 1, 1], [], []>} : vector<16x64xf32>, vector<64x16xf32>, vector<16x16xf32> -> vector<16x16xf32>
    %146 = arith.addf %139, %145 : vector<16x16xf32>
    %c7_140 = arith.constant 7 : index
    %c0_141 = arith.constant 0 : index
    %c0_142 = arith.constant 0 : index
    %147 = vector.load %arg6[%c7_140, %c0_141, %c0_142] : memref<9x16x16xf32, #tpu.memory_space<vmem>>, vector<1x16x16xf32>
    %148 = vector.shape_cast %147 : vector<1x16x16xf32> to vector<16x16xf32>
    %cst_143 = arith.constant dense<0.000000e+00> : vector<16x64xf32>
    %149 = tpu.matmul %148, %98, %cst_143 {dimension_numbers = #tpu.dot_dimension_numbers<[1], [0], [0], [1], [0, 0, 1, 1], [], []>} : vector<16x16xf32>, vector<16x64xf32>, vector<16x64xf32> -> vector<16x64xf32>
    %c7_144 = arith.constant 7 : index
    %c0_145 = arith.constant 0 : index
    %c0_146 = arith.constant 0 : index
    %150 = vector.load %arg5[%c7_144, %c0_145, %c0_146] : memref<9x64x16xf32, #tpu.memory_space<vmem>>, vector<1x64x16xf32>
    %151 = vector.shape_cast %150 : vector<1x64x16xf32> to vector<64x16xf32>
    %cst_147 = arith.constant dense<0.000000e+00> : vector<16x16xf32>
    %152 = tpu.matmul %149, %151, %cst_147 {dimension_numbers = #tpu.dot_dimension_numbers<[1], [0], [0], [1], [0, 0, 1, 1], [], []>} : vector<16x64xf32>, vector<64x16xf32>, vector<16x16xf32> -> vector<16x16xf32>
    %153 = arith.addf %146, %152 : vector<16x16xf32>
    %c8_148 = arith.constant 8 : index
    %c0_149 = arith.constant 0 : index
    %c0_150 = arith.constant 0 : index
    %154 = vector.load %arg6[%c8_148, %c0_149, %c0_150] : memref<9x16x16xf32, #tpu.memory_space<vmem>>, vector<1x16x16xf32>
    %155 = vector.shape_cast %154 : vector<1x16x16xf32> to vector<16x16xf32>
    %cst_151 = arith.constant dense<0.000000e+00> : vector<16x64xf32>
    %156 = tpu.matmul %155, %98, %cst_151 {dimension_numbers = #tpu.dot_dimension_numbers<[1], [0], [0], [1], [0, 0, 1, 1], [], []>} : vector<16x16xf32>, vector<16x64xf32>, vector<16x64xf32> -> vector<16x64xf32>
    %c8_152 = arith.constant 8 : index
    %c0_153 = arith.constant 0 : index
    %c0_154 = arith.constant 0 : index
    %157 = vector.load %arg5[%c8_152, %c0_153, %c0_154] : memref<9x64x16xf32, #tpu.memory_space<vmem>>, vector<1x64x16xf32>
    %158 = vector.shape_cast %157 : vector<1x64x16xf32> to vector<64x16xf32>
    %cst_155 = arith.constant dense<0.000000e+00> : vector<16x16xf32>
    %159 = tpu.matmul %156, %158, %cst_155 {dimension_numbers = #tpu.dot_dimension_numbers<[1], [0], [0], [1], [0, 0, 1, 1], [], []>} : vector<16x64xf32>, vector<64x16xf32>, vector<16x16xf32> -> vector<16x16xf32>
    %160 = arith.addf %153, %159 : vector<16x16xf32>
    %c0_156 = arith.constant 0 : index
    %c0_157 = arith.constant 0 : index
    %c0_158 = arith.constant 0 : index
    %161 = vector.load %arg7[%c0_156, %c0_157, %c0_158] : memref<3x16x1xf32, #tpu.memory_space<vmem>>, vector<1x16x1xf32>
    %162 = vector.shape_cast %161 : vector<1x16x1xf32> to vector<16x1xf32>
    %163 = vector.broadcast %162 : vector<16x1xf32> to vector<16x16xf32>
    %164 = arith.addf %160, %163 : vector<16x16xf32>
    %cst_159 = arith.constant 0.000000e+00 : f32
    %165 = vector.broadcast %cst_159 : f32 to vector<16x16xf32>
    %166 = arith.maximumf %164, %165 : vector<16x16xf32>
    %cst_160 = arith.constant dense<0.000000e+00> : vector<16x16xf32>
    %167 = tpu.matmul %0, %166, %cst_160 {dimension_numbers = #tpu.dot_dimension_numbers<[1], [0], [0], [1], [0, 0, 1, 1], [], []>} : vector<16x16xf32>, vector<16x16xf32>, vector<16x16xf32> -> vector<16x16xf32>
    %168 = arith.mulf %166, %166 : vector<16x16xf32>
    %cst_161 = arith.constant dense<0.000000e+00> : vector<16x16xf32>
    %169 = tpu.matmul %0, %168, %cst_161 {dimension_numbers = #tpu.dot_dimension_numbers<[1], [0], [0], [1], [0, 0, 1, 1], [], []>} : vector<16x16xf32>, vector<16x16xf32>, vector<16x16xf32> -> vector<16x16xf32>
    %cst_162 = arith.constant dense<0.000000e+00> : vector<16xf32>
    %170 = vector.multi_reduction <add>, %167, %cst_162 [1] : vector<16x16xf32> to vector<16xf32>
    %171 = vector.shape_cast %170 : vector<16xf32> to vector<16x1xf32>
    %cst_163 = arith.constant 3.200000e+01 : f32
    %172 = vector.broadcast %cst_163 : f32 to vector<16x1xf32>
    %173 = arith.divf %171, %172 : vector<16x1xf32>
    %cst_164 = arith.constant dense<0.000000e+00> : vector<16xf32>
    %174 = vector.multi_reduction <add>, %169, %cst_164 [1] : vector<16x16xf32> to vector<16xf32>
    %175 = vector.shape_cast %174 : vector<16xf32> to vector<16x1xf32>
    %cst_165 = arith.constant 3.200000e+01 : f32
    %176 = vector.broadcast %cst_165 : f32 to vector<16x1xf32>
    %177 = arith.divf %175, %176 : vector<16x1xf32>
    %178 = arith.mulf %173, %173 : vector<16x1xf32>
    %179 = arith.subf %177, %178 : vector<16x1xf32>
    %cst_166 = arith.constant 0.000000e+00 : f32
    %180 = vector.broadcast %cst_166 : f32 to vector<16x1xf32>
    %181 = arith.maximumf %179, %180 : vector<16x1xf32>
    %cst_167 = arith.constant 9.99999974E-6 : f32
    %182 = vector.broadcast %cst_167 : f32 to vector<16x1xf32>
    %183 = arith.addf %181, %182 : vector<16x1xf32>
    %184 = math.rsqrt %183 : vector<16x1xf32>
    %c1_168 = arith.constant 1 : index
    %c0_169 = arith.constant 0 : index
    %c0_170 = arith.constant 0 : index
    %185 = vector.load %arg7[%c1_168, %c0_169, %c0_170] : memref<3x16x1xf32, #tpu.memory_space<vmem>>, vector<1x16x1xf32>
    %186 = vector.shape_cast %185 : vector<1x16x1xf32> to vector<16x1xf32>
    %187 = arith.mulf %184, %186 : vector<16x1xf32>
    %c2_171 = arith.constant 2 : index
    %c0_172 = arith.constant 0 : index
    %c0_173 = arith.constant 0 : index
    %188 = vector.load %arg7[%c2_171, %c0_172, %c0_173] : memref<3x16x1xf32, #tpu.memory_space<vmem>>, vector<1x16x1xf32>
    %189 = vector.shape_cast %188 : vector<1x16x1xf32> to vector<16x1xf32>
    %190 = arith.mulf %173, %187 : vector<16x1xf32>
    %191 = arith.subf %189, %190 : vector<16x1xf32>
    %192 = vector.broadcast %187 : vector<16x1xf32> to vector<16x16xf32>
    %193 = arith.mulf %166, %192 : vector<16x16xf32>
    %194 = vector.broadcast %191 : vector<16x1xf32> to vector<16x16xf32>
    %195 = arith.addf %193, %194 : vector<16x16xf32>
    %c0_174 = arith.constant 0 : index
    %c0_175 = arith.constant 0 : index
    %c0_176 = arith.constant 0 : index
    %196 = vector.load %arg9[%c0_174, %c0_175, %c0_176] : memref<9x16x16xf32, #tpu.memory_space<vmem>>, vector<1x16x16xf32>
    %197 = vector.shape_cast %196 : vector<1x16x16xf32> to vector<16x16xf32>
    %cst_177 = arith.constant dense<0.000000e+00> : vector<16x16xf32>
    %198 = tpu.matmul %197, %195, %cst_177 {dimension_numbers = #tpu.dot_dimension_numbers<[1], [0], [0], [1], [0, 0, 1, 1], [], []>} : vector<16x16xf32>, vector<16x16xf32>, vector<16x16xf32> -> vector<16x16xf32>
    %c0_178 = arith.constant 0 : index
    %c0_179 = arith.constant 0 : index
    %c0_180 = arith.constant 0 : index
    %199 = vector.load %arg8[%c0_178, %c0_179, %c0_180] : memref<9x16x64xf32, #tpu.memory_space<vmem>>, vector<1x16x64xf32>
    %200 = vector.shape_cast %199 : vector<1x16x64xf32> to vector<16x64xf32>
    %cst_181 = arith.constant dense<0.000000e+00> : vector<16x64xf32>
    %201 = tpu.matmul %198, %200, %cst_181 {dimension_numbers = #tpu.dot_dimension_numbers<[1], [0], [0], [1], [0, 0, 1, 1], [], []>} : vector<16x16xf32>, vector<16x64xf32>, vector<16x64xf32> -> vector<16x64xf32>
    %c1_182 = arith.constant 1 : index
    %c0_183 = arith.constant 0 : index
    %c0_184 = arith.constant 0 : index
    %202 = vector.load %arg9[%c1_182, %c0_183, %c0_184] : memref<9x16x16xf32, #tpu.memory_space<vmem>>, vector<1x16x16xf32>
    %203 = vector.shape_cast %202 : vector<1x16x16xf32> to vector<16x16xf32>
    %cst_185 = arith.constant dense<0.000000e+00> : vector<16x16xf32>
    %204 = tpu.matmul %203, %195, %cst_185 {dimension_numbers = #tpu.dot_dimension_numbers<[1], [0], [0], [1], [0, 0, 1, 1], [], []>} : vector<16x16xf32>, vector<16x16xf32>, vector<16x16xf32> -> vector<16x16xf32>
    %c1_186 = arith.constant 1 : index
    %c0_187 = arith.constant 0 : index
    %c0_188 = arith.constant 0 : index
    %205 = vector.load %arg8[%c1_186, %c0_187, %c0_188] : memref<9x16x64xf32, #tpu.memory_space<vmem>>, vector<1x16x64xf32>
    %206 = vector.shape_cast %205 : vector<1x16x64xf32> to vector<16x64xf32>
    %cst_189 = arith.constant dense<0.000000e+00> : vector<16x64xf32>
    %207 = tpu.matmul %204, %206, %cst_189 {dimension_numbers = #tpu.dot_dimension_numbers<[1], [0], [0], [1], [0, 0, 1, 1], [], []>} : vector<16x16xf32>, vector<16x64xf32>, vector<16x64xf32> -> vector<16x64xf32>
    %208 = arith.addf %201, %207 : vector<16x64xf32>
    %c2_190 = arith.constant 2 : index
    %c0_191 = arith.constant 0 : index
    %c0_192 = arith.constant 0 : index
    %209 = vector.load %arg9[%c2_190, %c0_191, %c0_192] : memref<9x16x16xf32, #tpu.memory_space<vmem>>, vector<1x16x16xf32>
    %210 = vector.shape_cast %209 : vector<1x16x16xf32> to vector<16x16xf32>
    %cst_193 = arith.constant dense<0.000000e+00> : vector<16x16xf32>
    %211 = tpu.matmul %210, %195, %cst_193 {dimension_numbers = #tpu.dot_dimension_numbers<[1], [0], [0], [1], [0, 0, 1, 1], [], []>} : vector<16x16xf32>, vector<16x16xf32>, vector<16x16xf32> -> vector<16x16xf32>
    %c2_194 = arith.constant 2 : index
    %c0_195 = arith.constant 0 : index
    %c0_196 = arith.constant 0 : index
    %212 = vector.load %arg8[%c2_194, %c0_195, %c0_196] : memref<9x16x64xf32, #tpu.memory_space<vmem>>, vector<1x16x64xf32>
    %213 = vector.shape_cast %212 : vector<1x16x64xf32> to vector<16x64xf32>
    %cst_197 = arith.constant dense<0.000000e+00> : vector<16x64xf32>
    %214 = tpu.matmul %211, %213, %cst_197 {dimension_numbers = #tpu.dot_dimension_numbers<[1], [0], [0], [1], [0, 0, 1, 1], [], []>} : vector<16x16xf32>, vector<16x64xf32>, vector<16x64xf32> -> vector<16x64xf32>
    %215 = arith.addf %208, %214 : vector<16x64xf32>
    %c3_198 = arith.constant 3 : index
    %c0_199 = arith.constant 0 : index
    %c0_200 = arith.constant 0 : index
    %216 = vector.load %arg9[%c3_198, %c0_199, %c0_200] : memref<9x16x16xf32, #tpu.memory_space<vmem>>, vector<1x16x16xf32>
    %217 = vector.shape_cast %216 : vector<1x16x16xf32> to vector<16x16xf32>
    %cst_201 = arith.constant dense<0.000000e+00> : vector<16x16xf32>
    %218 = tpu.matmul %217, %195, %cst_201 {dimension_numbers = #tpu.dot_dimension_numbers<[1], [0], [0], [1], [0, 0, 1, 1], [], []>} : vector<16x16xf32>, vector<16x16xf32>, vector<16x16xf32> -> vector<16x16xf32>
    %c3_202 = arith.constant 3 : index
    %c0_203 = arith.constant 0 : index
    %c0_204 = arith.constant 0 : index
    %219 = vector.load %arg8[%c3_202, %c0_203, %c0_204] : memref<9x16x64xf32, #tpu.memory_space<vmem>>, vector<1x16x64xf32>
    %220 = vector.shape_cast %219 : vector<1x16x64xf32> to vector<16x64xf32>
    %cst_205 = arith.constant dense<0.000000e+00> : vector<16x64xf32>
    %221 = tpu.matmul %218, %220, %cst_205 {dimension_numbers = #tpu.dot_dimension_numbers<[1], [0], [0], [1], [0, 0, 1, 1], [], []>} : vector<16x16xf32>, vector<16x64xf32>, vector<16x64xf32> -> vector<16x64xf32>
    %222 = arith.addf %215, %221 : vector<16x64xf32>
    %c4_206 = arith.constant 4 : index
    %c0_207 = arith.constant 0 : index
    %c0_208 = arith.constant 0 : index
    %223 = vector.load %arg9[%c4_206, %c0_207, %c0_208] : memref<9x16x16xf32, #tpu.memory_space<vmem>>, vector<1x16x16xf32>
    %224 = vector.shape_cast %223 : vector<1x16x16xf32> to vector<16x16xf32>
    %cst_209 = arith.constant dense<0.000000e+00> : vector<16x16xf32>
    %225 = tpu.matmul %224, %195, %cst_209 {dimension_numbers = #tpu.dot_dimension_numbers<[1], [0], [0], [1], [0, 0, 1, 1], [], []>} : vector<16x16xf32>, vector<16x16xf32>, vector<16x16xf32> -> vector<16x16xf32>
    %c4_210 = arith.constant 4 : index
    %c0_211 = arith.constant 0 : index
    %c0_212 = arith.constant 0 : index
    %226 = vector.load %arg8[%c4_210, %c0_211, %c0_212] : memref<9x16x64xf32, #tpu.memory_space<vmem>>, vector<1x16x64xf32>
    %227 = vector.shape_cast %226 : vector<1x16x64xf32> to vector<16x64xf32>
    %cst_213 = arith.constant dense<0.000000e+00> : vector<16x64xf32>
    %228 = tpu.matmul %225, %227, %cst_213 {dimension_numbers = #tpu.dot_dimension_numbers<[1], [0], [0], [1], [0, 0, 1, 1], [], []>} : vector<16x16xf32>, vector<16x64xf32>, vector<16x64xf32> -> vector<16x64xf32>
    %229 = arith.addf %222, %228 : vector<16x64xf32>
    %c5_214 = arith.constant 5 : index
    %c0_215 = arith.constant 0 : index
    %c0_216 = arith.constant 0 : index
    %230 = vector.load %arg9[%c5_214, %c0_215, %c0_216] : memref<9x16x16xf32, #tpu.memory_space<vmem>>, vector<1x16x16xf32>
    %231 = vector.shape_cast %230 : vector<1x16x16xf32> to vector<16x16xf32>
    %cst_217 = arith.constant dense<0.000000e+00> : vector<16x16xf32>
    %232 = tpu.matmul %231, %195, %cst_217 {dimension_numbers = #tpu.dot_dimension_numbers<[1], [0], [0], [1], [0, 0, 1, 1], [], []>} : vector<16x16xf32>, vector<16x16xf32>, vector<16x16xf32> -> vector<16x16xf32>
    %c5_218 = arith.constant 5 : index
    %c0_219 = arith.constant 0 : index
    %c0_220 = arith.constant 0 : index
    %233 = vector.load %arg8[%c5_218, %c0_219, %c0_220] : memref<9x16x64xf32, #tpu.memory_space<vmem>>, vector<1x16x64xf32>
    %234 = vector.shape_cast %233 : vector<1x16x64xf32> to vector<16x64xf32>
    %cst_221 = arith.constant dense<0.000000e+00> : vector<16x64xf32>
    %235 = tpu.matmul %232, %234, %cst_221 {dimension_numbers = #tpu.dot_dimension_numbers<[1], [0], [0], [1], [0, 0, 1, 1], [], []>} : vector<16x16xf32>, vector<16x64xf32>, vector<16x64xf32> -> vector<16x64xf32>
    %236 = arith.addf %229, %235 : vector<16x64xf32>
    %c6_222 = arith.constant 6 : index
    %c0_223 = arith.constant 0 : index
    %c0_224 = arith.constant 0 : index
    %237 = vector.load %arg9[%c6_222, %c0_223, %c0_224] : memref<9x16x16xf32, #tpu.memory_space<vmem>>, vector<1x16x16xf32>
    %238 = vector.shape_cast %237 : vector<1x16x16xf32> to vector<16x16xf32>
    %cst_225 = arith.constant dense<0.000000e+00> : vector<16x16xf32>
    %239 = tpu.matmul %238, %195, %cst_225 {dimension_numbers = #tpu.dot_dimension_numbers<[1], [0], [0], [1], [0, 0, 1, 1], [], []>} : vector<16x16xf32>, vector<16x16xf32>, vector<16x16xf32> -> vector<16x16xf32>
    %c6_226 = arith.constant 6 : index
    %c0_227 = arith.constant 0 : index
    %c0_228 = arith.constant 0 : index
    %240 = vector.load %arg8[%c6_226, %c0_227, %c0_228] : memref<9x16x64xf32, #tpu.memory_space<vmem>>, vector<1x16x64xf32>
    %241 = vector.shape_cast %240 : vector<1x16x64xf32> to vector<16x64xf32>
    %cst_229 = arith.constant dense<0.000000e+00> : vector<16x64xf32>
    %242 = tpu.matmul %239, %241, %cst_229 {dimension_numbers = #tpu.dot_dimension_numbers<[1], [0], [0], [1], [0, 0, 1, 1], [], []>} : vector<16x16xf32>, vector<16x64xf32>, vector<16x64xf32> -> vector<16x64xf32>
    %243 = arith.addf %236, %242 : vector<16x64xf32>
    %c7_230 = arith.constant 7 : index
    %c0_231 = arith.constant 0 : index
    %c0_232 = arith.constant 0 : index
    %244 = vector.load %arg9[%c7_230, %c0_231, %c0_232] : memref<9x16x16xf32, #tpu.memory_space<vmem>>, vector<1x16x16xf32>
    %245 = vector.shape_cast %244 : vector<1x16x16xf32> to vector<16x16xf32>
    %cst_233 = arith.constant dense<0.000000e+00> : vector<16x16xf32>
    %246 = tpu.matmul %245, %195, %cst_233 {dimension_numbers = #tpu.dot_dimension_numbers<[1], [0], [0], [1], [0, 0, 1, 1], [], []>} : vector<16x16xf32>, vector<16x16xf32>, vector<16x16xf32> -> vector<16x16xf32>
    %c7_234 = arith.constant 7 : index
    %c0_235 = arith.constant 0 : index
    %c0_236 = arith.constant 0 : index
    %247 = vector.load %arg8[%c7_234, %c0_235, %c0_236] : memref<9x16x64xf32, #tpu.memory_space<vmem>>, vector<1x16x64xf32>
    %248 = vector.shape_cast %247 : vector<1x16x64xf32> to vector<16x64xf32>
    %cst_237 = arith.constant dense<0.000000e+00> : vector<16x64xf32>
    %249 = tpu.matmul %246, %248, %cst_237 {dimension_numbers = #tpu.dot_dimension_numbers<[1], [0], [0], [1], [0, 0, 1, 1], [], []>} : vector<16x16xf32>, vector<16x64xf32>, vector<16x64xf32> -> vector<16x64xf32>
    %250 = arith.addf %243, %249 : vector<16x64xf32>
    %c8_238 = arith.constant 8 : index
    %c0_239 = arith.constant 0 : index
    %c0_240 = arith.constant 0 : index
    %251 = vector.load %arg9[%c8_238, %c0_239, %c0_240] : memref<9x16x16xf32, #tpu.memory_space<vmem>>, vector<1x16x16xf32>
    %252 = vector.shape_cast %251 : vector<1x16x16xf32> to vector<16x16xf32>
    %cst_241 = arith.constant dense<0.000000e+00> : vector<16x16xf32>
    %253 = tpu.matmul %252, %195, %cst_241 {dimension_numbers = #tpu.dot_dimension_numbers<[1], [0], [0], [1], [0, 0, 1, 1], [], []>} : vector<16x16xf32>, vector<16x16xf32>, vector<16x16xf32> -> vector<16x16xf32>
    %c8_242 = arith.constant 8 : index
    %c0_243 = arith.constant 0 : index
    %c0_244 = arith.constant 0 : index
    %254 = vector.load %arg8[%c8_242, %c0_243, %c0_244] : memref<9x16x64xf32, #tpu.memory_space<vmem>>, vector<1x16x64xf32>
    %255 = vector.shape_cast %254 : vector<1x16x64xf32> to vector<16x64xf32>
    %cst_245 = arith.constant dense<0.000000e+00> : vector<16x64xf32>
    %256 = tpu.matmul %253, %255, %cst_245 {dimension_numbers = #tpu.dot_dimension_numbers<[1], [0], [0], [1], [0, 0, 1, 1], [], []>} : vector<16x16xf32>, vector<16x64xf32>, vector<16x64xf32> -> vector<16x64xf32>
    %257 = arith.addf %250, %256 : vector<16x64xf32>
    %c0_246 = arith.constant 0 : index
    %c0_247 = arith.constant 0 : index
    %c0_248 = arith.constant 0 : index
    %258 = vector.load %arg10[%c0_246, %c0_247, %c0_248] : memref<3x16x1xf32, #tpu.memory_space<vmem>>, vector<1x16x1xf32>
    %259 = vector.shape_cast %258 : vector<1x16x1xf32> to vector<16x1xf32>
    %260 = vector.broadcast %259 : vector<16x1xf32> to vector<16x64xf32>
    %261 = arith.addf %257, %260 : vector<16x64xf32>
    %cst_249 = arith.constant 0.000000e+00 : f32
    %262 = vector.broadcast %cst_249 : f32 to vector<16x64xf32>
    %263 = arith.maximumf %261, %262 : vector<16x64xf32>
    %cst_250 = arith.constant dense<0.000000e+00> : vector<16x64xf32>
    %264 = tpu.matmul %0, %263, %cst_250 {dimension_numbers = #tpu.dot_dimension_numbers<[1], [0], [0], [1], [0, 0, 1, 1], [], []>} : vector<16x16xf32>, vector<16x64xf32>, vector<16x64xf32> -> vector<16x64xf32>
    %265 = arith.mulf %263, %263 : vector<16x64xf32>
    %cst_251 = arith.constant dense<0.000000e+00> : vector<16x64xf32>
    %266 = tpu.matmul %0, %265, %cst_251 {dimension_numbers = #tpu.dot_dimension_numbers<[1], [0], [0], [1], [0, 0, 1, 1], [], []>} : vector<16x16xf32>, vector<16x64xf32>, vector<16x64xf32> -> vector<16x64xf32>
    %cst_252 = arith.constant dense<0.000000e+00> : vector<16xf32>
    %267 = vector.multi_reduction <add>, %264, %cst_252 [1] : vector<16x64xf32> to vector<16xf32>
    %268 = vector.shape_cast %267 : vector<16xf32> to vector<16x1xf32>
    %cst_253 = arith.constant 1.280000e+02 : f32
    %269 = vector.broadcast %cst_253 : f32 to vector<16x1xf32>
    %270 = arith.divf %268, %269 : vector<16x1xf32>
    %cst_254 = arith.constant dense<0.000000e+00> : vector<16xf32>
    %271 = vector.multi_reduction <add>, %266, %cst_254 [1] : vector<16x64xf32> to vector<16xf32>
    %272 = vector.shape_cast %271 : vector<16xf32> to vector<16x1xf32>
    %cst_255 = arith.constant 1.280000e+02 : f32
    %273 = vector.broadcast %cst_255 : f32 to vector<16x1xf32>
    %274 = arith.divf %272, %273 : vector<16x1xf32>
    %275 = arith.mulf %270, %270 : vector<16x1xf32>
    %276 = arith.subf %274, %275 : vector<16x1xf32>
    %cst_256 = arith.constant 0.000000e+00 : f32
    %277 = vector.broadcast %cst_256 : f32 to vector<16x1xf32>
    %278 = arith.maximumf %276, %277 : vector<16x1xf32>
    %cst_257 = arith.constant 9.99999974E-6 : f32
    %279 = vector.broadcast %cst_257 : f32 to vector<16x1xf32>
    %280 = arith.addf %278, %279 : vector<16x1xf32>
    %281 = math.rsqrt %280 : vector<16x1xf32>
    %c1_258 = arith.constant 1 : index
    %c0_259 = arith.constant 0 : index
    %c0_260 = arith.constant 0 : index
    %282 = vector.load %arg10[%c1_258, %c0_259, %c0_260] : memref<3x16x1xf32, #tpu.memory_space<vmem>>, vector<1x16x1xf32>
    %283 = vector.shape_cast %282 : vector<1x16x1xf32> to vector<16x1xf32>
    %284 = arith.mulf %281, %283 : vector<16x1xf32>
    %c2_261 = arith.constant 2 : index
    %c0_262 = arith.constant 0 : index
    %c0_263 = arith.constant 0 : index
    %285 = vector.load %arg10[%c2_261, %c0_262, %c0_263] : memref<3x16x1xf32, #tpu.memory_space<vmem>>, vector<1x16x1xf32>
    %286 = vector.shape_cast %285 : vector<1x16x1xf32> to vector<16x1xf32>
    %287 = arith.mulf %270, %284 : vector<16x1xf32>
    %288 = arith.subf %286, %287 : vector<16x1xf32>
    %289 = vector.broadcast %284 : vector<16x1xf32> to vector<16x64xf32>
    %290 = arith.mulf %263, %289 : vector<16x64xf32>
    %291 = vector.broadcast %288 : vector<16x1xf32> to vector<16x64xf32>
    %292 = arith.addf %290, %291 : vector<16x64xf32>
    %c0_264 = arith.constant 0 : index
    %c0_265 = arith.constant 0 : index
    %c0_266 = arith.constant 0 : index
    %293 = vector.load %arg12[%c0_264, %c0_265, %c0_266] : memref<9x2x16xf32, #tpu.memory_space<vmem>>, vector<1x2x16xf32>
    %294 = vector.shape_cast %293 : vector<1x2x16xf32> to vector<2x16xf32>
    %cst_267 = arith.constant dense<0.000000e+00> : vector<2x64xf32>
    %295 = tpu.matmul %294, %292, %cst_267 {dimension_numbers = #tpu.dot_dimension_numbers<[1], [0], [0], [1], [0, 0, 1, 1], [], []>} : vector<2x16xf32>, vector<16x64xf32>, vector<2x64xf32> -> vector<2x64xf32>
    %c0_268 = arith.constant 0 : index
    %c0_269 = arith.constant 0 : index
    %c0_270 = arith.constant 0 : index
    %296 = vector.load %arg11[%c0_268, %c0_269, %c0_270] : memref<9x64x256xf32, #tpu.memory_space<vmem>>, vector<1x64x256xf32>
    %297 = vector.shape_cast %296 : vector<1x64x256xf32> to vector<64x256xf32>
    %cst_271 = arith.constant dense<0.000000e+00> : vector<2x256xf32>
    %298 = tpu.matmul %295, %297, %cst_271 {dimension_numbers = #tpu.dot_dimension_numbers<[1], [0], [0], [1], [0, 0, 1, 1], [], []>} : vector<2x64xf32>, vector<64x256xf32>, vector<2x256xf32> -> vector<2x256xf32>
    %c1_272 = arith.constant 1 : index
    %c0_273 = arith.constant 0 : index
    %c0_274 = arith.constant 0 : index
    %299 = vector.load %arg12[%c1_272, %c0_273, %c0_274] : memref<9x2x16xf32, #tpu.memory_space<vmem>>, vector<1x2x16xf32>
    %300 = vector.shape_cast %299 : vector<1x2x16xf32> to vector<2x16xf32>
    %cst_275 = arith.constant dense<0.000000e+00> : vector<2x64xf32>
    %301 = tpu.matmul %300, %292, %cst_275 {dimension_numbers = #tpu.dot_dimension_numbers<[1], [0], [0], [1], [0, 0, 1, 1], [], []>} : vector<2x16xf32>, vector<16x64xf32>, vector<2x64xf32> -> vector<2x64xf32>
    %c1_276 = arith.constant 1 : index
    %c0_277 = arith.constant 0 : index
    %c0_278 = arith.constant 0 : index
    %302 = vector.load %arg11[%c1_276, %c0_277, %c0_278] : memref<9x64x256xf32, #tpu.memory_space<vmem>>, vector<1x64x256xf32>
    %303 = vector.shape_cast %302 : vector<1x64x256xf32> to vector<64x256xf32>
    %cst_279 = arith.constant dense<0.000000e+00> : vector<2x256xf32>
    %304 = tpu.matmul %301, %303, %cst_279 {dimension_numbers = #tpu.dot_dimension_numbers<[1], [0], [0], [1], [0, 0, 1, 1], [], []>} : vector<2x64xf32>, vector<64x256xf32>, vector<2x256xf32> -> vector<2x256xf32>
    %305 = arith.addf %298, %304 : vector<2x256xf32>
    %c2_280 = arith.constant 2 : index
    %c0_281 = arith.constant 0 : index
    %c0_282 = arith.constant 0 : index
    %306 = vector.load %arg12[%c2_280, %c0_281, %c0_282] : memref<9x2x16xf32, #tpu.memory_space<vmem>>, vector<1x2x16xf32>
    %307 = vector.shape_cast %306 : vector<1x2x16xf32> to vector<2x16xf32>
    %cst_283 = arith.constant dense<0.000000e+00> : vector<2x64xf32>
    %308 = tpu.matmul %307, %292, %cst_283 {dimension_numbers = #tpu.dot_dimension_numbers<[1], [0], [0], [1], [0, 0, 1, 1], [], []>} : vector<2x16xf32>, vector<16x64xf32>, vector<2x64xf32> -> vector<2x64xf32>
    %c2_284 = arith.constant 2 : index
    %c0_285 = arith.constant 0 : index
    %c0_286 = arith.constant 0 : index
    %309 = vector.load %arg11[%c2_284, %c0_285, %c0_286] : memref<9x64x256xf32, #tpu.memory_space<vmem>>, vector<1x64x256xf32>
    %310 = vector.shape_cast %309 : vector<1x64x256xf32> to vector<64x256xf32>
    %cst_287 = arith.constant dense<0.000000e+00> : vector<2x256xf32>
    %311 = tpu.matmul %308, %310, %cst_287 {dimension_numbers = #tpu.dot_dimension_numbers<[1], [0], [0], [1], [0, 0, 1, 1], [], []>} : vector<2x64xf32>, vector<64x256xf32>, vector<2x256xf32> -> vector<2x256xf32>
    %312 = arith.addf %305, %311 : vector<2x256xf32>
    %c3_288 = arith.constant 3 : index
    %c0_289 = arith.constant 0 : index
    %c0_290 = arith.constant 0 : index
    %313 = vector.load %arg12[%c3_288, %c0_289, %c0_290] : memref<9x2x16xf32, #tpu.memory_space<vmem>>, vector<1x2x16xf32>
    %314 = vector.shape_cast %313 : vector<1x2x16xf32> to vector<2x16xf32>
    %cst_291 = arith.constant dense<0.000000e+00> : vector<2x64xf32>
    %315 = tpu.matmul %314, %292, %cst_291 {dimension_numbers = #tpu.dot_dimension_numbers<[1], [0], [0], [1], [0, 0, 1, 1], [], []>} : vector<2x16xf32>, vector<16x64xf32>, vector<2x64xf32> -> vector<2x64xf32>
    %c3_292 = arith.constant 3 : index
    %c0_293 = arith.constant 0 : index
    %c0_294 = arith.constant 0 : index
    %316 = vector.load %arg11[%c3_292, %c0_293, %c0_294] : memref<9x64x256xf32, #tpu.memory_space<vmem>>, vector<1x64x256xf32>
    %317 = vector.shape_cast %316 : vector<1x64x256xf32> to vector<64x256xf32>
    %cst_295 = arith.constant dense<0.000000e+00> : vector<2x256xf32>
    %318 = tpu.matmul %315, %317, %cst_295 {dimension_numbers = #tpu.dot_dimension_numbers<[1], [0], [0], [1], [0, 0, 1, 1], [], []>} : vector<2x64xf32>, vector<64x256xf32>, vector<2x256xf32> -> vector<2x256xf32>
    %319 = arith.addf %312, %318 : vector<2x256xf32>
    %c4_296 = arith.constant 4 : index
    %c0_297 = arith.constant 0 : index
    %c0_298 = arith.constant 0 : index
    %320 = vector.load %arg12[%c4_296, %c0_297, %c0_298] : memref<9x2x16xf32, #tpu.memory_space<vmem>>, vector<1x2x16xf32>
    %321 = vector.shape_cast %320 : vector<1x2x16xf32> to vector<2x16xf32>
    %cst_299 = arith.constant dense<0.000000e+00> : vector<2x64xf32>
    %322 = tpu.matmul %321, %292, %cst_299 {dimension_numbers = #tpu.dot_dimension_numbers<[1], [0], [0], [1], [0, 0, 1, 1], [], []>} : vector<2x16xf32>, vector<16x64xf32>, vector<2x64xf32> -> vector<2x64xf32>
    %c4_300 = arith.constant 4 : index
    %c0_301 = arith.constant 0 : index
    %c0_302 = arith.constant 0 : index
    %323 = vector.load %arg11[%c4_300, %c0_301, %c0_302] : memref<9x64x256xf32, #tpu.memory_space<vmem>>, vector<1x64x256xf32>
    %324 = vector.shape_cast %323 : vector<1x64x256xf32> to vector<64x256xf32>
    %cst_303 = arith.constant dense<0.000000e+00> : vector<2x256xf32>
    %325 = tpu.matmul %322, %324, %cst_303 {dimension_numbers = #tpu.dot_dimension_numbers<[1], [0], [0], [1], [0, 0, 1, 1], [], []>} : vector<2x64xf32>, vector<64x256xf32>, vector<2x256xf32> -> vector<2x256xf32>
    %326 = arith.addf %319, %325 : vector<2x256xf32>
    %c5_304 = arith.constant 5 : index
    %c0_305 = arith.constant 0 : index
    %c0_306 = arith.constant 0 : index
    %327 = vector.load %arg12[%c5_304, %c0_305, %c0_306] : memref<9x2x16xf32, #tpu.memory_space<vmem>>, vector<1x2x16xf32>
    %328 = vector.shape_cast %327 : vector<1x2x16xf32> to vector<2x16xf32>
    %cst_307 = arith.constant dense<0.000000e+00> : vector<2x64xf32>
    %329 = tpu.matmul %328, %292, %cst_307 {dimension_numbers = #tpu.dot_dimension_numbers<[1], [0], [0], [1], [0, 0, 1, 1], [], []>} : vector<2x16xf32>, vector<16x64xf32>, vector<2x64xf32> -> vector<2x64xf32>
    %c5_308 = arith.constant 5 : index
    %c0_309 = arith.constant 0 : index
    %c0_310 = arith.constant 0 : index
    %330 = vector.load %arg11[%c5_308, %c0_309, %c0_310] : memref<9x64x256xf32, #tpu.memory_space<vmem>>, vector<1x64x256xf32>
    %331 = vector.shape_cast %330 : vector<1x64x256xf32> to vector<64x256xf32>
    %cst_311 = arith.constant dense<0.000000e+00> : vector<2x256xf32>
    %332 = tpu.matmul %329, %331, %cst_311 {dimension_numbers = #tpu.dot_dimension_numbers<[1], [0], [0], [1], [0, 0, 1, 1], [], []>} : vector<2x64xf32>, vector<64x256xf32>, vector<2x256xf32> -> vector<2x256xf32>
    %333 = arith.addf %326, %332 : vector<2x256xf32>
    %c6_312 = arith.constant 6 : index
    %c0_313 = arith.constant 0 : index
    %c0_314 = arith.constant 0 : index
    %334 = vector.load %arg12[%c6_312, %c0_313, %c0_314] : memref<9x2x16xf32, #tpu.memory_space<vmem>>, vector<1x2x16xf32>
    %335 = vector.shape_cast %334 : vector<1x2x16xf32> to vector<2x16xf32>
    %cst_315 = arith.constant dense<0.000000e+00> : vector<2x64xf32>
    %336 = tpu.matmul %335, %292, %cst_315 {dimension_numbers = #tpu.dot_dimension_numbers<[1], [0], [0], [1], [0, 0, 1, 1], [], []>} : vector<2x16xf32>, vector<16x64xf32>, vector<2x64xf32> -> vector<2x64xf32>
    %c6_316 = arith.constant 6 : index
    %c0_317 = arith.constant 0 : index
    %c0_318 = arith.constant 0 : index
    %337 = vector.load %arg11[%c6_316, %c0_317, %c0_318] : memref<9x64x256xf32, #tpu.memory_space<vmem>>, vector<1x64x256xf32>
    %338 = vector.shape_cast %337 : vector<1x64x256xf32> to vector<64x256xf32>
    %cst_319 = arith.constant dense<0.000000e+00> : vector<2x256xf32>
    %339 = tpu.matmul %336, %338, %cst_319 {dimension_numbers = #tpu.dot_dimension_numbers<[1], [0], [0], [1], [0, 0, 1, 1], [], []>} : vector<2x64xf32>, vector<64x256xf32>, vector<2x256xf32> -> vector<2x256xf32>
    %340 = arith.addf %333, %339 : vector<2x256xf32>
    %c7_320 = arith.constant 7 : index
    %c0_321 = arith.constant 0 : index
    %c0_322 = arith.constant 0 : index
    %341 = vector.load %arg12[%c7_320, %c0_321, %c0_322] : memref<9x2x16xf32, #tpu.memory_space<vmem>>, vector<1x2x16xf32>
    %342 = vector.shape_cast %341 : vector<1x2x16xf32> to vector<2x16xf32>
    %cst_323 = arith.constant dense<0.000000e+00> : vector<2x64xf32>
    %343 = tpu.matmul %342, %292, %cst_323 {dimension_numbers = #tpu.dot_dimension_numbers<[1], [0], [0], [1], [0, 0, 1, 1], [], []>} : vector<2x16xf32>, vector<16x64xf32>, vector<2x64xf32> -> vector<2x64xf32>
    %c7_324 = arith.constant 7 : index
    %c0_325 = arith.constant 0 : index
    %c0_326 = arith.constant 0 : index
    %344 = vector.load %arg11[%c7_324, %c0_325, %c0_326] : memref<9x64x256xf32, #tpu.memory_space<vmem>>, vector<1x64x256xf32>
    %345 = vector.shape_cast %344 : vector<1x64x256xf32> to vector<64x256xf32>
    %cst_327 = arith.constant dense<0.000000e+00> : vector<2x256xf32>
    %346 = tpu.matmul %343, %345, %cst_327 {dimension_numbers = #tpu.dot_dimension_numbers<[1], [0], [0], [1], [0, 0, 1, 1], [], []>} : vector<2x64xf32>, vector<64x256xf32>, vector<2x256xf32> -> vector<2x256xf32>
    %347 = arith.addf %340, %346 : vector<2x256xf32>
    %c8_328 = arith.constant 8 : index
    %c0_329 = arith.constant 0 : index
    %c0_330 = arith.constant 0 : index
    %348 = vector.load %arg12[%c8_328, %c0_329, %c0_330] : memref<9x2x16xf32, #tpu.memory_space<vmem>>, vector<1x2x16xf32>
    %349 = vector.shape_cast %348 : vector<1x2x16xf32> to vector<2x16xf32>
    %cst_331 = arith.constant dense<0.000000e+00> : vector<2x64xf32>
    %350 = tpu.matmul %349, %292, %cst_331 {dimension_numbers = #tpu.dot_dimension_numbers<[1], [0], [0], [1], [0, 0, 1, 1], [], []>} : vector<2x16xf32>, vector<16x64xf32>, vector<2x64xf32> -> vector<2x64xf32>
    %c8_332 = arith.constant 8 : index
    %c0_333 = arith.constant 0 : index
    %c0_334 = arith.constant 0 : index
    %351 = vector.load %arg11[%c8_332, %c0_333, %c0_334] : memref<9x64x256xf32, #tpu.memory_space<vmem>>, vector<1x64x256xf32>
    %352 = vector.shape_cast %351 : vector<1x64x256xf32> to vector<64x256xf32>
    %cst_335 = arith.constant dense<0.000000e+00> : vector<2x256xf32>
    %353 = tpu.matmul %350, %352, %cst_335 {dimension_numbers = #tpu.dot_dimension_numbers<[1], [0], [0], [1], [0, 0, 1, 1], [], []>} : vector<2x64xf32>, vector<64x256xf32>, vector<2x256xf32> -> vector<2x256xf32>
    %354 = arith.addf %347, %353 : vector<2x256xf32>
    %c0_336 = arith.constant 0 : index
    %c0_337 = arith.constant 0 : index
    %c0_338 = arith.constant 0 : index
    %355 = vector.load %arg13[%c0_336, %c0_337, %c0_338] : memref<3x2x1xf32, #tpu.memory_space<vmem>>, vector<1x2x1xf32>
    %356 = vector.shape_cast %355 : vector<1x2x1xf32> to vector<2x1xf32>
    %357 = vector.broadcast %356 : vector<2x1xf32> to vector<2x256xf32>
    %358 = arith.addf %354, %357 : vector<2x256xf32>
    %c0_339 = arith.constant 0 : index
    %c0_340 = arith.constant 0 : index
    %359 = vector.load %arg14[%c0_339, %c0_340] : memref<2x256xf32, #tpu.memory_space<vmem>>, vector<2x256xf32>
    tpu.vector_store %arg14[%c0_339, %c0_340], %358 {strides = array<i32>} : memref<2x256xf32, #tpu.memory_space<vmem>>, vector<2x256xf32>,
    return
  }
}

</mosaic_0001>

<bundles_post_ra>
// kernel: conv_autoencoder_forward.1
= control target key start
LH: loop header
LB: loop body
LE: loop exit
PB: predicated region body
PF: predicated region fallthrough
CT: control target
= control target key end

     0   :  { %19 = vsyncpa [#allocation3], 0  ;;  %s11262_s0 = inlined_call_operand.vmem [shape: f32[2,256], index: 0, kind: input, shape index: {}]   ;;  %s11263_s1 = inlined_call_operand.vmem [shape: f32[16,16], index: 1, kind: input, shape index: {}]   ;;  %s11264_s2 = inlined_call_operand.vmem [shape: f32[9,256,64], index: 2, kind: input, shape index: {}]   ;;  %s11265_s3 = inlined_call_operand.vmem [shape: f32[9,16,2], index: 3, kind: input, shape index: {}]   ;;  %s11266_s4 = inlined_call_operand.vmem [shape: f32[3,16,1], index: 4, kind: input, shape index: {}]   ;;  %s11267_s5 = inlined_call_operand.hbm [shape: f32[9,64,16], index: 5, kind: input, shape index: {}]   ;;  %s11268_s6 = inlined_call_operand.vmem [shape: f32[9,16,16], index: 6, kind: input, shape index: {}]   ;;  %s11269_s7 = inlined_call_operand.vmem [shape: f32[3,16,1], index: 7, kind: input, shape index: {}]   ;;  %s11270_s8 = inlined_call_operand.vmem [shape: f32[9,16,64], index: 8, kind: input, shape index: {}]   ;;  %s11271_s9 = inlined_call_operand.vmem [shape: f32[9,16,16], index: 9, kind: input, shape index: {}]   ;;  %s11272_s10 = inlined_call_operand.vmem [shape: f32[3,16,1], index: 10, kind: input, shape index: {}]   ;;  %s11273_s11 = inlined_call_operand.hbm [shape: f32[9,64,256], index: 11, kind: input, shape index: {}]   ;;  %s11274_s12 = inlined_call_operand.vmem [shape: f32[9,2,16], index: 12, kind: input, shape index: {}]   ;;  %s11275_s13 = inlined_call_operand.vmem [shape: f32[3,2,1], index: 13, kind: input, shape index: {}]   ;;  %s11276_s14 = inlined_call_operand.vmem [shape: f32[2,256], index: 14, kind: output, shape index: {}]  }
   0x1   :  { %20 = vsyncpa [#allocation5], 0  ;;  %s9579_s29 = smov [#allocation2]   ;;  %s9531_s17 = scalar_lea.hbm %s11267_s5, 9216 }
   0x2   :  { %s36_s30 = sshll.u32 %s9579_s29, 4  ;;  %p9532_p0 = scmp.ne.s32.totalorder %s11267_s5, %s9531_s17  ;;  %s37_s30 = int_to_ptr.vmem [resolvable:$true] %s36_s30 }
   0x3   :  { %p9535_p1 = scmp.lt.u32.totalorder %s9531_s17, %s11267_s5 }
   0x5   :  { %p9537_p2 = pnand %p9535_p1, %p9532_p0 }
   0x7   :  { %9540 = shalt.err (!%p9537_p2)
}
   0x8   :  { %s9541_s22 = scalar_lea.vmem %s37_s30, 9216  ;;  %p9546_p4 = scmp.lt.s32.totalorder %s37_s30, %s37_s30 }
   0x9   :  { %p9542_p3 = scmp.ne.s32.totalorder %s37_s30, %s9541_s22  ;;  %p9547_p5 = scmp.lt.s32.totalorder %s9541_s22, %s9541_s22 }
   0xb   :  { %p9548_p6 = por %p9547_p5, %p9546_p4 }
   0xd   :  { %p9549_p7 = pnand %p9548_p6, %p9542_p3 }
   0xf   :  { %9552 = shalt.err (!%p9549_p7)
}
  0x10   :  { %s9580_s23 = smov 128   ;;  %s9581_s24 = smov 8  }
  0x11   :  { %42 = dma.hbm_to_vmem [thread:$0]  %s11267_s5, 9216, %s37_s30, [#allocation3], %s9580_s23, %s9580_s23, %s9581_s24  }
  0x12   :  { %s9582_s27 = smov [#allocation4]   ;;  %s9553_s16 = scalar_lea.hbm %s11273_s11, 18432 }
  0x13   :  { %s58_s28 = sshll.u32 %s9582_s27, 4  ;;  %p9554_p8 = scmp.ne.s32.totalorder %s11273_s11, %s9553_s16  ;;  %s59_s28 = int_to_ptr.vmem [resolvable:$true] %s58_s28 }
  0x14   :  { %p9557_p9 = scmp.lt.u32.totalorder %s9553_s16, %s11273_s11 }
  0x16   :  { %p9559_p10 = pnand %p9557_p9, %p9554_p8 }
  0x18   :  { %9562 = shalt.err (!%p9559_p10)
}
  0x19   :  { %s9563_s21 = scalar_lea.vmem %s59_s28, 18432  ;;  %p9568_p12 = scmp.lt.s32.totalorder %s59_s28, %s59_s28 }
  0x1a   :  { %p9564_p11 = scmp.ne.s32.totalorder %s59_s28, %s9563_s21  ;;  %p9569_p13 = scmp.lt.s32.totalorder %s9563_s21, %s9563_s21 }
  0x1c   :  { %p9570_p0 = por %p9569_p13, %p9568_p12 }
  0x1e   :  { %p9571_p1 = pnand %p9570_p0, %p9564_p11 }
  0x20   :  { %9574 = shalt.err (!%p9571_p1)
}
  0x21   :  { %s9583_s5 = smov 256   ;;  %s9584_s30 = smov 16  }
  0x22   :  { %64 = dma.hbm_to_vmem [thread:$0]  %s11273_s11, 18432, %s59_s28, [#allocation5], %s9583_s5, %s9583_s5, %s9584_s30  }
  0x23   :  { %9575 = dma.done.wait [#allocation3], 9216  }
  0x24   :  { %9576 = vsyncadd [#allocation3], 4294958080 }
  0x25   :  { %9577 = dma.done.wait [#allocation5], 18432  }
  0x26   :  { %9578 = vsyncadd [#allocation5], 4294948864  ;;  %v9585_v0 = vmov 0.0   ;;  %vm96_vm0 = vcmask 1041408   ;;  %v7190_v3 = vld [vmem:[%s11265_s3 + $0x10] sm:$0xff]  ;;  %v78_v4 = vld [vmem:[%s11265_s3] sm:$0xff] }
  0x27   :  { %283 = vmatprep.mubr.f32.mxu1 %v9585_v0  ;;  %165 = vmatprep.mubr.f32.mxu0 %v9585_v0  ;;  %v9693_v1 = vld.sshfl [vmem:[%s11262_s0] sm:$0x33 pattern:$0x76325410]  ;;  %vm89_vm1 = vcmask 15360   ;;  %v7213_v6 = vld [vmem:[%s11264_s2 + $0x188] sm:$0xff] }
  0x28   :  { %v9697_v2 = vcombine.high %v9693_v1, %v9693_v1  ;;  %v7212_v5 = vld [vmem:[%s11264_s2 + $0x180] sm:$0xff]  ;;  %v7197_v8 = vld [vmem:[%s11264_s2 + $0x108] sm:$0xff]  ;;  %v7214_v10 = vld [vmem:[%s11264_s2 + $0x190] sm:$0xff]  ;;  %vm1867_vm2 = vcmask 130048   ;;  %vm2026_vm3 = vcmask 523264   ;;  %vm9588_vm4 = vmmov 0  }
  0x29   :  { %v7196_v7 = vld [vmem:[%s11264_s2 + $0x100] sm:$0xff]  ;;  %v8721_v9 = vpack.c.bf16 %v7213_v6, %v7212_v5  ;;  %v7215_v11 = vld [vmem:[%s11264_s2 + $0x198] sm:$0xff]  ;;  %v7198_v14 = vld [vmem:[%s11264_s2 + $0x110] sm:$0xff] }
  0x2a   :  { %7192 = vmatprep.subr.msk.mxu1 %vm96_vm0, %v9697_v2  ;;  %7186 = vmatprep.subr.msk.mxu0 %vm96_vm0, %v9697_v2  ;;  %v8723_v12 = vpack.c.bf16 %v7197_v8, %v7196_v7  ;;  %v7191_v13 = vld [vmem:[%s11265_s3 + $0x18] sm:$0xff]  ;;  %v79_v16 = vld [vmem:[%s11265_s3 + $0x8] sm:$0xff]  ;;  %v8725_v17 = vpack.c.bf16 %v7215_v11, %v7214_v10  ;;  %v7216_v18 = vld [vmem:[%s11264_s2 + $0x1a0] sm:$0xff] }
  0x2b   :  { %7193 = vmatpush1.msk.msra.mxu1 %vm96_vm0, %v9693_v1  ;;  %7187 = vmatpush1.msk.msra.mxu0 %vm96_vm0, %v9693_v1  ;;  %v7199_v15 = vld [vmem:[%s11264_s2 + $0x118] sm:$0xff]  ;;  %v7217_v19 = vld [vmem:[%s11264_s2 + $0x1a8] sm:$0xff]  ;;  %v7200_v22 = vld [vmem:[%s11264_s2 + $0x120] sm:$0xff] }
  0x2c   :  { %7194 = vmatmul.mubr.msk.f32.vlgmr.msra.gmra.mrb[0].mxu1 %vm89_vm1, %v7190_v3  ;;  %7188 = vmatmul.mubr.msk.f32.vlgmr.msra.gmra.mrb[0].mxu0 %vm89_vm1, %v78_v4  ;;  %v8727_v20 = vpack.c.bf16 %v7199_v15, %v7198_v14  ;;  %v8729_v21 = vpack.c.bf16 %v7217_v19, %v7216_v18  ;;  %v7201_v23 = vld [vmem:[%s11264_s2 + $0x128] sm:$0xff]  ;;  %v7218_v24 = vld [vmem:[%s11264_s2 + $0x1b0] sm:$0xff]  ;;  %v7219_v25 = vld [vmem:[%s11264_s2 + $0x1b8] sm:$0xff] }
  0x2d   :  { %289 = vmatprep.mubr.f32.mxu1 %v9585_v0  ;;  %171 = vmatprep.mubr.f32.mxu0 %v9585_v0  ;;  %v8731_v26 = vpack.c.bf16 %v7201_v23, %v7200_v22  ;;  %v8733_v27 = vpack.c.bf16 %v7219_v25, %v7218_v24  ;;  %v7202_v28 = vld [vmem:[%s11264_s2 + $0x130] sm:$0xff]  ;;  %v7203_v29 = vld [vmem:[%s11264_s2 + $0x138] sm:$0xff]  ;;  %v7220_v30 = vld [vmem:[%s11264_s2 + $0x1c0] sm:$0xff] }
  0x2e   :  { %8722 = vmatprep.subr.bf16.mxu0 %v8721_v9  ;;  %v7221_v31 = vld [vmem:[%s11264_s2 + $0x1c8] sm:$0xff]  ;;  %v8735_v32 = vpack.c.bf16 %v7203_v29, %v7202_v28  ;;  %v7204_v34 = vld [vmem:[%s11264_s2 + $0x140] sm:$0xff]  ;;  %v7222_v36 = vld [vmem:[%s11264_s2 + $0x1d0] sm:$0xff] }
  0x2f   :  { %8724 = vmatpush3.bf16.msra.mxu0 %v8723_v12  ;;  %v8737_v33 = vpack.c.bf16 %v7221_v31, %v7220_v30  ;;  %v7205_v35 = vld [vmem:[%s11264_s2 + $0x148] sm:$0xff]  ;;  %v7223_v37 = vld [vmem:[%s11264_s2 + $0x1d8] sm:$0xff]  ;;  %v7206_v40 = vld [vmem:[%s11264_s2 + $0x150] sm:$0xff] }
  0x30   :  { %7195 = vmatmul.mubr.msk.f32.gmra.mrb[2].mxu1 %vm89_vm1, %v7191_v13  ;;  %7189 = vmatmul.mubr.msk.f32.gmra.mrb[2].mxu0 %vm89_vm1, %v79_v16  ;;  %v8739_v38 = vpack.c.bf16 %v7205_v35, %v7204_v34  ;;  %v8741_v39 = vpack.c.bf16 %v7223_v37, %v7222_v36  ;;  %v7207_v41 = vld [vmem:[%s11264_s2 + $0x158] sm:$0xff]  ;;  %v7224_v42 = vld [vmem:[%s11264_s2 + $0x1e0] sm:$0xff]  ;;  %v7225_v43 = vld [vmem:[%s11264_s2 + $0x1e8] sm:$0xff] }
  0x31   :  { %8726 = vmatprep.subr.bf16.mxu0 %v8725_v17  ;;  %v8743_v44 = vpack.c.bf16 %v7207_v41, %v7206_v40  ;;  %v8745_v45 = vpack.c.bf16 %v7225_v43, %v7224_v42  ;;  %v7208_v46 = vld [vmem:[%s11264_s2 + $0x160] sm:$0xff]  ;;  %v7209_v47 = vld [vmem:[%s11264_s2 + $0x168] sm:$0xff]  ;;  %v7226_v48 = vld [vmem:[%s11264_s2 + $0x1f0] sm:$0xff] }
  0x32   :  { %v7227_v49 = vld [vmem:[%s11264_s2 + $0x1f8] sm:$0xff]  ;;  %v8747_v50 = vpack.c.bf16 %v7209_v47, %v7208_v46  ;;  %v7210_v52 = vld [vmem:[%s11264_s2 + $0x170] sm:$0xff]  ;;  %v194_v55 = vld [vmem:[%s11264_s2 + $0x80] sm:$0xff] }
  0x33   :  { %8728 = vmatpush3.bf16.msra.mxu0 %v8727_v20  ;;  %v8749_v51 = vpack.c.bf16 %v7227_v49, %v7226_v48  ;;  %v7211_v53 = vld [vmem:[%s11264_s2 + $0x178] sm:$0xff]  ;;  %v195_v56 = vld [vmem:[%s11264_s2 + $0x88] sm:$0xff]  ;;  %v178_v58 = vld [vmem:[%s11264_s2] sm:$0xff] }
  0x34   :  { %8730 = vmatprep.subr.bf16.mxu0 %v8729_v21  ;;  %v8751_v54 = vpack.c.bf16 %v7211_v53, %v7210_v52  ;;  %v8753_v57 = vpack.c.bf16 %v195_v56, %v194_v55  ;;  %v179_v59 = vld [vmem:[%s11264_s2 + $0x8] sm:$0xff]  ;;  %v196_v60 = vld [vmem:[%s11264_s2 + $0x90] sm:$0xff]  ;;  %v197_v61 = vld [vmem:[%s11264_s2 + $0x98] sm:$0xff] }
  0x35   :  { %v8755_v63 = vpack.c.bf16 %v179_v59, %v178_v58  ;;  %v8757_v5 = vpack.c.bf16 %v197_v61, %v196_v60  ;;  %v180_v6 = vld [vmem:[%s11264_s2 + $0x10] sm:$0xff]  ;;  %v181_v7 = vld [vmem:[%s11264_s2 + $0x18] sm:$0xff]  ;;  %v198_v9 = vld [vmem:[%s11264_s2 + $0xa0] sm:$0xff] }
  0x36   :  { %v199_v10 = vld [vmem:[%s11264_s2 + $0xa8] sm:$0xff]  ;;  %v8759_v11 = vpack.c.bf16 %v181_v7, %v180_v6  ;;  %v182_v15 = vld [vmem:[%s11264_s2 + $0x20] sm:$0xff]  ;;  %v200_v19 = vld [vmem:[%s11264_s2 + $0xb0] sm:$0xff] }
  0x37   :  { %8732 = vmatpush3.bf16.msra.mxu0 %v8731_v26  ;;  %v8761_v14 = vpack.c.bf16 %v199_v10, %v198_v9  ;;  %v183_v16 = vld [vmem:[%s11264_s2 + $0x28] sm:$0xff]  ;;  %v201_v20 = vld [vmem:[%s11264_s2 + $0xb8] sm:$0xff]  ;;  %v184_v23 = vld [vmem:[%s11264_s2 + $0x30] sm:$0xff] }
  0x38   :  { %8734 = vmatprep.subr.bf16.mxu0 %v8733_v27  ;;  %v8763_v21 = vpack.c.bf16 %v183_v16, %v182_v15  ;;  %v8765_v22 = vpack.c.bf16 %v201_v20, %v200_v19  ;;  %v185_v24 = vld [vmem:[%s11264_s2 + $0x38] sm:$0xff]  ;;  %v202_v25 = vld [vmem:[%s11264_s2 + $0xc0] sm:$0xff]  ;;  %v203_v26 = vld [vmem:[%s11264_s2 + $0xc8] sm:$0xff] }
  0x39   :  { %v8767_v27 = vpack.c.bf16 %v185_v24, %v184_v23  ;;  %v8769_v28 = vpack.c.bf16 %v203_v26, %v202_v25  ;;  %v186_v29 = vld [vmem:[%s11264_s2 + $0x40] sm:$0xff]  ;;  %v187_v30 = vld [vmem:[%s11264_s2 + $0x48] sm:$0xff]  ;;  %v204_v31 = vld [vmem:[%s11264_s2 + $0xd0] sm:$0xff] }
  0x3a   :  { %v188_v35 = vld [vmem:[%s11264_s2 + $0x50] sm:$0xff]  ;;  %v189_v36 = vld [vmem:[%s11264_s2 + $0x58] sm:$0xff]  ;;  %v206_v37 = vld [vmem:[%s11264_s2 + $0xe0] sm:$0xff] }
  0x3b   :  { %8736 = vmatpush3.bf16.msra.mxu0 %v8735_v32  ;;  %v205_v32 = vld [vmem:[%s11264_s2 + $0xd8] sm:$0xff]  ;;  %v190_v41 = vld [vmem:[%s11264_s2 + $0x60] sm:$0xff]  ;;  %v191_v42 = vld [vmem:[%s11264_s2 + $0x68] sm:$0xff] }
  0x3c   :  { %8738 = vmatprep.subr.bf16.mxu0 %v8737_v33  ;;  %v8771_v33 = vpack.c.bf16 %v187_v30, %v186_v29  ;;  %v8773_v34 = vpack.c.bf16 %v205_v32, %v204_v31  ;;  %v208_v43 = vld [vmem:[%s11264_s2 + $0xf0] sm:$0xff]  ;;  %v193_v48 = vld [vmem:[%s11264_s2 + $0x78] sm:$0xff]  ;;  %v7251_v55 = vld [vmem:[%s11264_s2 + $0x288] sm:$0xff] }
  0x3d   :  { %v192_v47 = vld [vmem:[%s11264_s2 + $0x70] sm:$0xff]  ;;  %v7267_v53 = vld [vmem:[%s11265_s3 + $0x38] sm:$0xff]  ;;  %v7234_v56 = vld [vmem:[%s11264_s2 + $0x200] sm:$0xff] }
  0x3e   :  { %v8783_v49 = vpack.c.bf16 %v193_v48, %v192_v47  ;;  %v7266_v52 = vld [vmem:[%s11265_s3 + $0x30] sm:$0xff]  ;;  %v7235_v58 = vld [vmem:[%s11264_s2 + $0x208] sm:$0xff]  ;;  %v7253_v60 = vld [vmem:[%s11264_s2 + $0x298] sm:$0xff] }
  0x3f   :  { %8740 = vmatpush3.bf16.msra.mxu0 %v8739_v38  ;;  %v207_v38 = vld [vmem:[%s11264_s2 + $0xe8] sm:$0xff]  ;;  %v7252_v59 = vld [vmem:[%s11264_s2 + $0x290] sm:$0xff]  ;;  %v8787_v61 = vpack.c.bf16 %v7235_v58, %v7234_v56  ;;  %v7288_v6 = vld [vmem:[%s11264_s2 + $0x380] sm:$0xff] }
  0x40   :  { %8742 = vmatprep.subr.bf16.mxu0 %v8741_v39  ;;  %v8775_v39 = vpack.c.bf16 %v189_v36, %v188_v35  ;;  %v8777_v40 = vpack.c.bf16 %v207_v38, %v206_v37  ;;  %v7289_v7 = vld [vmem:[%s11264_s2 + $0x388] sm:$0xff]  ;;  %v7238_v10 = vld [vmem:[%s11264_s2 + $0x220] sm:$0xff]  ;;  %v7256_v15 = vld [vmem:[%s11264_s2 + $0x2b0] sm:$0xff] }
  0x41   :  { %v8817_v9 = vpack.c.bf16 %v7289_v7, %v7288_v6  ;;  %v7291_v19 = vld [vmem:[%s11264_s2 + $0x398] sm:$0xff]  ;;  %v7240_v24 = vld [vmem:[%s11264_s2 + $0x230] sm:$0xff]  ;;  %v7292_v26 = vld [vmem:[%s11264_s2 + $0x3a0] sm:$0xff] }
  0x42   :  { %v7258_v29 = vld [vmem:[%s11264_s2 + $0x2c0] sm:$0xff]  ;;  %v7293_v30 = vld [vmem:[%s11264_s2 + $0x3a8] sm:$0xff]  ;;  %v7294_v35 = vld [vmem:[%s11264_s2 + $0x3b0] sm:$0xff] }
  0x43   :  { %8744 = vmatpush3.bf16.msra.mxu0 %v8743_v44  ;;  %v209_v44 = vld [vmem:[%s11264_s2 + $0xf8] sm:$0xff]  ;;  %v7259_v31 = vld [vmem:[%s11264_s2 + $0x2c8] sm:$0xff]  ;;  %v8825_v32 = vpack.c.bf16 %v7293_v30, %v7292_v26  ;;  %v7244_v47 = vld [vmem:[%s11264_s2 + $0x250] sm:$0xff] }
  0x44   :  { %8746 = vmatprep.subr.bf16.mxu0 %v8745_v45  ;;  %v8779_v45 = vpack.c.bf16 %v191_v42, %v190_v41  ;;  %v8781_v46 = vpack.c.bf16 %v209_v44, %v208_v43  ;;  %v7295_v36 = vld [vmem:[%s11264_s2 + $0x3b8] sm:$0xff]  ;;  %v7243_v41 = vld [vmem:[%s11264_s2 + $0x248] sm:$0xff]  ;;  %v7260_v43 = vld [vmem:[%s11264_s2 + $0x2d0] sm:$0xff] }
  0x45   :  { %v8829_v42 = vpack.c.bf16 %v7295_v36, %v7294_v35  ;;  %v7261_v44 = vld [vmem:[%s11264_s2 + $0x2d8] sm:$0xff]  ;;  %v7246_v58 = vld [vmem:[%s11264_s2 + $0x260] sm:$0xff]  ;;  %v7298_v6 = vld [vmem:[%s11264_s2 + $0x3d0] sm:$0xff] }
  0x46   :  { %v7245_v48 = vld [vmem:[%s11264_s2 + $0x258] sm:$0xff] }
  0x47   :  { %8748 = vmatpush3.bf16.msra.mxu0 %v8747_v50  ;;  %v7228_v50 = vld [vmem:[%s11265_s3 + $0x20] sm:$0xff]  ;;  %v7287_v26 = vld [vmem:[%s11264_s2 + $0x378] sm:$0xff] }
  0x48   :  { %8750 = vmatprep.subr.bf16.mxu0 %v8749_v51  ;;  %v7229_v51 = vld [vmem:[%s11265_s3 + $0x28] sm:$0xff] }
  0x4b   :  { %8752 = vmatpush3.bf16.msra.mxu0 %v8751_v54  ;;  %v7250_v54 = vld [vmem:[%s11264_s2 + $0x280] sm:$0xff] }
  0x4c   :  { %8754 = vmatprep.subr.bf16.mxu0 %v8753_v57  ;;  %v8785_v57 = vpack.c.bf16 %v7251_v55, %v7250_v54  ;;  %v7263_v54 = vld [vmem:[%s11264_s2 + $0x2e8] sm:$0xff]  ;;  %v7296_v55 = vld [vmem:[%s11264_s2 + $0x3c0] sm:$0xff] }
  0x4e   :  { %8786 = vmatprep.subr.bf16.mxu1 %v8785_v57  ;;  %v7297_v57 = vld [vmem:[%s11264_s2 + $0x3c8] sm:$0xff] }
  0x4f   :  { %8788 = vmatpush3.bf16.msra.mxu1 %v8787_v61 }
  0xff   :  { %v285_v62 = vpop.f32.mrb[0].mxu1  ;;  %v9839_v3 = vpop.f32.mrb[0].mxu0 }
 0x100   :  { %v287_v4 = vpop.f32.mrb[1].mxu1  ;;  %v169_v8 = vpop.f32.mrb[1].mxu0 }
 0x101   :  { %393 = vmatprep.mubr.f32.mxu0 %v287_v4  ;;  %v7254_v4 = vld [vmem:[%s11264_s2 + $0x2a0] sm:$0xff] }
 0x102   :  { %394 = vmatmul.mubr.f32.vlgmr.msra.gmra.mrb[4].mxu0 %v285_v62  ;;  %v8789_v62 = vpack.c.bf16 %v7253_v60, %v7252_v59  ;;  %v7247_v59 = vld [vmem:[%s11264_s2 + $0x268] sm:$0xff]  ;;  %v8833_v60 = vpack.c.bf16 %v7297_v57, %v7296_v55 }
 0x103   :  { %8756 = vmatpush3.bf16.msra.mxu0 %v8755_v63  ;;  %v291_v12 = vpop.f32.mrb[2].mxu1  ;;  %v173_v13 = vpop.f32.mrb[2].mxu0  ;;  %v7236_v63 = vld [vmem:[%s11264_s2 + $0x210] sm:$0xff]  ;;  %v8811_v61 = vpack.c.bf16 %v7247_v59, %v7246_v58 }
 0x104   :  { %8758 = vmatprep.subr.bf16.mxu0 %v8757_v5  ;;  %v293_v17 = vpop.f32.mrb[3].mxu1  ;;  %v175_v18 = vpop.f32.mrb[3].mxu0  ;;  %v7255_v5 = vld [vmem:[%s11264_s2 + $0x2a8] sm:$0xff]  ;;  %8790 = vmatprep.subr.bf16.mxu1 %v8789_v62  ;;  %v7280_v62 = vld [vmem:[%s11264_s2 + $0x340] sm:$0xff] }
 0x105   :  { %398 = vmatprep.mubr.f32.mxu0 %v293_v17  ;;  %v7257_v17 = vld [vmem:[%s11264_s2 + $0x2b8] sm:$0xff] }
 0x106   :  { %399 = vmatmul.mubr.f32.gmra.mrb[6].mxu0 %v291_v12  ;;  %v8793_v12 = vpack.c.bf16 %v7255_v5, %v7254_v4  ;;  %v7264_v4 = vld [vmem:[%s11264_s2 + $0x2f0] sm:$0xff]  ;;  %v7265_v5 = vld [vmem:[%s11264_s2 + $0x2f8] sm:$0xff] }
 0x107   :  { %8760 = vmatpush3.bf16.msra.mxu0 %v8759_v11  ;;  %468 = vmatprep.mubr.f32.mxu0 %v169_v8  ;;  %v7272_v11 = vld [vmem:[%s11264_s2 + $0x300] sm:$0xff]  ;;  %v8813_v7 = vpack.c.bf16 %v7265_v5, %v7264_v4  ;;  %v7305_v5 = vld [vmem:[%s11265_s3 + $0x48] sm:$0xff] }
 0x108   :  { %8762 = vmatprep.subr.bf16.mxu0 %v8761_v14  ;;  %v7273_v14 = vld [vmem:[%s11264_s2 + $0x308] sm:$0xff] }
 0x109   :  { %v8819_v16 = vpack.c.bf16 %v7273_v14, %v7272_v11  ;;  %v7283_v14 = vld [vmem:[%s11264_s2 + $0x358] sm:$0xff] }
 0x10b   :  { %8764 = vmatpush3.bf16.msra.mxu0 %v8763_v21  ;;  %v7274_v21 = vld [vmem:[%s11264_s2 + $0x310] sm:$0xff] }
 0x10c   :  { %8766 = vmatprep.subr.bf16.mxu0 %v8765_v22  ;;  %v7275_v22 = vld [vmem:[%s11264_s2 + $0x318] sm:$0xff] }
 0x10d   :  { %v8823_v25 = vpack.c.bf16 %v7275_v22, %v7274_v21  ;;  %v7302_v22 = vld [vmem:[%s11264_s2 + $0x3f0] sm:$0xff] }
 0x10f   :  { %8768 = vmatpush3.bf16.msra.mxu0 %v8767_v27  ;;  %v8797_v27 = vpack.c.bf16 %v7257_v17, %v7256_v15  ;;  %v7301_v17 = vld [vmem:[%s11264_s2 + $0x3e8] sm:$0xff] }
 0x110   :  { %8770 = vmatprep.subr.bf16.mxu0 %v8769_v28  ;;  %v7241_v28 = vld [vmem:[%s11264_s2 + $0x238] sm:$0xff] }
 0x111   :  { %v8799_v37 = vpack.c.bf16 %v7241_v28, %v7240_v24 }
 0x113   :  { %8772 = vmatpush3.bf16.msra.mxu0 %v8771_v33  ;;  %v7276_v33 = vld [vmem:[%s11264_s2 + $0x320] sm:$0xff] }
 0x114   :  { %8774 = vmatprep.subr.bf16.mxu0 %v8773_v34  ;;  %v7277_v34 = vld [vmem:[%s11264_s2 + $0x328] sm:$0xff] }
 0x115   :  { %v8827_v38 = vpack.c.bf16 %v7277_v34, %v7276_v33 }
 0x117   :  { %8776 = vmatpush3.bf16.msra.mxu0 %v8775_v39  ;;  %v8801_v39 = vpack.c.bf16 %v7259_v31, %v7258_v29 }
 0x118   :  { %8778 = vmatprep.subr.bf16.mxu0 %v8777_v40  ;;  %v7242_v40 = vld [vmem:[%s11264_s2 + $0x240] sm:$0xff] }
 0x11b   :  { %8780 = vmatpush3.bf16.msra.mxu0 %v8779_v45  ;;  %v8803_v45 = vpack.c.bf16 %v7243_v41, %v7242_v40  ;;  %v7326_v41 = vld [vmem:[%s11264_s2 + $0x480] sm:$0xff] }
 0x11c   :  { %8782 = vmatprep.subr.bf16.mxu0 %v8781_v46  ;;  %v8805_v46 = vpack.c.bf16 %v7261_v44, %v7260_v43 }
 0x11f   :  { %8784 = vmatpush3.bf16.msra.mxu0 %v8783_v49  ;;  %v7278_v49 = vld [vmem:[%s11264_s2 + $0x330] sm:$0xff] }
 0x120   :  { %7230 = vmatprep.subr.msk.mxu0 %vm96_vm0, %v9697_v2 }
 0x122   :  { %469 = vmatmul.mubr.f32.vlgmr.msra.gmra.mrb[8].mxu0 %v9839_v3  ;;  %v7237_v3 = vld [vmem:[%s11264_s2 + $0x218] sm:$0xff] }
 0x123   :  { %473 = vmatprep.mubr.f32.mxu0 %v175_v18  ;;  %7231 = vmatpush1.msk.msra.mxu0 %vm96_vm0, %v9693_v1  ;;  %v8791_v8 = vpack.c.bf16 %v7237_v3, %v7236_v63  ;;  %v7290_v18 = vld [vmem:[%s11264_s2 + $0x390] sm:$0xff]  ;;  %v7281_v63 = vld [vmem:[%s11264_s2 + $0x348] sm:$0xff] }
 0x124   :  { %7268 = vmatprep.subr.msk.mxu0 %vm96_vm0, %v9697_v2  ;;  %v8821_v20 = vpack.c.bf16 %v7291_v19, %v7290_v18  ;;  %v8835_v3 = vpack.c.bf16 %v7281_v63, %v7280_v62  ;;  %v7284_v19 = vld [vmem:[%s11264_s2 + $0x360] sm:$0xff]  ;;  %v7313_v62 = vld [vmem:[%s11264_s2 + $0x418] sm:$0xff] }
 0x125   :  { %8792 = vmatpush3.bf16.msra.mxu1 %v8791_v8  ;;  %v7299_v8 = vld [vmem:[%s11264_s2 + $0x3d8] sm:$0xff]  ;;  %v7330_v63 = vld [vmem:[%s11264_s2 + $0x4a0] sm:$0xff] }
 0x126   :  { %474 = vmatmul.mubr.f32.gmra.mrb[10].mxu0 %v173_v13  ;;  %v7239_v13 = vld [vmem:[%s11264_s2 + $0x228] sm:$0xff]  ;;  %8794 = vmatprep.subr.bf16.mxu1 %v8793_v12  ;;  %v8837_v11 = vpack.c.bf16 %v7299_v8, %v7298_v6  ;;  %v7314_v8 = vld [vmem:[%s11264_s2 + $0x420] sm:$0xff] }
 0x127   :  { %552 = vmatprep.mubr.f32.mxu0 %v9585_v0  ;;  %v8795_v23 = vpack.c.bf16 %v7239_v13, %v7238_v10  ;;  %v7249_v10 = vld [vmem:[%s11264_s2 + $0x278] sm:$0xff]  ;;  %v7282_v13 = vld [vmem:[%s11264_s2 + $0x350] sm:$0xff] }
 0x128   :  { %v8839_v15 = vpack.c.bf16 %v7283_v14, %v7282_v13  ;;  %v7366_v13 = vld [vmem:[%s11264_s2 + $0x590] sm:$0xff]  ;;  %v7367_v14 = vld [vmem:[%s11264_s2 + $0x598] sm:$0xff] }
 0x129   :  { %8796 = vmatpush3.bf16.msra.mxu1 %v8795_v23  ;;  %v7303_v23 = vld [vmem:[%s11264_s2 + $0x3f8] sm:$0xff] }
 0x12a   :  { %7232 = vmatmul.mubr.msk.f32.vlgmr.msra.gmra.mrb[12].mxu0 %vm89_vm1, %v7228_v50  ;;  %8798 = vmatprep.subr.bf16.mxu1 %v8797_v27  ;;  %v8807_v50 = vpack.c.bf16 %v7245_v48, %v7244_v47  ;;  %v8845_v24 = vpack.c.bf16 %v7303_v23, %v7302_v22  ;;  %v7350_v22 = vld [vmem:[%s11264_s2 + $0x510] sm:$0xff]  ;;  %v7351_v23 = vld [vmem:[%s11264_s2 + $0x518] sm:$0xff] }
 0x12b   :  { %558 = vmatprep.mubr.f32.mxu0 %v9585_v0  ;;  %7269 = vmatpush1.msk.msra.mxu0 %vm96_vm0, %v9693_v1 }
 0x12c   :  { %8818 = vmatprep.subr.bf16.mxu0 %v8817_v9  ;;  %v7248_v9 = vld [vmem:[%s11264_s2 + $0x270] sm:$0xff] }
 0x12d   :  { %8800 = vmatpush3.bf16.msra.mxu1 %v8799_v37  ;;  %v8815_v12 = vpack.c.bf16 %v7249_v10, %v7248_v9  ;;  %v7348_v9 = vld [vmem:[%s11264_s2 + $0x500] sm:$0xff]  ;;  %v7349_v10 = vld [vmem:[%s11264_s2 + $0x508] sm:$0xff] }
 0x12e   :  { %7233 = vmatmul.mubr.msk.f32.gmra.mrb[14].mxu0 %vm89_vm1, %v7229_v51  ;;  %8802 = vmatprep.subr.bf16.mxu1 %v8801_v39  ;;  %v7279_v51 = vld [vmem:[%s11264_s2 + $0x338] sm:$0xff] }
 0x12f   :  { %748 = vmatprep.mubr.f32.mxu0 %v9585_v0 }
 0x131   :  { %8804 = vmatpush3.bf16.msra.mxu1 %v8803_v45 }
 0x132   :  { %7270 = vmatmul.mubr.msk.f32.vlgmr.msra.gmra.mrb[16].mxu0 %vm89_vm1, %v7266_v52  ;;  %8806 = vmatprep.subr.bf16.mxu1 %v8805_v46  ;;  %v8831_v52 = vpack.c.bf16 %v7279_v51, %v7278_v49  ;;  %v7310_v49 = vld [vmem:[%s11264_s2 + $0x400] sm:$0xff] }
 0x133   :  { %754 = vmatprep.mubr.f32.mxu0 %v9585_v0  ;;  %8820 = vmatpush3.bf16.msra.mxu0 %v8819_v16  ;;  %v7300_v16 = vld [vmem:[%s11264_s2 + $0x3e0] sm:$0xff] }
 0x134   :  { %8822 = vmatprep.subr.bf16.mxu0 %v8821_v20  ;;  %v8841_v18 = vpack.c.bf16 %v7301_v17, %v7300_v16  ;;  %v7285_v20 = vld [vmem:[%s11264_s2 + $0x368] sm:$0xff]  ;;  %v7364_v51 = vld [vmem:[%s11264_s2 + $0x580] sm:$0xff]  ;;  %v7333_v16 = vld [vmem:[%s11264_s2 + $0x4b8] sm:$0xff] }
 0x135   :  { %8808 = vmatpush3.bf16.msra.mxu1 %v8807_v50  ;;  %v8843_v21 = vpack.c.bf16 %v7285_v20, %v7284_v19  ;;  %v7311_v50 = vld [vmem:[%s11264_s2 + $0x408] sm:$0xff]  ;;  %v7342_v17 = vld [vmem:[%s11265_s3 + $0x50] sm:$0xff]  ;;  %v8885_v20 = vpack.c.bf16 %v7367_v14, %v7366_v13 }
 0x136   :  { %7271 = vmatmul.mubr.msk.f32.gmra.mrb[18].mxu0 %vm89_vm1, %v7267_v53  ;;  %v7262_v53 = vld [vmem:[%s11264_s2 + $0x2e0] sm:$0xff]  ;;  %v8851_v58 = vpack.c.bf16 %v7311_v50, %v7310_v49  ;;  %v7320_v49 = vld [vmem:[%s11264_s2 + $0x450] sm:$0xff]  ;;  %v7321_v50 = vld [vmem:[%s11264_s2 + $0x458] sm:$0xff] }
 0x137   :  { %8824 = vmatpush3.bf16.msra.mxu0 %v8823_v25  ;;  %v8809_v56 = vpack.c.bf16 %v7263_v54, %v7262_v53  ;;  %v7286_v25 = vld [vmem:[%s11264_s2 + $0x370] sm:$0xff]  ;;  %v7329_v54 = vld [vmem:[%s11264_s2 + $0x498] sm:$0xff] }
 0x138   :  { %8826 = vmatprep.subr.bf16.mxu0 %v8825_v32  ;;  %v8847_v27 = vpack.c.bf16 %v7287_v26, %v7286_v25  ;;  %v7328_v53 = vld [vmem:[%s11264_s2 + $0x490] sm:$0xff]  ;;  %v7317_v25 = vld [vmem:[%s11264_s2 + $0x438] sm:$0xff]  ;;  %v7368_v26 = vld [vmem:[%s11264_s2 + $0x5a0] sm:$0xff] }
 0x139   :  { %8810 = vmatprep.subr.bf16.mxu1 %v8809_v56  ;;  %v7304_v56 = vld [vmem:[%s11265_s3 + $0x40] sm:$0xff] }
 0x13a   :  { %8812 = vmatpush3.bf16.msra.mxu1 %v8811_v61  ;;  %v7312_v61 = vld [vmem:[%s11264_s2 + $0x410] sm:$0xff] }
 0x13b   :  { %8828 = vmatpush3.bf16.msra.mxu0 %v8827_v38  ;;  %8814 = vmatprep.subr.bf16.mxu1 %v8813_v7  ;;  %v8855_v7 = vpack.c.bf16 %v7313_v62, %v7312_v61  ;;  %v7323_v61 = vld [vmem:[%s11264_s2 + $0x468] sm:$0xff] }
 0x13c   :  { %8830 = vmatprep.subr.bf16.mxu0 %v8829_v42  ;;  %v7327_v42 = vld [vmem:[%s11264_s2 + $0x488] sm:$0xff] }
 0x13d   :  { %v8849_v46 = vpack.c.bf16 %v7327_v42, %v7326_v41  ;;  %v7371_v41 = vld [vmem:[%s11264_s2 + $0x5b8] sm:$0xff]  ;;  %v7336_v42 = vld [vmem:[%s11264_s2 + $0x4d0] sm:$0xff] }
 0x13e   :  { %8816 = vmatpush3.bf16.msra.mxu1 %v8815_v12  ;;  %v7315_v12 = vld [vmem:[%s11264_s2 + $0x428] sm:$0xff] }
 0x13f   :  { %8832 = vmatpush3.bf16.msra.mxu0 %v8831_v52  ;;  %7306 = vmatprep.subr.msk.mxu1 %vm96_vm0, %v9697_v2  ;;  %v7365_v52 = vld [vmem:[%s11264_s2 + $0x588] sm:$0xff]  ;;  %v8859_v19 = vpack.c.bf16 %v7315_v12, %v7314_v8  ;;  %v7374_v8 = vld [vmem:[%s11264_s2 + $0x5d0] sm:$0xff]  ;;  %v7325_v12 = vld [vmem:[%s11264_s2 + $0x478] sm:$0xff] }
 0x140   :  { %8834 = vmatprep.subr.bf16.mxu0 %v8833_v60  ;;  %v8881_v59 = vpack.c.bf16 %v7365_v52, %v7364_v51  ;;  %v8853_v60 = vpack.c.bf16 %v7329_v54, %v7328_v53  ;;  %v7354_v51 = vld [vmem:[%s11264_s2 + $0x530] sm:$0xff]  ;;  %v8871_v52 = vpack.c.bf16 %v7321_v50, %v7320_v49  ;;  %v7355_v53 = vld [vmem:[%s11264_s2 + $0x538] sm:$0xff] }
 0x141   :  { %v8895_v54 = vpack.c.bf16 %v7355_v53, %v7354_v51  ;;  %v7387_v53 = vld [vmem:[%s11264_s2 + $0x608] sm:$0xff] }
 0x143   :  { %8836 = vmatpush3.bf16.msra.mxu0 %v8835_v3  ;;  %v7331_v3 = vld [vmem:[%s11264_s2 + $0x4a8] sm:$0xff] }
 0x144   :  { %8838 = vmatprep.subr.bf16.mxu0 %v8837_v11  ;;  %v8857_v11 = vpack.c.bf16 %v7331_v3, %v7330_v63  ;;  %v7356_v3 = vld [vmem:[%s11264_s2 + $0x540] sm:$0xff] }
 0x147   :  { %8840 = vmatpush3.bf16.msra.mxu0 %v8839_v15  ;;  %v7332_v15 = vld [vmem:[%s11264_s2 + $0x4b0] sm:$0xff] }
 0x148   :  { %8842 = vmatprep.subr.bf16.mxu0 %v8841_v18  ;;  %v8883_v18 = vpack.c.bf16 %v7349_v10, %v7348_v9  ;;  %v7375_v10 = vld [vmem:[%s11264_s2 + $0x5d8] sm:$0xff] }
 0x149   :  { %v8901_v13 = vpack.c.bf16 %v7375_v10, %v7374_v8  ;;  %v7381_v8 = vld [vmem:[%s11265_s3 + $0x68] sm:$0xff] }
 0x14b   :  { %8844 = vmatpush3.bf16.msra.mxu0 %v8843_v21  ;;  %v7316_v21 = vld [vmem:[%s11264_s2 + $0x430] sm:$0xff] }
 0x14c   :  { %8846 = vmatprep.subr.bf16.mxu0 %v8845_v24  ;;  %v8861_v24 = vpack.c.bf16 %v7333_v16, %v7332_v15  ;;  %v7358_v15 = vld [vmem:[%s11264_s2 + $0x550] sm:$0xff]  ;;  %v7359_v16 = vld [vmem:[%s11264_s2 + $0x558] sm:$0xff] }
 0x14f   :  { %8848 = vmatpush3.bf16.msra.mxu0 %v8847_v27  ;;  %v7369_v27 = vld [vmem:[%s11264_s2 + $0x5a8] sm:$0xff] }
 0x150   :  { %7344 = vmatprep.subr.msk.mxu0 %vm96_vm0, %v9697_v2 }
 0x1d5   :  { %v7697_v28 = vpop.f32.mrb[4].mxu0 }
 0x1d6   :  { %v7698_v29 = vpop.f32.mrb[5].mxu0 }
 0x1d7   :  { %v7699_v30 = vadd.f32 %v7698_v29, %v7697_v28  ;;  %v7334_v28 = vld [vmem:[%s11264_s2 + $0x4c0] sm:$0xff]  ;;  %v7335_v29 = vld [vmem:[%s11264_s2 + $0x4c8] sm:$0xff] }
 0x1d9   :  { %v7700_v31 = vpop.f32.mrb[6].mxu0 }
 0x1da   :  { %v7701_v32 = vpop.f32.mrb[7].mxu0 }
 0x1db   :  { %v7702_v33 = vadd.f32 %v7701_v32, %v7700_v31  ;;  %v8887_v31 = vpack.c.bf16 %v7351_v23, %v7350_v22  ;;  %v8863_v32 = vpack.c.bf16 %v7317_v25, %v7316_v21  ;;  %v7360_v21 = vld [vmem:[%s11264_s2 + $0x560] sm:$0xff]  ;;  %v7361_v22 = vld [vmem:[%s11264_s2 + $0x568] sm:$0xff]  ;;  %v7379_v25 = vld [vmem:[%s11264_s2 + $0x5f8] sm:$0xff] }
 0x1dc   :  { %v8907_v23 = vpack.c.bf16 %v7361_v22, %v7360_v21  ;;  %v7418_v21 = vld [vmem:[%s11265_s3 + $0x70] sm:$0xff] }
 0x1f5   :  { %v7735_v34 = vpop.f32.mrb[8].mxu0 }
 0x1f6   :  { %v7736_v35 = vpop.f32.mrb[9].mxu0 }
 0x1f7   :  { %v7737_v36 = vadd.f32 %v7736_v35, %v7735_v34  ;;  %v7318_v34 = vld [vmem:[%s11264_s2 + $0x440] sm:$0xff] }
 0x1f8   :  { %v7352_v35 = vld [vmem:[%s11264_s2 + $0x520] sm:$0xff] }
 0x1f9   :  { %v10144_v37 = vadd.f32 %v7737_v36, %v7699_v30  ;;  %v7738_v38 = vpop.f32.mrb[10].mxu0  ;;  %v7343_v30 = vld [vmem:[%s11265_s3 + $0x58] sm:$0xff]  ;;  %v7353_v36 = vld [vmem:[%s11264_s2 + $0x528] sm:$0xff] }
 0x1fa   :  { %v7739_v39 = vpop.f32.mrb[11].mxu0 }
 0x1fb   :  { %v7740_v40 = vadd.f32 %v7739_v39, %v7738_v38  ;;  %v8865_v38 = vpack.c.bf16 %v7335_v29, %v7334_v28  ;;  %v7319_v39 = vld [vmem:[%s11264_s2 + $0x448] sm:$0xff]  ;;  %v7363_v28 = vld [vmem:[%s11264_s2 + $0x578] sm:$0xff] }
 0x1fd   :  { %v10152_v43 = vadd.f32 %v7740_v40, %v7702_v33  ;;  %v554_v44 = vpop.f32.mrb[12].mxu0  ;;  %v8889_v33 = vpack.c.bf16 %v7369_v27, %v7368_v26  ;;  %v7370_v40 = vld [vmem:[%s11264_s2 + $0x5b0] sm:$0xff] }
 0x1fe   :  { %v556_v45 = vpop.f32.mrb[13].mxu0  ;;  %v7362_v27 = vld [vmem:[%s11264_s2 + $0x570] sm:$0xff] }
 0x1ff   :  { %662 = vmatprep.mubr.f32.mxu1 %v556_v45  ;;  %v8891_v45 = vpack.c.bf16 %v7353_v36, %v7352_v35  ;;  %v8911_v29 = vpack.c.bf16 %v7363_v28, %v7362_v27  ;;  %v7427_v27 = vld [vmem:[%s11264_s2 + $0x718] sm:$0xff] }
 0x200   :  { %663 = vmatmul.mubr.f32.vlgmr.msra.gmra.mrb[4].mxu1 %v554_v44  ;;  %v7337_v44 = vld [vmem:[%s11264_s2 + $0x4d8] sm:$0xff] }
 0x201   :  { %v560_v47 = vpop.f32.mrb[14].mxu0  ;;  %7307 = vmatpush1.msk.msra.mxu1 %vm96_vm0, %v9693_v1 }
 0x202   :  { %v562_v48 = vpop.f32.mrb[15].mxu0  ;;  %8850 = vmatprep.subr.bf16.mxu1 %v8849_v46  ;;  %v8867_v46 = vpack.c.bf16 %v7319_v39, %v7318_v34  ;;  %v7403_v39 = vld [vmem:[%s11264_s2 + $0x688] sm:$0xff] }
 0x203   :  { %667 = vmatprep.mubr.f32.mxu1 %v562_v48  ;;  %v8869_v48 = vpack.c.bf16 %v7337_v44, %v7336_v42 }
 0x204   :  { %668 = vmatmul.mubr.f32.gmra.mrb[6].mxu1 %v560_v47  ;;  %v8893_v47 = vpack.c.bf16 %v7371_v41, %v7370_v40 }
 0x205   :  { %v750_v55 = vpop.f32.mrb[16].mxu0  ;;  %944 = vmatprep.mubr.f32.mxu1 %v9585_v0 }
 0x206   :  { %v752_v57 = vpop.f32.mrb[17].mxu0 }
 0x207   :  { %858 = vmatprep.mubr.f32.mxu0 %v752_v57  ;;  %v7372_v57 = vld [vmem:[%s11264_s2 + $0x5c0] sm:$0xff] }
 0x208   :  { %859 = vmatmul.mubr.f32.vlgmr.msra.gmra.mrb[20].mxu0 %v750_v55  ;;  %7308 = vmatmul.mubr.msk.f32.vlgmr.msra.gmra.mrb[8].mxu1 %vm89_vm1, %v7304_v56  ;;  %v7338_v55 = vld [vmem:[%s11264_s2 + $0x4e0] sm:$0xff]  ;;  %v7339_v56 = vld [vmem:[%s11264_s2 + $0x4e8] sm:$0xff] }
 0x209   :  { %v756_v4 = vpop.f32.mrb[18].mxu0  ;;  %950 = vmatprep.mubr.f32.mxu1 %v9585_v0  ;;  %7345 = vmatpush1.msk.msra.mxu0 %vm96_vm0, %v9693_v1 }
 0x20a   :  { %v758_v6 = vpop.f32.mrb[19].mxu0  ;;  %8852 = vmatpush3.bf16.msra.mxu1 %v8851_v58  ;;  %8882 = vmatprep.subr.bf16.mxu0 %v8881_v59  ;;  %v8873_v58 = vpack.c.bf16 %v7339_v56, %v7338_v55  ;;  %v7373_v59 = vld [vmem:[%s11264_s2 + $0x5c8] sm:$0xff]  ;;  %v7404_v55 = vld [vmem:[%s11264_s2 + $0x690] sm:$0xff]  ;;  %v7405_v56 = vld [vmem:[%s11264_s2 + $0x698] sm:$0xff] }
 0x20b   :  { %863 = vmatprep.mubr.f32.mxu0 %v758_v6  ;;  %8854 = vmatprep.subr.bf16.mxu1 %v8853_v60  ;;  %v7322_v60 = vld [vmem:[%s11264_s2 + $0x460] sm:$0xff]  ;;  %v8897_v62 = vpack.c.bf16 %v7373_v59, %v7372_v57  ;;  %v7340_v6 = vld [vmem:[%s11264_s2 + $0x4f0] sm:$0xff] }
 0x20c   :  { %864 = vmatmul.mubr.f32.gmra.mrb[22].mxu0 %v756_v4  ;;  %7309 = vmatmul.mubr.msk.f32.gmra.mrb[10].mxu1 %vm89_vm1, %v7305_v5  ;;  %v8875_v63 = vpack.c.bf16 %v7323_v61, %v7322_v60  ;;  %v7357_v4 = vld [vmem:[%s11264_s2 + $0x548] sm:$0xff]  ;;  %v7380_v59 = vld [vmem:[%s11265_s3 + $0x60] sm:$0xff] }
 0x20d   :  { %1140 = vmatprep.mubr.f32.mxu0 %v9585_v0  ;;  %v8899_v5 = vpack.c.bf16 %v7357_v4, %v7356_v3  ;;  %v7388_v3 = vld [vmem:[%s11264_s2 + $0x610] sm:$0xff]  ;;  %v7389_v4 = vld [vmem:[%s11264_s2 + $0x618] sm:$0xff] }
 0x20e   :  { %8856 = vmatpush3.bf16.msra.mxu1 %v8855_v7  ;;  %v7341_v7 = vld [vmem:[%s11264_s2 + $0x4f8] sm:$0xff] }
 0x20f   :  { %8858 = vmatprep.subr.bf16.mxu1 %v8857_v11  ;;  %v8877_v9 = vpack.c.bf16 %v7341_v7, %v7340_v6  ;;  %v7324_v11 = vld [vmem:[%s11264_s2 + $0x470] sm:$0xff]  ;;  %v7407_v6 = vld [vmem:[%s11264_s2 + $0x6a8] sm:$0xff] }
 0x210   :  { %7346 = vmatmul.mubr.msk.f32.vlgmr.msra.gmra.mrb[24].mxu0 %vm89_vm1, %v7342_v17  ;;  %v8879_v14 = vpack.c.bf16 %v7325_v12, %v7324_v11  ;;  %v8903_v17 = vpack.c.bf16 %v7359_v16, %v7358_v15  ;;  %v8919_v11 = vpack.c.bf16 %v7389_v4, %v7388_v3  ;;  %v7390_v12 = vld [vmem:[%s11264_s2 + $0x620] sm:$0xff]  ;;  %v7391_v16 = vld [vmem:[%s11264_s2 + $0x628] sm:$0xff] }
 0x211   :  { %1146 = vmatprep.mubr.f32.mxu0 %v9585_v0  ;;  %8884 = vmatpush3.bf16.msra.mxu0 %v8883_v18  ;;  %v7376_v18 = vld [vmem:[%s11264_s2 + $0x5e0] sm:$0xff]  ;;  %v7399_v3 = vld [vmem:[%s11264_s2 + $0x668] sm:$0xff] }
 0x212   :  { %8860 = vmatpush3.bf16.msra.mxu1 %v8859_v19  ;;  %8886 = vmatprep.subr.bf16.mxu0 %v8885_v20  ;;  %v7377_v19 = vld [vmem:[%s11264_s2 + $0x5e8] sm:$0xff] }
 0x213   :  { %8862 = vmatprep.subr.bf16.mxu1 %v8861_v24  ;;  %v8905_v20 = vpack.c.bf16 %v7377_v19, %v7376_v18  ;;  %v7378_v24 = vld [vmem:[%s11264_s2 + $0x5f0] sm:$0xff]  ;;  %v7443_v18 = vld [vmem:[%s11264_s2 + $0x798] sm:$0xff] }
 0x214   :  { %7347 = vmatmul.mubr.msk.f32.gmra.mrb[26].mxu0 %vm89_vm1, %v7343_v30  ;;  %v8909_v26 = vpack.c.bf16 %v7379_v25, %v7378_v24  ;;  %v7408_v19 = vld [vmem:[%s11264_s2 + $0x6b0] sm:$0xff] }
 0x215   :  { %8888 = vmatpush3.bf16.msra.mxu0 %v8887_v31  ;;  %v7392_v25 = vld [vmem:[%s11264_s2 + $0x630] sm:$0xff] }
 0x216   :  { %8864 = vmatpush3.bf16.msra.mxu1 %v8863_v32  ;;  %8890 = vmatprep.subr.bf16.mxu0 %v8889_v33 }
 0x217   :  { %8866 = vmatprep.subr.bf16.mxu1 %v8865_v38  ;;  %v7402_v38 = vld [vmem:[%s11264_s2 + $0x680] sm:$0xff] }
 0x219   :  { %8892 = vmatpush3.bf16.msra.mxu0 %v8891_v45 }
 0x21a   :  { %8868 = vmatpush3.bf16.msra.mxu1 %v8867_v46  ;;  %8894 = vmatprep.subr.bf16.mxu0 %v8893_v47  ;;  %v8913_v46 = vpack.c.bf16 %v7403_v39, %v7402_v38  ;;  %v7394_v39 = vld [vmem:[%s11264_s2 + $0x640] sm:$0xff] }
 0x21b   :  { %8870 = vmatprep.subr.bf16.mxu1 %v8869_v48 }
 0x21d   :  { %8896 = vmatpush3.bf16.msra.mxu0 %v8895_v54  ;;  %v7440_v54 = vld [vmem:[%s11264_s2 + $0x780] sm:$0xff] }
 0x21e   :  { %8872 = vmatpush3.bf16.msra.mxu1 %v8871_v52  ;;  %8898 = vmatprep.subr.bf16.mxu0 %v8897_v62 }
 0x21f   :  { %8874 = vmatprep.subr.bf16.mxu1 %v8873_v58 }
 0x221   :  { %8900 = vmatpush3.bf16.msra.mxu0 %v8899_v5  ;;  %v7406_v5 = vld [vmem:[%s11264_s2 + $0x6a0] sm:$0xff] }
 0x222   :  { %8876 = vmatpush3.bf16.msra.mxu1 %v8875_v63  ;;  %8902 = vmatprep.subr.bf16.mxu0 %v8901_v13  ;;  %v8917_v63 = vpack.c.bf16 %v7405_v56, %v7404_v55  ;;  %v7424_v13 = vld [vmem:[%s11264_s2 + $0x700] sm:$0xff]  ;;  %v8921_v15 = vpack.c.bf16 %v7407_v6, %v7406_v5  ;;  %v7431_v55 = vld [vmem:[%s11264_s2 + $0x738] sm:$0xff] }
 0x223   :  { %8878 = vmatprep.subr.bf16.mxu1 %v8877_v9  ;;  %v10424_v9 = vld.sshfl [vmem:[%s11262_s0] sm:$0x33 pattern:$0x76325410] }
 0x224   :  { %v7432_v6 = vld [vmem:[%s11264_s2 + $0x740] sm:$0xff] }
 0x225   :  { %8904 = vmatpush3.bf16.msra.mxu0 %v8903_v17  ;;  %v7442_v17 = vld [vmem:[%s11264_s2 + $0x790] sm:$0xff] }
 0x226   :  { %8880 = vmatpush3.bf16.msra.mxu1 %v8879_v14  ;;  %8906 = vmatprep.subr.bf16.mxu0 %v8905_v20  ;;  %v7425_v14 = vld [vmem:[%s11264_s2 + $0x708] sm:$0xff]  ;;  %v7409_v20 = vld [vmem:[%s11264_s2 + $0x6b8] sm:$0xff]  ;;  %v8949_v24 = vpack.c.bf16 %v7443_v18, %v7442_v17 }
 0x227   :  { %7382 = vmatprep.subr.msk.mxu1 %vm96_vm0, %v9697_v2  ;;  %v8947_v22 = vpack.c.bf16 %v7425_v14, %v7424_v13  ;;  %v8925_v28 = vpack.c.bf16 %v7409_v20, %v7408_v19  ;;  %v7451_v14 = vld [vmem:[%s11264_s2 + $0x7d8] sm:$0xff]  ;;  %v7434_v19 = vld [vmem:[%s11264_s2 + $0x750] sm:$0xff] }
 0x228   :  { %v7435_v20 = vld [vmem:[%s11264_s2 + $0x758] sm:$0xff] }
 0x229   :  { %8908 = vmatpush3.bf16.msra.mxu0 %v8907_v23  ;;  %v8923_v23 = vpack.c.bf16 %v7391_v16, %v7390_v12  ;;  %v7450_v12 = vld [vmem:[%s11264_s2 + $0x7d0] sm:$0xff]  ;;  %v7401_v16 = vld [vmem:[%s11264_s2 + $0x678] sm:$0xff] }
 0x22a   :  { %8910 = vmatprep.subr.bf16.mxu0 %v8909_v26  ;;  %v7426_v26 = vld [vmem:[%s11264_s2 + $0x710] sm:$0xff]  ;;  %v8965_v17 = vpack.c.bf16 %v7451_v14, %v7450_v12  ;;  %v7466_v12 = vld [vmem:[%s11264_s2 + $0x820] sm:$0xff] }
 0x22b   :  { %v7484_v14 = vld [vmem:[%s11264_s2 + $0x8b0] sm:$0xff] }
 0x22d   :  { %8912 = vmatpush3.bf16.msra.mxu0 %v8911_v29  ;;  %v7393_v29 = vld [vmem:[%s11264_s2 + $0x638] sm:$0xff] }
 0x22e   :  { %7420 = vmatprep.subr.msk.mxu0 %vm96_vm0, %v9697_v2 }
 0x2d3   :  { %v7773_v30 = vpop.f32.mrb[4].mxu1 }
 0x2d4   :  { %v7774_v31 = vpop.f32.mrb[5].mxu1 }
 0x2d5   :  { %v7775_v32 = vadd.f32 %v7774_v31, %v7773_v30  ;;  %v7444_v30 = vld [vmem:[%s11264_s2 + $0x7a0] sm:$0xff]  ;;  %v7445_v31 = vld [vmem:[%s11264_s2 + $0x7a8] sm:$0xff] }
 0x2d6   :  { %v8953_v38 = vpack.c.bf16 %v7445_v31, %v7444_v30  ;;  %v7438_v31 = vld [vmem:[%s11264_s2 + $0x770] sm:$0xff] }
 0x2d7   :  { %v673_v33 = vadd.f32 %v7775_v32, %v10144_v37  ;;  %v7776_v34 = vpop.f32.mrb[6].mxu1  ;;  %v7410_v32 = vld [vmem:[%s11264_s2 + $0x6c0] sm:$0xff] }
 0x2d8   :  { %v7777_v35 = vpop.f32.mrb[7].mxu1 }
 0x2d9   :  { %v7778_v36 = vadd.f32 %v7777_v35, %v7776_v34  ;;  %v7419_v34 = vld [vmem:[%s11265_s3 + $0x78] sm:$0xff]  ;;  %v8951_v35 = vpack.c.bf16 %v7427_v27, %v7426_v26  ;;  %v7437_v26 = vld [vmem:[%s11264_s2 + $0x768] sm:$0xff] }
 0x2db   :  { %v674_v40 = vadd.f32 %v7778_v36, %v10152_v43  ;;  %v7811_v41 = vpop.f32.mrb[20].mxu0  ;;  %v946_v42 = vpop.f32.mrb[8].mxu1  ;;  %v7386_v43 = vld [vmem:[%s11264_s2 + $0x600] sm:$0xff]  ;;  %v8927_v36 = vpack.c.bf16 %v7393_v29, %v7392_v25  ;;  %v7455_v29 = vld [vmem:[%s11264_s2 + $0x7f8] sm:$0xff] }
 0x2dc   :  { %v7812_v44 = vpop.f32.mrb[21].mxu0  ;;  %v948_v45 = vpop.f32.mrb[9].mxu1  ;;  %v8915_v61 = vpack.c.bf16 %v7387_v53, %v7386_v43  ;;  %v7397_v53 = vld [vmem:[%s11264_s2 + $0x658] sm:$0xff]  ;;  %v7436_v25 = vld [vmem:[%s11264_s2 + $0x760] sm:$0xff] }
 0x2dd   :  { %v7813_v47 = vadd.f32 %v7812_v44, %v7811_v41  ;;  %1054 = vmatprep.mubr.f32.mxu1 %v948_v45  ;;  %v7429_v41 = vld [vmem:[%s11264_s2 + $0x728] sm:$0xff]  ;;  %v7446_v45 = vld [vmem:[%s11264_s2 + $0x7b0] sm:$0xff]  ;;  %v8971_v27 = vpack.c.bf16 %v7437_v26, %v7436_v25 }
 0x2de   :  { %1055 = vmatmul.mubr.f32.vlgmr.msra.gmra.mrb[12].mxu1 %v946_v42  ;;  %v7395_v44 = vld [vmem:[%s11264_s2 + $0x648] sm:$0xff]  ;;  %v7488_v26 = vld [vmem:[%s11264_s2 + $0x8d0] sm:$0xff] }
 0x2df   :  { %v10376_v37 = vadd.f32 %v7813_v47, %v673_v33  ;;  %v7814_v48 = vpop.f32.mrb[22].mxu0  ;;  %v952_v49 = vpop.f32.mrb[10].mxu1  ;;  %7383 = vmatpush1.msk.msra.mxu1 %vm96_vm0, %v9693_v1  ;;  %v7441_v1 = vld [vmem:[%s11264_s2 + $0x788] sm:$0xff]  ;;  %v7412_v47 = vld [vmem:[%s11264_s2 + $0x6d0] sm:$0xff] }
 0x2e0   :  { %v7815_v50 = vpop.f32.mrb[23].mxu0  ;;  %v954_v51 = vpop.f32.mrb[11].mxu1  ;;  %8914 = vmatprep.subr.bf16.mxu1 %v8913_v46  ;;  %v8945_v62 = vpack.c.bf16 %v7441_v1, %v7440_v54  ;;  %v7411_v33 = vld [vmem:[%s11264_s2 + $0x6c8] sm:$0xff]  ;;  %v7447_v46 = vld [vmem:[%s11264_s2 + $0x7b8] sm:$0xff]  ;;  %v7430_v54 = vld [vmem:[%s11264_s2 + $0x730] sm:$0xff] }
 0x2e1   :  { %v7816_v52 = vadd.f32 %v7815_v50, %v7814_v48  ;;  %1059 = vmatprep.mubr.f32.mxu1 %v954_v51  ;;  %v8929_v42 = vpack.c.bf16 %v7411_v33, %v7410_v32  ;;  %v7413_v48 = vld [vmem:[%s11264_s2 + $0x6d8] sm:$0xff]  ;;  %v8931_v50 = vpack.c.bf16 %v7395_v44, %v7394_v39  ;;  %v8957_v51 = vpack.c.bf16 %v7447_v46, %v7446_v45  ;;  %v7471_v25 = vld [vmem:[%s11264_s2 + $0x848] sm:$0xff] }
 0x2e2   :  { %1060 = vmatmul.mubr.f32.gmra.mrb[14].mxu1 %v952_v49  ;;  %v8933_v43 = vpack.c.bf16 %v7413_v48, %v7412_v47  ;;  %v8959_v56 = vpack.c.bf16 %v7431_v55, %v7430_v54  ;;  %v7463_v54 = vld [vmem:[%s11264_s2 + $0x808] sm:$0xff]  ;;  %v7480_v55 = vld [vmem:[%s11264_s2 + $0x890] sm:$0xff] }
 0x2e3   :  { %v10398_v57 = vadd.f32 %v7816_v52, %v674_v40  ;;  %v1142_v58 = vpop.f32.mrb[24].mxu0  ;;  %1336 = vmatprep.mubr.f32.mxu1 %v9585_v0  ;;  %v7428_v40 = vld [vmem:[%s11264_s2 + $0x720] sm:$0xff]  ;;  %v7396_v52 = vld [vmem:[%s11264_s2 + $0x650] sm:$0xff] }
 0x2e4   :  { %v1144_v60 = vpop.f32.mrb[25].mxu0  ;;  %v8955_v49 = vpack.c.bf16 %v7429_v41, %v7428_v40  ;;  %v8935_v1 = vpack.c.bf16 %v7397_v53, %v7396_v52  ;;  %v7478_v41 = vld [vmem:[%s11264_s2 + $0x880] sm:$0xff] }
 0x2e5   :  { %1250 = vmatprep.mubr.f32.mxu0 %v1144_v60  ;;  %v7448_v60 = vld [vmem:[%s11264_s2 + $0x7c0] sm:$0xff] }
 0x2e6   :  { %1251 = vmatmul.mubr.f32.vlgmr.msra.gmra.mrb[28].mxu0 %v1142_v58  ;;  %7384 = vmatmul.mubr.msk.f32.vlgmr.msra.gmra.mrb[16].mxu1 %vm89_vm1, %v7380_v59  ;;  %v7414_v58 = vld [vmem:[%s11264_s2 + $0x6e0] sm:$0xff]  ;;  %v7415_v59 = vld [vmem:[%s11264_s2 + $0x6e8] sm:$0xff] }
 0x2e7   :  { %v1148_v7 = vpop.f32.mrb[26].mxu0  ;;  %1342 = vmatprep.mubr.f32.mxu1 %v9585_v0  ;;  %7421 = vmatpush1.msk.msra.mxu0 %vm96_vm0, %v10424_v9 }
 0x2e8   :  { %v1150_v10 = vpop.f32.mrb[27].mxu0  ;;  %8916 = vmatpush3.bf16.msra.mxu1 %v8915_v61  ;;  %8946 = vmatprep.subr.bf16.mxu0 %v8945_v62  ;;  %v8937_v61 = vpack.c.bf16 %v7415_v59, %v7414_v58  ;;  %v7449_v62 = vld [vmem:[%s11264_s2 + $0x7c8] sm:$0xff]  ;;  %v7456_v59 = vld [vmem:[%s11265_s3 + $0x80] sm:$0xff] }
 0x2e9   :  { %1255 = vmatprep.mubr.f32.mxu0 %v1150_v10  ;;  %8918 = vmatprep.subr.bf16.mxu1 %v8917_v63  ;;  %v7398_v63 = vld [vmem:[%s11264_s2 + $0x660] sm:$0xff]  ;;  %v8961_v4 = vpack.c.bf16 %v7449_v62, %v7448_v60  ;;  %v7416_v10 = vld [vmem:[%s11264_s2 + $0x6f0] sm:$0xff] }
 0x2ea   :  { %1256 = vmatmul.mubr.f32.gmra.mrb[30].mxu0 %v1148_v7  ;;  %7385 = vmatmul.mubr.msk.f32.gmra.mrb[18].mxu1 %vm89_vm1, %v7381_v8  ;;  %v8939_v5 = vpack.c.bf16 %v7399_v3, %v7398_v63  ;;  %v7433_v7 = vld [vmem:[%s11264_s2 + $0x748] sm:$0xff]  ;;  %v7464_v63 = vld [vmem:[%s11264_s2 + $0x810] sm:$0xff]  ;;  %v7465_v3 = vld [vmem:[%s11264_s2 + $0x818] sm:$0xff] }
 0x2eb   :  { %1532 = vmatprep.mubr.f32.mxu0 %v9585_v0  ;;  %v8963_v8 = vpack.c.bf16 %v7433_v7, %v7432_v6  ;;  %v7457_v7 = vld [vmem:[%s11265_s3 + $0x88] sm:$0xff] }
 0x2ec   :  { %8920 = vmatpush3.bf16.msra.mxu1 %v8919_v11  ;;  %v7417_v11 = vld [vmem:[%s11264_s2 + $0x6f8] sm:$0xff] }
 0x2ed   :  { %8922 = vmatprep.subr.bf16.mxu1 %v8921_v15  ;;  %v8941_v13 = vpack.c.bf16 %v7417_v11, %v7416_v10  ;;  %v7400_v15 = vld [vmem:[%s11264_s2 + $0x670] sm:$0xff] }
 0x2ee   :  { %7422 = vmatmul.mubr.msk.f32.vlgmr.msra.gmra.mrb[32].mxu0 %vm89_vm1, %v7418_v21  ;;  %v8943_v18 = vpack.c.bf16 %v7401_v16, %v7400_v15  ;;  %v8967_v21 = vpack.c.bf16 %v7435_v20, %v7434_v19  ;;  %v7485_v15 = vld [vmem:[%s11264_s2 + $0x8b8] sm:$0xff]  ;;  %v7486_v20 = vld [vmem:[%s11264_s2 + $0x8c0] sm:$0xff] }
 0x2ef   :  { %1538 = vmatprep.mubr.f32.mxu0 %v9585_v0  ;;  %8948 = vmatpush3.bf16.msra.mxu0 %v8947_v22  ;;  %v7452_v22 = vld [vmem:[%s11264_s2 + $0x7e0] sm:$0xff]  ;;  %v7469_v19 = vld [vmem:[%s11264_s2 + $0x838] sm:$0xff] }
 0x2f0   :  { %8924 = vmatpush3.bf16.msra.mxu1 %v8923_v23  ;;  %8950 = vmatprep.subr.bf16.mxu0 %v8949_v24  ;;  %v7453_v23 = vld [vmem:[%s11264_s2 + $0x7e8] sm:$0xff] }
 0x2f1   :  { %8926 = vmatprep.subr.bf16.mxu1 %v8925_v28  ;;  %v8969_v24 = vpack.c.bf16 %v7453_v23, %v7452_v22  ;;  %v7454_v28 = vld [vmem:[%s11264_s2 + $0x7f0] sm:$0xff] }
 0x2f2   :  { %7423 = vmatmul.mubr.msk.f32.gmra.mrb[34].mxu0 %vm89_vm1, %v7419_v34  ;;  %v8973_v30 = vpack.c.bf16 %v7455_v29, %v7454_v28 }
 0x2f3   :  { %8952 = vmatpush3.bf16.msra.mxu0 %v8951_v35 }
 0x2f4   :  { %8928 = vmatpush3.bf16.msra.mxu1 %v8927_v36  ;;  %8954 = vmatprep.subr.bf16.mxu0 %v8953_v38 }
 0x2f5   :  { %8930 = vmatprep.subr.bf16.mxu1 %v8929_v42  ;;  %v7479_v42 = vld [vmem:[%s11264_s2 + $0x888] sm:$0xff] }
 0x2f7   :  { %8956 = vmatpush3.bf16.msra.mxu0 %v8955_v49  ;;  %v8977_v49 = vpack.c.bf16 %v7479_v42, %v7478_v41  ;;  %v7476_v42 = vld [vmem:[%s11264_s2 + $0x870] sm:$0xff] }
 0x2f8   :  { %8932 = vmatpush3.bf16.msra.mxu1 %v8931_v50  ;;  %8958 = vmatprep.subr.bf16.mxu0 %v8957_v51 }
 0x2f9   :  { %8934 = vmatprep.subr.bf16.mxu1 %v8933_v43 }
 0x2fb   :  { %8960 = vmatpush3.bf16.msra.mxu0 %v8959_v56 }
 0x2fc   :  { %8936 = vmatpush3.bf16.msra.mxu1 %v8935_v1  ;;  %8962 = vmatprep.subr.bf16.mxu0 %v8961_v4  ;;  %v7482_v4 = vld [vmem:[%s11264_s2 + $0x8a0] sm:$0xff] }
 0x2fd   :  { %8938 = vmatprep.subr.bf16.mxu1 %v8937_v61 }
 0x2ff   :  { %8964 = vmatpush3.bf16.msra.mxu0 %v8963_v8  ;;  %v8983_v8 = vpack.c.bf16 %v7465_v3, %v7464_v63 }
 0x300   :  { %8940 = vmatpush3.bf16.msra.mxu1 %v8939_v5  ;;  %8966 = vmatprep.subr.bf16.mxu0 %v8965_v17  ;;  %v7483_v5 = vld [vmem:[%s11264_s2 + $0x8a8] sm:$0xff]  ;;  %v8989_v17 = vpack.c.bf16 %v7485_v15, %v7484_v14 }
 0x301   :  { %8942 = vmatprep.subr.bf16.mxu1 %v8941_v13  ;;  %v8985_v11 = vpack.c.bf16 %v7483_v5, %v7482_v4  ;;  %v7467_v13 = vld [vmem:[%s11264_s2 + $0x828] sm:$0xff] }
 0x302   :  { %v8987_v16 = vpack.c.bf16 %v7467_v13, %v7466_v12 }
 0x303   :  { %8968 = vmatpush3.bf16.msra.mxu0 %v8967_v21  ;;  %v7487_v21 = vld [vmem:[%s11264_s2 + $0x8c8] sm:$0xff] }
 0x304   :  { %8944 = vmatpush3.bf16.msra.mxu1 %v8943_v18  ;;  %8970 = vmatprep.subr.bf16.mxu0 %v8969_v24  ;;  %v7468_v18 = vld [vmem:[%s11264_s2 + $0x830] sm:$0xff]  ;;  %v8993_v23 = vpack.c.bf16 %v7487_v21, %v7486_v20  ;;  %v7470_v24 = vld [vmem:[%s11264_s2 + $0x840] sm:$0xff] }
 0x305   :  { %7458 = vmatprep.subr.msk.mxu1 %vm96_vm0, %v9697_v2  ;;  %v7439_v2 = vld [vmem:[%s11264_s2 + $0x778] sm:$0xff]  ;;  %v8991_v22 = vpack.c.bf16 %v7469_v19, %v7468_v18  ;;  %v8995_v28 = vpack.c.bf16 %v7471_v25, %v7470_v24  ;;  %v10739_v24 = vld [vmem:[%s11263_s1 + $0x8] sm:$0xff] }
 0x306   :  { %v8975_v32 = vpack.c.bf16 %v7439_v2, %v7438_v31  ;;  %v7473_v31 = vld [vmem:[%s11264_s2 + $0x858] sm:$0xff] }
 0x307   :  { %8972 = vmatpush3.bf16.msra.mxu0 %v8971_v27  ;;  %v7489_v27 = vld [vmem:[%s11264_s2 + $0x8d8] sm:$0xff] }
 0x308   :  { %8974 = vmatprep.subr.bf16.mxu0 %v8973_v30  ;;  %v8997_v29 = vpack.c.bf16 %v7489_v27, %v7488_v26  ;;  %v7472_v30 = vld [vmem:[%s11264_s2 + $0x850] sm:$0xff] }
 0x309   :  { %v8999_v2 = vpack.c.bf16 %v7473_v31, %v7472_v30 }
 0x30b   :  { %8976 = vmatpush3.bf16.msra.mxu0 %v8975_v32  ;;  %v7490_v32 = vld [vmem:[%s11264_s2 + $0x8e0] sm:$0xff] }
 0x3b1   :  { %v7849_v33 = vpop.f32.mrb[12].mxu1 }
 0x3b2   :  { %v7850_v34 = vpop.f32.mrb[13].mxu1 }
 0x3b3   :  { %v7851_v35 = vadd.f32 %v7850_v34, %v7849_v33  ;;  %v7491_v33 = vld [vmem:[%s11264_s2 + $0x8e8] sm:$0xff] }
 0x3b4   :  { %v9001_v34 = vpack.c.bf16 %v7491_v33, %v7490_v32  ;;  %v3668_v32 = vld [vmem:[%s11269_s7] sm:$0xff] }
 0x3b5   :  { %v1065_v36 = vadd.f32 %v7851_v35, %v10376_v37  ;;  %v7852_v38 = vpop.f32.mrb[14].mxu1  ;;  %v7474_v35 = vld [vmem:[%s11264_s2 + $0x860] sm:$0xff] }
 0x3b6   :  { %v7853_v39 = vpop.f32.mrb[15].mxu1 }
 0x3b7   :  { %v7854_v40 = vadd.f32 %v7853_v39, %v7852_v38  ;;  %v7492_v39 = vld [vmem:[%s11264_s2 + $0x8f0] sm:$0xff] }
 0x3b9   :  { %v1066_v44 = vadd.f32 %v7854_v40, %v10398_v57  ;;  %v7887_v45 = vpop.f32.mrb[28].mxu0  ;;  %v1338_v46 = vpop.f32.mrb[16].mxu1  ;;  %v7462_v57 = vld [vmem:[%s11264_s2 + $0x800] sm:$0xff]  ;;  %v7493_v40 = vld [vmem:[%s11264_s2 + $0x8f8] sm:$0xff] }
 0x3ba   :  { %v7888_v47 = vpop.f32.mrb[29].mxu0  ;;  %v1340_v48 = vpop.f32.mrb[17].mxu1  ;;  %v8979_v60 = vpack.c.bf16 %v7463_v54, %v7462_v57  ;;  %v9005_v41 = vpack.c.bf16 %v7493_v40, %v7492_v39 }
 0x3bb   :  { %v7889_v50 = vadd.f32 %v7888_v47, %v7887_v45  ;;  %1446 = vmatprep.mubr.f32.mxu1 %v1340_v48  ;;  %v9586_v47 = vmov 0   ;;  %v1852_v48 = vld [vmem:[%s11266_s4 + $0x8] sm:$0xff] }
 0x3bc   :  { %1447 = vmatmul.mubr.f32.vlgmr.msra.gmra.mrb[20].mxu1 %v1338_v46  ;;  %v1851_v46 = vld [vmem:[%s11266_s4] sm:$0xff]  ;;  %9514 = vset.pattern.permute.xlu0 %v9586_v47 }
 0x3bd   :  { %v10605_v37 = vadd.f32 %v7889_v50, %v1065_v36  ;;  %v7890_v51 = vpop.f32.mrb[30].mxu0  ;;  %v1344_v43 = vpop.f32.mrb[18].mxu1  ;;  %7459 = vmatpush1.msk.msra.mxu1 %vm96_vm0, %v10424_v9  ;;  %v7481_v9 = vld [vmem:[%s11264_s2 + $0x898] sm:$0xff]  ;;  %v7475_v36 = vld [vmem:[%s11264_s2 + $0x868] sm:$0xff]  ;;  %9515 = vset.pattern.permute.xlu1 %v9586_v47 }
 0x3be   :  { %v7891_v52 = vpop.f32.mrb[31].mxu0  ;;  %v1346_v53 = vpop.f32.mrb[19].mxu1  ;;  %8978 = vmatprep.subr.bf16.mxu1 %v8977_v49  ;;  %v8981_v62 = vpack.c.bf16 %v7481_v9, %v7480_v55  ;;  %v9003_v38 = vpack.c.bf16 %v7475_v36, %v7474_v35  ;;  %1855 = vperm.xlu0 %9514, %v1851_v46  }
 0x3bf   :  { %v7892_v1 = vadd.f32 %v7891_v52, %v7890_v51  ;;  %1451 = vmatprep.mubr.f32.mxu1 %v1346_v53 }
 0x3c0   :  { %1452 = vmatmul.mubr.f32.gmra.mrb[22].mxu1 %v1344_v43 }
 0x3c1   :  { %v10621_v56 = vadd.f32 %v7892_v1, %v1066_v44  ;;  %v1534_v58 = vpop.f32.mrb[32].mxu0  ;;  %1728 = vmatprep.mubr.f32.mxu1 %v9585_v0  ;;  %v7477_v44 = vld [vmem:[%s11264_s2 + $0x878] sm:$0xff] }
 0x3c2   :  { %v1536_v61 = vpop.f32.mrb[33].mxu0  ;;  %v9007_v45 = vpack.c.bf16 %v7477_v44, %v7476_v42  ;;  %1860 = vperm.xlu0 %9514, %v1852_v48  }
 0x3c3   :  { %1642 = vmatprep.mubr.f32.mxu0 %v1536_v61 }
 0x3c4   :  { %1643 = vmatmul.mubr.f32.vlgmr.msra.gmra.mrb[36].mxu0 %v1534_v58  ;;  %7460 = vmatmul.mubr.msk.f32.vlgmr.msra.gmra.mrb[24].mxu1 %vm89_vm1, %v7456_v59 }
 0x3c5   :  { %v1540_v6 = vpop.f32.mrb[34].mxu0  ;;  %1734 = vmatprep.mubr.f32.mxu1 %v9585_v0  ;;  %8980 = vmatpush3.bf16.msra.mxu1 %v8979_v60 }
 0x3c6   :  { %v1542_v10 = vpop.f32.mrb[35].mxu0  ;;  %8982 = vmatprep.subr.bf16.mxu1 %v8981_v62 }
 0x3c7   :  { %1647 = vmatprep.mubr.f32.mxu0 %v1542_v10 }
 0x3c8   :  { %1648 = vmatmul.mubr.f32.gmra.mrb[38].mxu0 %v1540_v6  ;;  %7461 = vmatmul.mubr.msk.f32.gmra.mrb[26].mxu1 %vm89_vm1, %v7457_v7 }
 0x3c9   :  { %8984 = vmatpush3.bf16.msra.mxu1 %v8983_v8 }
 0x3ca   :  { %8986 = vmatprep.subr.bf16.mxu1 %v8985_v11 }
 0x3cd   :  { %8988 = vmatpush3.bf16.msra.mxu1 %v8987_v16 }
 0x3ce   :  { %8990 = vmatprep.subr.bf16.mxu1 %v8989_v17 }
 0x3d1   :  { %8992 = vmatpush3.bf16.msra.mxu1 %v8991_v22 }
 0x3d2   :  { %8994 = vmatprep.subr.bf16.mxu1 %v8993_v23 }
 0x3d5   :  { %8996 = vmatpush3.bf16.msra.mxu1 %v8995_v28 }
 0x3d6   :  { %8998 = vmatprep.subr.bf16.mxu1 %v8997_v29 }
 0x3d9   :  { %9000 = vmatpush3.bf16.msra.mxu1 %v8999_v2 }
 0x3da   :  { %9002 = vmatprep.subr.bf16.mxu1 %v9001_v34 }
 0x3dd   :  { %9004 = vmatpush3.bf16.msra.mxu1 %v9003_v38 }
 0x3de   :  { %9006 = vmatprep.subr.bf16.mxu1 %v9005_v41 }
 0x3e1   :  { %9008 = vmatpush3.bf16.msra.mxu1 %v9007_v45 }
 0x43d   :  { %v1856_v8 = vpop.permute.xlu0 %1855 }
 0x441   :  { %v1861_v16 = vpop.permute.xlu0 %1860 }
 0x48f   :  { %v7925_v49 = vpop.f32.mrb[20].mxu1 }
 0x490   :  { %v7926_v50 = vpop.f32.mrb[21].mxu1 }
 0x491   :  { %v7927_v51 = vadd.f32 %v7926_v50, %v7925_v49 }
 0x493   :  { %v1457_v43 = vadd.f32 %v7927_v51, %v10605_v37  ;;  %v7928_v52 = vpop.f32.mrb[22].mxu1 }
 0x494   :  { %v7929_v53 = vpop.f32.mrb[23].mxu1 }
 0x495   :  { %v7930_v57 = vadd.f32 %v7929_v53, %v7928_v52  ;;  %v7498_v52 = vld [vmem:[%s11266_s4 + $0x10] sm:$0xff] }
 0x497   :  { %v1458_v54 = vadd.f32 %v7930_v57, %v10621_v56  ;;  %v7963_v1 = vpop.f32.mrb[36].mxu0  ;;  %v1730_v55 = vpop.f32.mrb[24].mxu1  ;;  %v10722_v56 = vld [vmem:[%s11263_s1] sm:$0xff] }
 0x498   :  { %v7964_v9 = vpop.f32.mrb[37].mxu0  ;;  %v1732_v58 = vpop.f32.mrb[25].mxu1  ;;  %8260 = vmatprep.mubr.msk.f32.mxu0 %vm1867_vm2, %v10722_v56 }
 0x499   :  { %v7965_v59 = vadd.f32 %v7964_v9, %v7963_v1  ;;  %1838 = vmatprep.mubr.f32.mxu1 %v1732_v58 }
 0x49a   :  { %1839 = vmatmul.mubr.f32.vlgmr.msra.gmra.mrb[28].mxu1 %v1730_v55  ;;  %v7500_v55 = vld [vmem:[%s11266_s4 + $0x20] sm:$0xff] }
 0x49b   :  { %v1653_v60 = vadd.f32 %v7965_v59, %v1457_v43  ;;  %v7966_v61 = vpop.f32.mrb[38].mxu0  ;;  %v1736_v62 = vpop.f32.mrb[26].mxu1  ;;  %v7499_v43 = vld [vmem:[%s11266_s4 + $0x18] sm:$0xff]  ;;  %v7501_v59 = vld [vmem:[%s11266_s4 + $0x28] sm:$0xff] }
 0x49c   :  { %v7967_v63 = vpop.f32.mrb[39].mxu0  ;;  %v1738_v3 = vpop.f32.mrb[27].mxu1 }
 0x49d   :  { %v7968_v4 = vadd.f32 %v7967_v63, %v7966_v61  ;;  %1843 = vmatprep.mubr.f32.mxu1 %v1738_v3  ;;  %v3669_v61 = vld [vmem:[%s11269_s7 + $0x8] sm:$0xff]  ;;  %v7518_v63 = vld [vmem:[%s11268_s6 + $0x30] sm:$0xff] }
 0x49e   :  { %1844 = vmatmul.mubr.f32.gmra.mrb[30].mxu1 %v1736_v62  ;;  %v2090_v62 = vld [vmem:[%s11268_s6] sm:$0xff] }
 0x49f   :  { %v1654_v37 = vadd.f32 %v7968_v4, %v1458_v54  ;;  %8352 = vmatprep.mubr.msk.f32.mxu1 %vm1867_vm2, %v7518_v63  ;;  %v2526_v63 = vld [vmem:[#allocation2 + $0xa8] sm:$0xff] }
 0x56d   :  { %v8001_v5 = vpop.f32.mrb[28].mxu1 }
 0x56e   :  { %v8002_v6 = vpop.f32.mrb[29].mxu1 }
 0x56f   :  { %v8003_v7 = vadd.f32 %v8002_v6, %v8001_v5 }
 0x571   :  { %v1849_v10 = vadd.f32 %v8003_v7, %v1653_v60  ;;  %v8004_v11 = vpop.f32.mrb[30].mxu1 }
 0x572   :  { %v8005_v12 = vpop.f32.mrb[31].mxu1 }
 0x573   :  { %v1863_v13 = vadd.f32 %v1856_v8, %v1849_v10  ;;  %v8006_v14 = vadd.f32 %v8005_v12, %v8004_v11  ;;  %v2266_v12 = vld [vmem:[#allocation2 + $0x40] sm:$0xff] }
 0x575   :  { %v1850_v15 = vadd.f32 %v8006_v14, %v1654_v37  ;;  %v10726_v17 = vmax.f32 %v1863_v13, 0.0  ;;  %v2267_v13 = vld [vmem:[#allocation2 + $0x48] sm:$0xff] }
 0x576   :  { %v2091_v14 = vld [vmem:[%s11268_s6 + $0x8] sm:$0xff] }
 0x577   :  { %v1864_v18 = vadd.f32 %v1861_v16, %v1850_v15  ;;  %v1949_v21 = vmul.f32 %v10726_v17, %v10726_v17  ;;  %v7519_v15 = vld [vmem:[%s11268_s6 + $0x38] sm:$0xff]  ;;  %v7504_v16 = vld [vmem:[%s11268_s6 + $0x10] sm:$0xff] }
 0x579   :  { %v10728_v19 = vmax.f32 %v1864_v18, 0.0  ;;  %v7524_v18 = vld [vmem:[%s11268_s6 + $0x40] sm:$0xff] }
 0x57b   :  { %v9009_v20 = vpack.c.bf16 %v10728_v19, %v10726_v17  ;;  %v1950_v22 = vmul.f32 %v10728_v19, %v10728_v19 }
 0x57d   :  { %9010 = vmatprep.subr.bf16.mxu0 %v9009_v20  ;;  %v9013_v23 = vpack.c.bf16 %v1950_v22, %v1949_v21  ;;  %v7505_v21 = vld [vmem:[%s11268_s6 + $0x18] sm:$0xff]  ;;  %v7525_v22 = vld [vmem:[%s11268_s6 + $0x48] sm:$0xff] }
 0x57e   :  { %9012 = vmatpush3.bf16.msra.mxu0 %v9009_v20  ;;  %v2269_v20 = vld [vmem:[#allocation2 + $0x58] sm:$0xff] }
 0x57f   :  { %9014 = vmatprep.subr.bf16.mxu0 %v9013_v23 }
 0x581   :  { %8261 = vmatmul.mubr.msk.f32.vlgmr.msra.gmra.mrb[40].mxu0 %vm1867_vm2, %v10739_v24 }
 0x582   :  { %9016 = vmatpush3.bf16.msra.mxu0 %v9013_v23  ;;  %8267 = vmatprep.mubr.msk.f32.mxu0 %vm1867_vm2, %v10722_v56  ;;  %v7530_v23 = vld [vmem:[%s11268_s6 + $0x50] sm:$0xff] }
 0x585   :  { %8268 = vmatmul.mubr.msk.f32.vlgmr.msra.gmra.mrb[42].mxu0 %vm1867_vm2, %v10739_v24 }
 0x586   :  { %8274 = vmatprep.mubr.msk.f32.mxu0 %vm1867_vm2, %v2090_v62  ;;  %v2525_v62 = vld [vmem:[#allocation2 + $0xa0] sm:$0xff] }
 0x654   :  { %v8262_v25 = vpop.f32.mrb[40].mxu0 }
 0x655   :  { %v2030_v26 = vsel %vm2026_vm3, %v8262_v25, 0.0  ;;  %v1940_v27 = vpop.f32.mrb[41].mxu0 }
 0x656   :  { %2031 = vadd.xlane.f32.xlu1 %v2030_v26  ;;  %v2027_v30 = vsel %vm2026_vm3, %v1940_v27, 0.0  ;;  %v2270_v26 = vld [vmem:[#allocation2 + $0x60] sm:$0xff]  ;;  %v2271_v27 = vld [vmem:[#allocation2 + $0x68] sm:$0xff] }
 0x658   :  { %v8269_v28 = vpop.f32.mrb[42].mxu0 }
 0x659   :  { %v2017_v29 = vpop.f32.mrb[43].mxu0  ;;  %v2039_v2 = vsel %vm2026_vm3, %v8269_v28, 0.0  ;;  %v7531_v28 = vld [vmem:[%s11268_s6 + $0x58] sm:$0xff] }
 0x65a   :  { %2028 = vadd.xlane.f32.xlu1 %v2027_v30  ;;  %v2036_v31 = vsel %vm2026_vm3, %v2017_v29, 0.0  ;;  %v7536_v29 = vld [vmem:[%s11268_s6 + $0x60] sm:$0xff]  ;;  %v9033_v30 = vpack.c.bf16 %v2271_v27, %v2270_v26 }
 0x65b   :  { %2037 = vadd.xlane.f32.xlu0 %v2036_v31  ;;  %v7537_v31 = vld [vmem:[%s11268_s6 + $0x68] sm:$0xff] }
 0x65e   :  { %2040 = vadd.xlane.f32.xlu1 %v2039_v2  ;;  %v7542_v2 = vld [vmem:[%s11268_s6 + $0x70] sm:$0xff] }
 0x671   :  { %3672 = vperm.xlu0 %9514, %v3668_v32   ;;  %v7543_v32 = vld [vmem:[%s11268_s6 + $0x78] sm:$0xff] }
 0x6e3   :  { %v2032_v33 = vpop.xlane.xlu1 %2031 }
 0x6e4   :  { %v2035_v35 = vmul.f32 0.0078125, %v2032_v33  ;;  %v2272_v33 = vld [vmem:[#allocation2 + $0x70] sm:$0xff] }
 0x6e6   :  { %v2045_v42 = vmul.f32 %v2035_v35, %v2035_v35 }
 0x6e7   :  { %v2029_v34 = vpop.xlane.xlu1 %2028 }
 0x6e8   :  { %v2034_v36 = vmul.f32 0.0078125, %v2029_v34  ;;  %v2038_v38 = vpop.xlane.xlu0 %2037  ;;  %v2273_v34 = vld [vmem:[#allocation2 + $0x78] sm:$0xff] }
 0x6e9   :  { %v2042_v39 = vmul.f32 0.0078125, %v2038_v38  ;;  %v2174_v38 = vld [vmem:[#allocation2 + $0x8] sm:$0xff] }
 0x6ea   :  { %v2044_v40 = vmul.f32 %v2034_v36, %v2034_v36 }
 0x6eb   :  { %v2041_v41 = vpop.xlane.xlu1 %2040 }
 0x6ec   :  { %v2046_v44 = vsub.f32 %v2042_v39, %v2044_v40  ;;  %v2043_v45 = vmul.f32 0.0078125, %v2041_v41  ;;  %v7548_v40 = vld [vmem:[%s11268_s6 + $0x80] sm:$0xff]  ;;  %v7549_v41 = vld [vmem:[%s11268_s6 + $0x88] sm:$0xff] }
 0x6ee   :  { %v2048_v46 = vmax.f32 %v2046_v44, 0.0  ;;  %v2047_v47 = vsub.f32 %v2043_v45, %v2045_v42  ;;  %v2175_v45 = vld [vmem:[#allocation2 + $0x10] sm:$0xff] }
 0x6f0   :  { %v2050_v48 = vadd.f32 1e-05, %v2048_v46  ;;  %v2049_v49 = vmax.f32 %v2047_v47, 0.0  ;;  %v2176_v46 = vld [vmem:[#allocation2 + $0x18] sm:$0xff] }
 0x6f2   :  { %9516 = vrsqrt.f32 %v2050_v48  ;;  %v2051_v50 = vadd.f32 1e-05, %v2049_v49  ;;  %v9045_v49 = vpack.c.bf16 %v2176_v46, %v2175_v45  ;;  %v2880_v45 = vld [vmem:[#allocation2 + $0x138] sm:$0xff] }
 0x6f4   :  { %9518 = vrsqrt.f32 %v2051_v50  ;;  %v2177_v50 = vld [vmem:[#allocation2 + $0x20] sm:$0xff] }
 0x6fc   :  { %v9517_v51 = vpop.eup %9516 }
 0x6fd   :  { %v2057_v54 = vmul.f32 %v9517_v51, %v7498_v52  ;;  %v2178_v51 = vld [vmem:[#allocation2 + $0x28] sm:$0xff]  ;;  %v2179_v52 = vld [vmem:[#allocation2 + $0x30] sm:$0xff] }
 0x6fe   :  { %v9519_v53 = vpop.eup %9518 }
 0x6ff   :  { %v2058_v57 = vmul.f32 %v9519_v53, %v7499_v43  ;;  %v2062_v1 = vmul.f32 %v2057_v54, %v2034_v36  ;;  %v2173_v36 = vld [vmem:[#allocation2] sm:$0xff]  ;;  %v9049_v43 = vpack.c.bf16 %v2178_v51, %v2177_v50  ;;  %v2180_v53 = vld [vmem:[#allocation2 + $0x38] sm:$0xff]  ;;  %v3051_v50 = vld [vmem:[#allocation2 + $0x150] sm:$0xff] }
 0x700   :  { %v9041_v39 = vpack.c.bf16 %v2174_v38, %v2173_v36  ;;  %v2875_v36 = vld [vmem:[#allocation2 + $0x110] sm:$0xff]  ;;  %v2876_v38 = vld [vmem:[#allocation2 + $0x118] sm:$0xff] }
 0x701   :  { %2073 = vperm.xlu1 %9515, %v2058_v57   ;;  %v2064_v9 = vsub.f32 %v7500_v55, %v2062_v1  ;;  %v2063_v58 = vmul.f32 %v2058_v57, %v2035_v35  ;;  %v9037_v35 = vpack.c.bf16 %v2273_v34, %v2272_v33  ;;  %v9053_v57 = vpack.c.bf16 %v2180_v53, %v2179_v52  ;;  %v2522_v1 = vld [vmem:[#allocation2 + $0x88] sm:$0xff]  ;;  %v7512_v55 = vld [vmem:[%s11268_s6 + $0x20] sm:$0xff]  ;;  %v3052_v51 = vld [vmem:[#allocation2 + $0x158] sm:$0xff] }
 0x702   :  { %v2873_v33 = vld [vmem:[#allocation2 + $0x100] sm:$0xff]  ;;  %v2874_v34 = vld [vmem:[#allocation2 + $0x108] sm:$0xff] }
 0x703   :  { %v2065_v60 = vsub.f32 %v7501_v59, %v2063_v58  ;;  %v2523_v58 = vld [vmem:[#allocation2 + $0x90] sm:$0xff]  ;;  %v2524_v59 = vld [vmem:[#allocation2 + $0x98] sm:$0xff]  ;;  %v3053_v52 = vld [vmem:[#allocation2 + $0x160] sm:$0xff] }
 0x704   :  { %v3054_v53 = vld [vmem:[#allocation2 + $0x168] sm:$0xff] }
 0x705   :  { %2068 = vperm.xlu1 %9515, %v2057_v54   ;;  %v2521_v54 = vld [vmem:[#allocation2 + $0x80] sm:$0xff] }
 0x709   :  { %2080 = vperm.xlu1 %9515, %v2064_v9   ;;  %v9061_v9 = vpack.c.bf16 %v2522_v1, %v2521_v54  ;;  %v3055_v54 = vld [vmem:[#allocation2 + $0x170] sm:$0xff]  ;;  %v3056_v1 = vld [vmem:[#allocation2 + $0x178] sm:$0xff] }
 0x70d   :  { %2085 = vperm.xlu1 %9515, %v2065_v60   ;;  %v7513_v60 = vld [vmem:[%s11268_s6 + $0x28] sm:$0xff] }
 0x711   :  { %3677 = vperm.xlu1 %9515, %v3669_v61   ;;  %v9065_v61 = vpack.c.bf16 %v2524_v59, %v2523_v58  ;;  %v3226_v58 = vld [vmem:[#allocation2 + $0x188] sm:$0xff] }
 0x780   :  { %v2074_v3 = vpop.permute.xlu1 %2073 }
 0x781   :  { %v2077_v5 = vmul.f32 %v2074_v3, %v10728_v19  ;;  %v2268_v19 = vld [vmem:[#allocation2 + $0x50] sm:$0xff]  ;;  %v9069_v3 = vpack.c.bf16 %v2526_v63, %v2525_v62  ;;  %v3229_v63 = vld [vmem:[#allocation2 + $0x1a0] sm:$0xff] }
 0x782   :  { %v9029_v25 = vpack.c.bf16 %v2269_v20, %v2268_v19 }
 0x784   :  { %v2069_v4 = vpop.permute.xlu1 %2068 }
 0x785   :  { %v2076_v6 = vmul.f32 %v2069_v4, %v10726_v17  ;;  %v9025_v17 = vpack.c.bf16 %v2267_v13, %v2266_v12  ;;  %v2527_v4 = vld [vmem:[#allocation2 + $0xb0] sm:$0xff] }
 0x788   :  { %v2081_v37 = vpop.permute.xlu1 %2080 }
 0x789   :  { %v2088_v8 = vadd.f32 %v2081_v37, %v2076_v6  ;;  %v2528_v37 = vld [vmem:[#allocation2 + $0xb8] sm:$0xff]  ;;  %v2697_v6 = vld [vmem:[#allocation2 + $0xc0] sm:$0xff] }
 0x78c   :  { %v2086_v7 = vpop.permute.xlu1 %2085 }
 0x78d   :  { %v2089_v10 = vadd.f32 %v2086_v7, %v2077_v5  ;;  %v9073_v5 = vpack.c.bf16 %v2528_v37, %v2527_v4  ;;  %v2698_v7 = vld [vmem:[#allocation2 + $0xc8] sm:$0xff]  ;;  %v3231_v37 = vld [vmem:[#allocation2 + $0x1b0] sm:$0xff] }
 0x78f   :  { %v10779_v11 = vpack.c.bf16 %v2089_v10, %v2088_v8  ;;  %v9081_v8 = vpack.c.bf16 %v2698_v7, %v2697_v6  ;;  %v3401_v7 = vld [vmem:[#allocation2 + $0x1c0] sm:$0xff] }
 0x791   :  { %9018 = vmatprep.subr.bf16.mxu0 %v10779_v11  ;;  %9078 = vmatprep.subr.bf16.mxu1 %v10779_v11 }
 0x792   :  { %9020 = vmatpush3.bf16.msra.mxu0 %v10779_v11  ;;  %9080 = vmatpush3.bf16.msra.mxu1 %v10779_v11 }
 0x793   :  { %9022 = vmatprep.subr.bf16.mxu0 %v10779_v11  ;;  %9098 = vmatprep.subr.bf16.mxu1 %v10779_v11 }
 0x795   :  { %8275 = vmatmul.mubr.msk.f32.vlgmr.msra.gmra.mrb[44].mxu0 %vm1867_vm2, %v2091_v14  ;;  %8353 = vmatmul.mubr.msk.f32.vlgmr.msra.gmra.mrb[32].mxu1 %vm1867_vm2, %v7519_v15 }
 0x796   :  { %9024 = vmatpush3.bf16.msra.mxu0 %v10779_v11  ;;  %9100 = vmatpush3.bf16.msra.mxu1 %v10779_v11 }
 0x797   :  { %9118 = vmatprep.subr.bf16.mxu1 %v10779_v11  ;;  %8281 = vmatprep.mubr.msk.f32.mxu0 %vm1867_vm2, %v7504_v16 }
 0x798   :  { %8378 = vmatprep.mubr.msk.f32.mxu1 %vm1867_vm2, %v7524_v18  ;;  %9026 = vmatprep.subr.bf16.mxu0 %v9025_v17 }
 0x799   :  { %8282 = vmatmul.mubr.msk.f32.vlgmr.msra.gmra.mrb[46].mxu0 %vm1867_vm2, %v7505_v21  ;;  %8379 = vmatmul.mubr.msk.f32.vlgmr.msra.gmra.mrb[34].mxu1 %vm1867_vm2, %v7525_v22  ;;  %v2699_v22 = vld [vmem:[#allocation2 + $0xd0] sm:$0xff] }
 0x79a   :  { %9120 = vmatpush3.bf16.msra.mxu1 %v10779_v11  ;;  %8404 = vmatprep.mubr.msk.f32.mxu1 %vm1867_vm2, %v7530_v23  ;;  %v2700_v23 = vld [vmem:[#allocation2 + $0xd8] sm:$0xff] }
 0x79b   :  { %9138 = vmatprep.subr.bf16.mxu1 %v10779_v11  ;;  %9028 = vmatpush3.bf16.msra.mxu0 %v9025_v17  ;;  %v9085_v27 = vpack.c.bf16 %v2700_v23, %v2699_v22  ;;  %v3407_v22 = vld [vmem:[#allocation2 + $0x1f0] sm:$0xff]  ;;  %v3408_v23 = vld [vmem:[#allocation2 + $0x1f8] sm:$0xff] }
 0x79c   :  { %9030 = vmatprep.subr.bf16.mxu0 %v9029_v25 }
 0x79d   :  { %8405 = vmatmul.mubr.msk.f32.vlgmr.msra.gmra.mrb[36].mxu1 %vm1867_vm2, %v7531_v28  ;;  %v2701_v28 = vld [vmem:[#allocation2 + $0xe0] sm:$0xff] }
 0x79e   :  { %9140 = vmatpush3.bf16.msra.mxu1 %v10779_v11  ;;  %8430 = vmatprep.mubr.msk.f32.mxu1 %vm1867_vm2, %v7536_v29  ;;  %v2702_v29 = vld [vmem:[#allocation2 + $0xe8] sm:$0xff] }
 0x79f   :  { %9158 = vmatprep.subr.bf16.mxu1 %v10779_v11  ;;  %9032 = vmatpush3.bf16.msra.mxu0 %v9029_v25 }
 0x7a0   :  { %9034 = vmatprep.subr.bf16.mxu0 %v9033_v30 }
 0x7a1   :  { %8431 = vmatmul.mubr.msk.f32.vlgmr.msra.gmra.mrb[38].mxu1 %vm1867_vm2, %v7537_v31  ;;  %v2703_v31 = vld [vmem:[#allocation2 + $0xf0] sm:$0xff] }
 0x7a2   :  { %9160 = vmatpush3.bf16.msra.mxu1 %v10779_v11  ;;  %8456 = vmatprep.mubr.msk.f32.mxu1 %vm1867_vm2, %v7542_v2  ;;  %v2704_v2 = vld [vmem:[#allocation2 + $0xf8] sm:$0xff] }
 0x7a3   :  { %9178 = vmatprep.subr.bf16.mxu1 %v10779_v11  ;;  %9036 = vmatpush3.bf16.msra.mxu0 %v9033_v30  ;;  %v9089_v30 = vpack.c.bf16 %v2702_v29, %v2701_v28  ;;  %v3579_v29 = vld [vmem:[#allocation2 + $0x210] sm:$0xff] }
 0x7a4   :  { %9038 = vmatprep.subr.bf16.mxu0 %v9037_v35 }
 0x7a5   :  { %8457 = vmatmul.mubr.msk.f32.vlgmr.msra.gmra.mrb[40].mxu1 %vm1867_vm2, %v7543_v32  ;;  %v9093_v32 = vpack.c.bf16 %v2704_v2, %v2703_v31  ;;  %v3581_v31 = vld [vmem:[#allocation2 + $0x220] sm:$0xff]  ;;  %v3582_v2 = vld [vmem:[#allocation2 + $0x228] sm:$0xff] }
 0x7a6   :  { %9180 = vmatpush3.bf16.msra.mxu1 %v10779_v11  ;;  %8482 = vmatprep.mubr.msk.f32.mxu1 %vm1867_vm2, %v7548_v40  ;;  %v2877_v40 = vld [vmem:[#allocation2 + $0x120] sm:$0xff] }
 0x7a7   :  { %9040 = vmatpush3.bf16.msra.mxu0 %v9037_v35  ;;  %v9101_v35 = vpack.c.bf16 %v2874_v34, %v2873_v33  ;;  %v3584_v33 = vld [vmem:[#allocation2 + $0x238] sm:$0xff] }
 0x7a8   :  { %9042 = vmatprep.subr.bf16.mxu0 %v9041_v39 }
 0x7a9   :  { %8483 = vmatmul.mubr.msk.f32.vlgmr.msra.gmra.mrb[42].mxu1 %vm1867_vm2, %v7549_v41  ;;  %v2878_v41 = vld [vmem:[#allocation2 + $0x128] sm:$0xff] }
 0x7aa   :  { %8508 = vmatprep.mubr.msk.f32.mxu1 %vm1867_vm2, %v10722_v56 }
 0x868   :  { %v8276_v42 = vpop.f32.mrb[44].mxu0  ;;  %v8354_v10 = vpop.f32.mrb[32].mxu1 }
 0x869   :  { %v2164_v44 = vpop.f32.mrb[45].mxu0 }
 0x86c   :  { %v8283_v47 = vpop.f32.mrb[46].mxu0 }
 0x86d   :  { %v2256_v48 = vpop.f32.mrb[47].mxu0 }
 0x86e   :  { %8300 = vmatprep.mubr.msk.f32.mxu0 %vm2026_vm3, %v2256_v48  ;;  %v3050_v48 = vld [vmem:[#allocation2 + $0x148] sm:$0xff] }
 0x86f   :  { %8301 = vmatmul.mubr.msk.f32.vlgmr.msra.gmra.mrb[48].mxu0 %vm2026_vm3, %v8283_v47  ;;  %v3049_v47 = vld [vmem:[#allocation2 + $0x140] sm:$0xff] }
 0x870   :  { %9044 = vmatpush3.bf16.msra.mxu0 %v9041_v39  ;;  %8319 = vmatprep.mubr.msk.f32.mxu0 %vm2026_vm3, %v2164_v44  ;;  %v9105_v39 = vpack.c.bf16 %v2876_v38, %v2875_v36  ;;  %v2879_v44 = vld [vmem:[#allocation2 + $0x130] sm:$0xff]  ;;  %v3673_v36 = vpop.permute.xlu0 %3672 }
 0x871   :  { %9046 = vmatprep.subr.bf16.mxu0 %v9045_v49  ;;  %v9113_v46 = vpack.c.bf16 %v2880_v45, %v2879_v44 }
 0x874   :  { %9048 = vmatpush3.bf16.msra.mxu0 %v9045_v49  ;;  %v9121_v49 = vpack.c.bf16 %v3050_v48, %v3049_v47 }
 0x875   :  { %9050 = vmatprep.subr.bf16.mxu0 %v9049_v43 }
 0x878   :  { %9052 = vmatpush3.bf16.msra.mxu0 %v9049_v43  ;;  %v9125_v43 = vpack.c.bf16 %v3052_v51, %v3051_v50 }
 0x879   :  { %9054 = vmatprep.subr.bf16.mxu0 %v9053_v57 }
 0x87c   :  { %9056 = vmatpush3.bf16.msra.mxu0 %v9053_v57  ;;  %v9129_v57 = vpack.c.bf16 %v3054_v53, %v3053_v52 }
 0x87d   :  { %9058 = vmatprep.subr.bf16.mxu0 %v10779_v11 }
 0x87f   :  { %8320 = vmatmul.mubr.msk.f32.vlgmr.msra.gmra.mrb[48].mxu0 %vm2026_vm3, %v8276_v42  ;;  %v9109_v42 = vpack.c.bf16 %v2878_v41, %v2877_v40 }
 0x880   :  { %9060 = vmatpush3.bf16.msra.mxu0 %v10779_v11  ;;  %8326 = vmatprep.mubr.msk.f32.mxu0 %vm1867_vm2, %v7512_v55  ;;  %v2687_v11 = vpop.f32.mrb[33].mxu1  ;;  %v9133_v55 = vpack.c.bf16 %v3056_v1, %v3055_v54 }
 0x881   :  { %9062 = vmatprep.subr.bf16.mxu0 %v9061_v9  ;;  %v8380_v12 = vpop.f32.mrb[34].mxu1 }
 0x882   :  { %v2863_v13 = vpop.f32.mrb[35].mxu1 }
 0x883   :  { %8327 = vmatmul.mubr.msk.f32.vlgmr.msra.gmra.mrb[50].mxu0 %vm1867_vm2, %v7513_v60  ;;  %v10869_v14 = vpop.f32.mrb[36].mxu1  ;;  %v3227_v60 = vld [vmem:[#allocation2 + $0x190] sm:$0xff] }
 0x884   :  { %9064 = vmatpush3.bf16.msra.mxu0 %v9061_v9  ;;  %v3039_v15 = vpop.f32.mrb[37].mxu1  ;;  %v3225_v9 = vld [vmem:[#allocation2 + $0x180] sm:$0xff] }
 0x885   :  { %9066 = vmatprep.subr.bf16.mxu0 %v9065_v61  ;;  %v10871_v16 = vpop.f32.mrb[38].mxu1  ;;  %v9141_v59 = vpack.c.bf16 %v3226_v58, %v3225_v9 }
 0x886   :  { %v10873_v17 = vpop.f32.mrb[39].mxu1 }
 0x887   :  { %v10875_v18 = vpop.f32.mrb[40].mxu1 }
 0x888   :  { %9068 = vmatpush3.bf16.msra.mxu0 %v9065_v61  ;;  %v10877_v19 = vpop.f32.mrb[41].mxu1  ;;  %v3228_v61 = vld [vmem:[#allocation2 + $0x198] sm:$0xff] }
 0x889   :  { %9070 = vmatprep.subr.bf16.mxu0 %v9069_v3  ;;  %v10879_v20 = vpop.f32.mrb[42].mxu1  ;;  %v9145_v62 = vpack.c.bf16 %v3228_v61, %v3227_v60 }
 0x88a   :  { %v10881_v21 = vpop.f32.mrb[43].mxu1 }
 0x88c   :  { %9072 = vmatpush3.bf16.msra.mxu0 %v9069_v3  ;;  %v3230_v3 = vld [vmem:[#allocation2 + $0x1a8] sm:$0xff] }
 0x88d   :  { %9074 = vmatprep.subr.bf16.mxu0 %v9073_v5  ;;  %v9149_v4 = vpack.c.bf16 %v3230_v3, %v3229_v63 }
 0x890   :  { %9076 = vmatpush3.bf16.msra.mxu0 %v9073_v5  ;;  %v3232_v5 = vld [vmem:[#allocation2 + $0x1b8] sm:$0xff] }
 0x891   :  { %9082 = vmatprep.subr.bf16.mxu0 %v9081_v8  ;;  %v9153_v6 = vpack.c.bf16 %v3232_v5, %v3231_v37  ;;  %v7558_v37 = vld [vmem:[%s11269_s7 + $0x10] sm:$0xff] }
 0x956   :  { %v8328_v25 = vpop.f32.mrb[50].mxu0 }
 0x957   :  { %v2511_v26 = vpop.f32.mrb[51].mxu0 }
 0x958   :  { %8345 = vmatprep.mubr.msk.f32.mxu0 %vm2026_vm3, %v2511_v26  ;;  %v3577_v26 = vld [vmem:[#allocation2 + $0x200] sm:$0xff] }
 0x959   :  { %8346 = vmatmul.mubr.msk.f32.vlgmr.msra.gmra.mrb[48].mxu0 %vm2026_vm3, %v8328_v25  ;;  %v9173_v25 = vpack.c.bf16 %v3408_v23, %v3407_v22  ;;  %v5424_v23 = vld [vmem:[%s11272_s10 + $0x8] sm:$0xff] }
 0x95a   :  { %9084 = vmatpush3.bf16.msra.mxu0 %v9081_v8  ;;  %8371 = vmatprep.mubr.msk.f32.mxu0 %vm2026_vm3, %v2687_v11  ;;  %v3402_v8 = vld [vmem:[#allocation2 + $0x1c8] sm:$0xff]  ;;  %v3403_v11 = vld [vmem:[#allocation2 + $0x1d0] sm:$0xff] }
 0x95b   :  { %9086 = vmatprep.subr.bf16.mxu0 %v9085_v27 }
 0x95e   :  { %9088 = vmatpush3.bf16.msra.mxu0 %v9085_v27  ;;  %v3578_v27 = vld [vmem:[#allocation2 + $0x208] sm:$0xff] }
 0x95f   :  { %9090 = vmatprep.subr.bf16.mxu0 %v9089_v30  ;;  %v9181_v28 = vpack.c.bf16 %v3578_v27, %v3577_v26 }
 0x962   :  { %9092 = vmatpush3.bf16.msra.mxu0 %v9089_v30  ;;  %v3580_v30 = vld [vmem:[#allocation2 + $0x218] sm:$0xff] }
 0x963   :  { %9094 = vmatprep.subr.bf16.mxu0 %v9093_v32 }
 0x966   :  { %9096 = vmatpush3.bf16.msra.mxu0 %v9093_v32  ;;  %v3583_v32 = vld [vmem:[#allocation2 + $0x230] sm:$0xff] }
 0x967   :  { %9102 = vmatprep.subr.bf16.mxu0 %v9101_v35  ;;  %v9193_v34 = vpack.c.bf16 %v3584_v33, %v3583_v32  ;;  %v3900_v32 = vld [vmem:[%s11271_s9 + $0x8] sm:$0xff]  ;;  %v7564_v33 = vld [vmem:[%s11271_s9 + $0x10] sm:$0xff] }
 0x969   :  { %8372 = vmatmul.mubr.msk.f32.vlgmr.msra.gmra.mrb[48].mxu0 %vm2026_vm3, %v8354_v10  ;;  %v9161_v10 = vpack.c.bf16 %v3402_v8, %v3401_v7  ;;  %v7560_v7 = vld [vmem:[%s11269_s7 + $0x20] sm:$0xff]  ;;  %v7559_v8 = vld [vmem:[%s11269_s7 + $0x18] sm:$0xff] }
 0x96a   :  { %9104 = vmatpush3.bf16.msra.mxu0 %v9101_v35  ;;  %8397 = vmatprep.mubr.msk.f32.mxu0 %vm2026_vm3, %v2863_v13 }
 0x96b   :  { %9106 = vmatprep.subr.bf16.mxu0 %v9105_v39 }
 0x96e   :  { %9108 = vmatpush3.bf16.msra.mxu0 %v9105_v39 }
 0x96f   :  { %9110 = vmatprep.subr.bf16.mxu0 %v9109_v42 }
 0x972   :  { %9112 = vmatpush3.bf16.msra.mxu0 %v9109_v42 }
 0x973   :  { %9114 = vmatprep.subr.bf16.mxu0 %v9113_v46 }
 0x976   :  { %9116 = vmatpush3.bf16.msra.mxu0 %v9113_v46 }
 0x977   :  { %9122 = vmatprep.subr.bf16.mxu0 %v9121_v49 }
 0x979   :  { %8398 = vmatmul.mubr.msk.f32.vlgmr.msra.gmra.mrb[48].mxu0 %vm2026_vm3, %v8380_v12  ;;  %v3404_v12 = vld [vmem:[#allocation2 + $0x1d8] sm:$0xff] }
 0x97a   :  { %9124 = vmatpush3.bf16.msra.mxu0 %v9121_v49  ;;  %8423 = vmatprep.mubr.msk.f32.mxu0 %vm2026_vm3, %v3039_v15  ;;  %v9165_v13 = vpack.c.bf16 %v3404_v12, %v3403_v11  ;;  %v3406_v15 = vld [vmem:[#allocation2 + $0x1e8] sm:$0xff] }
 0x97b   :  { %9126 = vmatprep.subr.bf16.mxu0 %v9125_v43 }
 0x97e   :  { %9128 = vmatpush3.bf16.msra.mxu0 %v9125_v43 }
 0x97f   :  { %9130 = vmatprep.subr.bf16.mxu0 %v9129_v57 }
 0x982   :  { %9132 = vmatpush3.bf16.msra.mxu0 %v9129_v57 }
 0x983   :  { %9134 = vmatprep.subr.bf16.mxu0 %v9133_v55 }
 0x986   :  { %9136 = vmatpush3.bf16.msra.mxu0 %v9133_v55 }
 0x987   :  { %9142 = vmatprep.subr.bf16.mxu0 %v9141_v59 }
 0x989   :  { %8424 = vmatmul.mubr.msk.f32.vlgmr.msra.gmra.mrb[48].mxu0 %vm2026_vm3, %v10869_v14  ;;  %v3405_v14 = vld [vmem:[#allocation2 + $0x1e0] sm:$0xff] }
 0x98a   :  { %9144 = vmatpush3.bf16.msra.mxu0 %v9141_v59  ;;  %8449 = vmatprep.mubr.msk.f32.mxu0 %vm2026_vm3, %v10873_v17  ;;  %v9169_v17 = vpack.c.bf16 %v3406_v15, %v3405_v14  ;;  %v7561_v14 = vld [vmem:[%s11269_s7 + $0x28] sm:$0xff] }
 0x98b   :  { %9146 = vmatprep.subr.bf16.mxu0 %v9145_v62 }
 0x98e   :  { %9148 = vmatpush3.bf16.msra.mxu0 %v9145_v62 }
 0x98f   :  { %9150 = vmatprep.subr.bf16.mxu0 %v9149_v4 }
 0x992   :  { %9152 = vmatpush3.bf16.msra.mxu0 %v9149_v4 }
 0x993   :  { %9154 = vmatprep.subr.bf16.mxu0 %v9153_v6 }
 0x996   :  { %9156 = vmatpush3.bf16.msra.mxu0 %v9153_v6 }
 0x997   :  { %9162 = vmatprep.subr.bf16.mxu0 %v9161_v10 }
 0x999   :  { %8450 = vmatmul.mubr.msk.f32.vlgmr.msra.gmra.mrb[48].mxu0 %vm2026_vm3, %v10871_v16  ;;  %v9185_v16 = vpack.c.bf16 %v3580_v30, %v3579_v29 }
 0x99a   :  { %9164 = vmatpush3.bf16.msra.mxu0 %v9161_v10  ;;  %8475 = vmatprep.mubr.msk.f32.mxu0 %vm2026_vm3, %v10877_v19  ;;  %v9189_v19 = vpack.c.bf16 %v3582_v2, %v3581_v31 }
 0x99b   :  { %9166 = vmatprep.subr.bf16.mxu0 %v9165_v13 }
 0x99e   :  { %9168 = vmatpush3.bf16.msra.mxu0 %v9165_v13 }
 0x99f   :  { %9170 = vmatprep.subr.bf16.mxu0 %v9169_v17 }
 0x9a2   :  { %9172 = vmatpush3.bf16.msra.mxu0 %v9169_v17  ;;  %v5423_v17 = vld [vmem:[%s11272_s10] sm:$0xff] }
 0x9a3   :  { %9174 = vmatprep.subr.bf16.mxu0 %v9173_v25 }
 0x9a6   :  { %9176 = vmatpush3.bf16.msra.mxu0 %v9173_v25  ;;  %v3899_v25 = vld [vmem:[%s11271_s9] sm:$0xff] }
 0x9a7   :  { %9182 = vmatprep.subr.bf16.mxu0 %v9181_v28 }
 0x9a9   :  { %8476 = vmatmul.mubr.msk.f32.vlgmr.msra.gmra.mrb[48].mxu0 %vm2026_vm3, %v10875_v18  ;;  %v3678_v18 = vpop.permute.xlu1 %3677 }
 0x9aa   :  { %9184 = vmatpush3.bf16.msra.mxu0 %v9181_v28  ;;  %8501 = vmatprep.mubr.msk.f32.mxu0 %vm2026_vm3, %v10881_v21 }
 0x9ab   :  { %9186 = vmatprep.subr.bf16.mxu0 %v9185_v16 }
 0x9ae   :  { %9188 = vmatpush3.bf16.msra.mxu0 %v9185_v16 }
 0x9af   :  { %9190 = vmatprep.subr.bf16.mxu0 %v9189_v19 }
 0x9b2   :  { %9192 = vmatpush3.bf16.msra.mxu0 %v9189_v19 }
 0x9b3   :  { %9194 = vmatprep.subr.bf16.mxu0 %v9193_v34 }
 0x9b6   :  { %9196 = vmatpush3.bf16.msra.mxu0 %v9193_v34  ;;  %v7565_v34 = vld [vmem:[%s11271_s9 + $0x18] sm:$0xff] }
 0x9b9   :  { %8502 = vmatmul.mubr.msk.f32.vlgmr.msra.gmra.mrb[48].mxu0 %vm2026_vm3, %v10879_v20 }
 0x9ba   :  { %5902 = vmatprep.mubr.f32.mxu0 %v9585_v0 }
 0xa8c   :  { %v8503_v35 = vpop.f32.mrb[48].mxu0 }
 0xa8d   :  { %v3681_v38 = vadd.f32 %v8503_v35, %v3678_v18  ;;  %v3657_v21 = vpop.f32.mrb[49].mxu0  ;;  %v7568_v18 = vld [vmem:[%s11270_s8 + $0x10] sm:$0xff]  ;;  %v7569_v35 = vld [vmem:[%s11270_s8 + $0x18] sm:$0xff] }
 0xa8e   :  { %v3680_v39 = vadd.f32 %v3673_v36, %v3657_v21  ;;  %v9213_v36 = vpack.c.bf16 %v7569_v35, %v7568_v18  ;;  %v3983_v21 = vld [vmem:[%s11270_s8 + $0x8] sm:$0xff] }
 0xa8f   :  { %v10905_v40 = vmax.f32 %v3681_v38, 0.0  ;;  %v3982_v38 = vld [vmem:[%s11270_s8] sm:$0xff] }
 0xa90   :  { %v10907_v41 = vmax.f32 %v3680_v39, 0.0  ;;  %v9217_v39 = vpack.c.bf16 %v3983_v21, %v3982_v38 }
 0xa91   :  { %v3760_v42 = vmul.f32 %v10905_v40, %v10905_v40 }
 0xa92   :  { %v3759_v44 = vmul.f32 %v10907_v41, %v10907_v41  ;;  %v9197_v20 = vpack.c.bf16 %v10905_v40, %v10907_v41 }
 0xa94   :  { %9198 = vmatprep.subr.bf16.mxu1 %v9197_v20  ;;  %v9201_v45 = vpack.c.bf16 %v3760_v42, %v3759_v44 }
 0xa95   :  { %9200 = vmatpush3.bf16.msra.mxu1 %v9197_v20  ;;  %v7578_v20 = vld [vmem:[%s11270_s8 + $0x20] sm:$0xff] }
 0xa96   :  { %9202 = vmatprep.subr.bf16.mxu1 %v9201_v45 }
 0xa98   :  { %8509 = vmatmul.mubr.msk.f32.vlgmr.msra.gmra.mrb[44].mxu1 %vm1867_vm2, %v10739_v24 }
 0xa99   :  { %9204 = vmatpush3.bf16.msra.mxu1 %v9201_v45  ;;  %8515 = vmatprep.mubr.msk.f32.mxu1 %vm1867_vm2, %v10722_v56  ;;  %v7579_v45 = vld [vmem:[%s11270_s8 + $0x28] sm:$0xff] }
 0xa9c   :  { %8516 = vmatmul.mubr.msk.f32.vlgmr.msra.gmra.mrb[46].mxu1 %vm1867_vm2, %v10739_v24 }
 0xa9d   :  { %8522 = vmatprep.mubr.msk.f32.mxu1 %vm1867_vm2, %v3899_v25  ;;  %v7626_v25 = vld [vmem:[%s11270_s8 + $0x80] sm:$0xff] }
 0xb6b   :  { %v8510_v46 = vpop.f32.mrb[44].mxu1 }
 0xb6c   :  { %v3750_v47 = vpop.f32.mrb[45].mxu1  ;;  %v3839_v48 = vsel %vm1867_vm2, %v8510_v46, 0.0  ;;  %v7574_v46 = vld [vmem:[%s11271_s9 + $0x20] sm:$0xff] }
 0xb6d   :  { %v3836_v49 = vsel %vm1867_vm2, %v3750_v47, 0.0  ;;  %3840 = vadd.xlane.f32.xlu0 %v3839_v48  ;;  %v9225_v47 = vpack.c.bf16 %v7579_v45, %v7578_v20  ;;  %v7575_v48 = vld [vmem:[%s11271_s9 + $0x28] sm:$0xff] }
 0xb6e   :  { %3837 = vadd.xlane.f32.xlu1 %v3836_v49  ;;  %v7586_v49 = vld [vmem:[%s11270_s8 + $0x30] sm:$0xff] }
 0xb6f   :  { %v8517_v50 = vpop.f32.mrb[46].mxu1 }
 0xb70   :  { %v3827_v51 = vpop.f32.mrb[47].mxu1  ;;  %v3848_v52 = vsel %vm1867_vm2, %v8517_v50, 0.0  ;;  %v7587_v50 = vld [vmem:[%s11270_s8 + $0x38] sm:$0xff] }
 0xb71   :  { %v3845_v43 = vsel %vm1867_vm2, %v3827_v51, 0.0 }
 0xb72   :  { %3846 = vadd.xlane.f32.xlu1 %v3845_v43 }
 0xb76   :  { %3849 = vadd.xlane.f32.xlu1 %v3848_v52  ;;  %v7582_v52 = vld [vmem:[%s11271_s9 + $0x30] sm:$0xff] }
 0xbfa   :  { %v3841_v57 = vpop.xlane.xlu0 %3840 }
 0xbfb   :  { %v3838_v56 = vpop.xlane.xlu1 %3837  ;;  %v3844_v1 = vmul.f32 0.03125, %v3841_v57  ;;  %v7594_v57 = vld [vmem:[%s11270_s8 + $0x40] sm:$0xff] }
 0xbfc   :  { %v3843_v53 = vmul.f32 0.03125, %v3838_v56  ;;  %v9233_v56 = vpack.c.bf16 %v7587_v50, %v7586_v49 }
 0xbfd   :  { %v3854_v59 = vmul.f32 %v3844_v1, %v3844_v1 }
 0xbfe   :  { %v3853_v54 = vmul.f32 %v3843_v53, %v3843_v53 }
 0xbff   :  { %v3847_v24 = vpop.xlane.xlu1 %3846 }
 0xc00   :  { %v3851_v55 = vmul.f32 0.03125, %v3847_v24  ;;  %v7595_v24 = vld [vmem:[%s11270_s8 + $0x48] sm:$0xff] }
 0xc02   :  { %v3855_v9 = vsub.f32 %v3851_v55, %v3853_v54  ;;  %v7590_v55 = vld [vmem:[%s11271_s9 + $0x40] sm:$0xff] }
 0xc03   :  { %v3850_v58 = vpop.xlane.xlu1 %3849 }
 0xc04   :  { %v3857_v60 = vmax.f32 %v3855_v9, 0.0  ;;  %v3852_v61 = vmul.f32 0.03125, %v3850_v58  ;;  %v9241_v9 = vpack.c.bf16 %v7595_v24, %v7594_v57  ;;  %v7591_v58 = vld [vmem:[%s11271_s9 + $0x48] sm:$0xff] }
 0xc06   :  { %v3859_v62 = vadd.f32 1e-05, %v3857_v60  ;;  %v3856_v63 = vsub.f32 %v3852_v61, %v3854_v59  ;;  %v7602_v59 = vld [vmem:[%s11270_s8 + $0x50] sm:$0xff]  ;;  %v7603_v60 = vld [vmem:[%s11270_s8 + $0x58] sm:$0xff] }
 0xc08   :  { %9520 = vrsqrt.f32 %v3859_v62  ;;  %v3858_v3 = vmax.f32 %v3856_v63, 0.0  ;;  %v7598_v63 = vld [vmem:[%s11271_s9 + $0x50] sm:$0xff] }
 0xc0a   :  { %v3860_v4 = vadd.f32 1e-05, %v3858_v3  ;;  %v9249_v3 = vpack.c.bf16 %v7603_v60, %v7602_v59 }
 0xc0c   :  { %9522 = vrsqrt.f32 %v3860_v4  ;;  %v7599_v4 = vld [vmem:[%s11271_s9 + $0x58] sm:$0xff] }
 0xc12   :  { %v9521_v5 = vpop.eup %9520 }
 0xc13   :  { %v3866_v6 = vmul.f32 %v9521_v5, %v7558_v37  ;;  %v7610_v37 = vld [vmem:[%s11270_s8 + $0x60] sm:$0xff]  ;;  %v7611_v5 = vld [vmem:[%s11270_s8 + $0x68] sm:$0xff] }
 0xc15   :  { %3877 = vperm.xlu1 %9515, %v3866_v6   ;;  %v3871_v10 = vmul.f32 %v3866_v6, %v3843_v53  ;;  %v7583_v53 = vld [vmem:[%s11271_s9 + $0x38] sm:$0xff] }
 0xc16   :  { %v9523_v11 = vpop.eup %9522 }
 0xc17   :  { %v3873_v12 = vsub.f32 %v7560_v7, %v3871_v10  ;;  %v3867_v13 = vmul.f32 %v9523_v11, %v7559_v8  ;;  %v7606_v8 = vld [vmem:[%s11271_s9 + $0x60] sm:$0xff]  ;;  %v9257_v10 = vpack.c.bf16 %v7611_v5, %v7610_v37  ;;  %v7607_v11 = vld [vmem:[%s11271_s9 + $0x68] sm:$0xff] }
 0xc18   :  { %v7636_v5 = vld [vmem:[%s11272_s10 + $0x20] sm:$0xff] }
 0xc19   :  { %3889 = vperm.xlu1 %9515, %v3873_v12   ;;  %3882 = vperm.xlu0 %9514, %v3867_v13   ;;  %v3872_v15 = vmul.f32 %v3867_v13, %v3844_v1  ;;  %v7618_v12 = vld [vmem:[%s11270_s8 + $0x70] sm:$0xff]  ;;  %v7619_v13 = vld [vmem:[%s11270_s8 + $0x78] sm:$0xff] }
 0xc1b   :  { %v3874_v22 = vsub.f32 %v7561_v14, %v3872_v15 }
 0xc1d   :  { %5427 = vperm.xlu0 %9514, %v5423_v17   ;;  %3894 = vperm.xlu1 %9515, %v3874_v22   ;;  %v7614_v17 = vld [vmem:[%s11271_s9 + $0x70] sm:$0xff]  ;;  %v9265_v22 = vpack.c.bf16 %v7619_v13, %v7618_v12  ;;  %v7637_v12 = vld [vmem:[%s11272_s10 + $0x28] sm:$0xff] }
 0xc21   :  { %5432 = vperm.xlu1 %9515, %v5424_v23   ;;  %v7615_v23 = vld [vmem:[%s11271_s9 + $0x78] sm:$0xff] }
 0xc94   :  { %v3878_v26 = vpop.permute.xlu1 %3877 }
 0xc95   :  { %v3885_v29 = vmul.f32 %v3878_v26, %v10907_v41  ;;  %v7627_v26 = vld [vmem:[%s11270_s8 + $0x88] sm:$0xff] }
 0xc98   :  { %v3883_v27 = vpop.permute.xlu0 %3882  ;;  %v3890_v28 = vpop.permute.xlu1 %3889 }
 0xc99   :  { %v3886_v30 = vmul.f32 %v3883_v27, %v10905_v40  ;;  %v3897_v31 = vadd.f32 %v3890_v28, %v3885_v29  ;;  %v7622_v29 = vld [vmem:[%s11271_s9 + $0x80] sm:$0xff] }
 0xc9c   :  { %v3895_v16 = vpop.permute.xlu1 %3894 }
 0xc9d   :  { %v3898_v2 = vadd.f32 %v3895_v16, %v3886_v30  ;;  %v9273_v30 = vpack.c.bf16 %v7627_v26, %v7626_v25  ;;  %v7623_v16 = vld [vmem:[%s11271_s9 + $0x88] sm:$0xff]  ;;  %v5819_v25 = vld [vmem:[#allocation4 + $0x80] sm:$0xff] }
 0xc9f   :  { %v10949_v19 = vpack.c.bf16 %v3898_v2, %v3897_v31 }
 0xca1   :  { %9206 = vmatprep.subr.bf16.mxu1 %v10949_v19 }
 0xca2   :  { %9208 = vmatpush3.bf16.msra.mxu1 %v10949_v19 }
 0xca3   :  { %9210 = vmatprep.subr.bf16.mxu1 %v10949_v19 }
 0xca5   :  { %8523 = vmatmul.mubr.msk.f32.vlgmr.msra.gmra.mrb[48].mxu1 %vm1867_vm2, %v3900_v32  ;;  %v5433_v32 = vpop.permute.xlu1 %5432 }
 0xca6   :  { %9212 = vmatpush3.bf16.msra.mxu1 %v10949_v19  ;;  %8529 = vmatprep.mubr.msk.f32.mxu1 %vm1867_vm2, %v7564_v33 }
 0xca7   :  { %9214 = vmatprep.subr.bf16.mxu1 %v9213_v36 }
 0xca9   :  { %8530 = vmatmul.mubr.msk.f32.vlgmr.msra.gmra.mrb[50].mxu1 %vm1867_vm2, %v7565_v34  ;;  %v5428_v34 = vpop.permute.xlu0 %5427 }
 0xcaa   :  { %9216 = vmatpush3.bf16.msra.mxu1 %v9213_v36 }
 0xcab   :  { %9218 = vmatprep.subr.bf16.mxu1 %v9217_v39 }
 0xd78   :  { %v8524_v40 = vpop.f32.mrb[48].mxu1 }
 0xd79   :  { %v3973_v41 = vpop.f32.mrb[49].mxu1 }
 0xd7c   :  { %v8531_v42 = vpop.f32.mrb[50].mxu1 }
 0xd7d   :  { %v4059_v44 = vpop.f32.mrb[51].mxu1 }
 0xd7e   :  { %8536 = vmatprep.mubr.msk.f32.mxu1 %vm1867_vm2, %v4059_v44  ;;  %v9530_v44 = vld [vmem:[%s11263_s1 + $0x8] sm:$0xff] }
 0xd7f   :  { %8537 = vmatmul.mubr.msk.f32.vlgmr.msra.gmra.mrb[52].mxu1 %vm1867_vm2, %v8531_v42 }
 0xd80   :  { %9220 = vmatpush3.bf16.msra.mxu1 %v9217_v39  ;;  %8543 = vmatprep.mubr.msk.f32.mxu1 %vm1867_vm2, %v3973_v41 }
 0xd81   :  { %9222 = vmatprep.subr.bf16.mxu1 %v10949_v19 }
 0xd87   :  { %8544 = vmatmul.mubr.msk.f32.vlgmr.msra.gmra.mrb[52].mxu1 %vm1867_vm2, %v8524_v40 }
 0xd88   :  { %9224 = vmatpush3.bf16.msra.mxu1 %v10949_v19  ;;  %8550 = vmatprep.mubr.msk.f32.mxu1 %vm1867_vm2, %v7574_v46 }
 0xd89   :  { %9226 = vmatprep.subr.bf16.mxu1 %v9225_v47 }
 0xd8b   :  { %8551 = vmatmul.mubr.msk.f32.vlgmr.msra.gmra.mrb[54].mxu1 %vm1867_vm2, %v7575_v48 }
 0xd8c   :  { %9228 = vmatpush3.bf16.msra.mxu1 %v9225_v47 }
 0xd8d   :  { %9230 = vmatprep.subr.bf16.mxu1 %v10949_v19 }
 0xe5e   :  { %v8552_v51 = vpop.f32.mrb[54].mxu1 }
 0xe5f   :  { %v4308_v43 = vpop.f32.mrb[55].mxu1 }
 0xe60   :  { %8557 = vmatprep.mubr.msk.f32.mxu1 %vm1867_vm2, %v4308_v43 }
 0xe61   :  { %8558 = vmatmul.mubr.msk.f32.vlgmr.msra.gmra.mrb[52].mxu1 %vm1867_vm2, %v8552_v51 }
 0xe62   :  { %9232 = vmatpush3.bf16.msra.mxu1 %v10949_v19  ;;  %8564 = vmatprep.mubr.msk.f32.mxu1 %vm1867_vm2, %v7582_v52 }
 0xe63   :  { %9234 = vmatprep.subr.bf16.mxu1 %v9233_v56 }
 0xe65   :  { %8565 = vmatmul.mubr.msk.f32.vlgmr.msra.gmra.mrb[56].mxu1 %vm1867_vm2, %v7583_v53 }
 0xe66   :  { %9236 = vmatpush3.bf16.msra.mxu1 %v9233_v56 }
 0xe67   :  { %9238 = vmatprep.subr.bf16.mxu1 %v10949_v19 }
 0xf38   :  { %v8566_v54 = vpop.f32.mrb[56].mxu1 }
 0xf39   :  { %v4478_v1 = vpop.f32.mrb[57].mxu1 }
 0xf3a   :  { %8571 = vmatprep.mubr.msk.f32.mxu1 %vm1867_vm2, %v4478_v1 }
 0xf3b   :  { %8572 = vmatmul.mubr.msk.f32.vlgmr.msra.gmra.mrb[52].mxu1 %vm1867_vm2, %v8566_v54 }
 0xf3c   :  { %9240 = vmatpush3.bf16.msra.mxu1 %v10949_v19  ;;  %8578 = vmatprep.mubr.msk.f32.mxu1 %vm1867_vm2, %v7590_v55 }
 0xf3d   :  { %9242 = vmatprep.subr.bf16.mxu1 %v9241_v9 }
 0xf3f   :  { %8579 = vmatmul.mubr.msk.f32.vlgmr.msra.gmra.mrb[58].mxu1 %vm1867_vm2, %v7591_v58 }
 0xf40   :  { %9244 = vmatpush3.bf16.msra.mxu1 %v9241_v9 }
 0xf41   :  { %9246 = vmatprep.subr.bf16.mxu1 %v10949_v19 }
0x1012   :  { %v8580_v61 = vpop.f32.mrb[58].mxu1 }
0x1013   :  { %v4648_v62 = vpop.f32.mrb[59].mxu1 }
0x1014   :  { %8585 = vmatprep.mubr.msk.f32.mxu1 %vm1867_vm2, %v4648_v62 }
0x1015   :  { %8586 = vmatmul.mubr.msk.f32.vlgmr.msra.gmra.mrb[52].mxu1 %vm1867_vm2, %v8580_v61 }
0x1016   :  { %9248 = vmatpush3.bf16.msra.mxu1 %v10949_v19  ;;  %8592 = vmatprep.mubr.msk.f32.mxu1 %vm1867_vm2, %v7598_v63 }
0x1017   :  { %9250 = vmatprep.subr.bf16.mxu1 %v9249_v3 }
0x1019   :  { %8593 = vmatmul.mubr.msk.f32.vlgmr.msra.gmra.mrb[60].mxu1 %vm1867_vm2, %v7599_v4 }
0x101a   :  { %9252 = vmatpush3.bf16.msra.mxu1 %v9249_v3  ;;  %v7634_v3 = vld [vmem:[%s11272_s10 + $0x10] sm:$0xff] }
0x101b   :  { %9254 = vmatprep.subr.bf16.mxu1 %v10949_v19 }
0x10ec   :  { %v8594_v6 = vpop.f32.mrb[60].mxu1 }
0x10ed   :  { %v4818_v7 = vpop.f32.mrb[61].mxu1 }
0x10ee   :  { %8599 = vmatprep.mubr.msk.f32.mxu1 %vm1867_vm2, %v4818_v7 }
0x10ef   :  { %8600 = vmatmul.mubr.msk.f32.vlgmr.msra.gmra.mrb[52].mxu1 %vm1867_vm2, %v8594_v6  ;;  %v7635_v6 = vld [vmem:[%s11272_s10 + $0x18] sm:$0xff] }
0x10f0   :  { %9256 = vmatpush3.bf16.msra.mxu1 %v10949_v19  ;;  %8606 = vmatprep.mubr.msk.f32.mxu1 %vm1867_vm2, %v7606_v8 }
0x10f1   :  { %9258 = vmatprep.subr.bf16.mxu1 %v9257_v10 }
0x10f3   :  { %8607 = vmatmul.mubr.msk.f32.vlgmr.msra.gmra.mrb[62].mxu1 %vm1867_vm2, %v7607_v11 }
0x10f4   :  { %9260 = vmatpush3.bf16.msra.mxu1 %v9257_v10 }
0x10f5   :  { %9262 = vmatprep.subr.bf16.mxu1 %v10949_v19 }
0x11c6   :  { %v8608_v14 = vpop.f32.mrb[62].mxu1 }
0x11c7   :  { %v4988_v15 = vpop.f32.mrb[63].mxu1 }
0x11c8   :  { %8613 = vmatprep.mubr.msk.f32.mxu1 %vm1867_vm2, %v4988_v15 }
0x11c9   :  { %8614 = vmatmul.mubr.msk.f32.vlgmr.msra.gmra.mrb[52].mxu1 %vm1867_vm2, %v8608_v14  ;;  %v7159_v14 = vld [vmem:[%s11275_s13] sm:$0x3] }
0x11ca   :  { %9264 = vmatpush3.bf16.msra.mxu1 %v10949_v19  ;;  %8620 = vmatprep.mubr.msk.f32.mxu1 %vm1867_vm2, %v7614_v17  ;;  %v9587_v17 = vmov 0.0|0.0  }
0x11cb   :  { %9266 = vmatprep.subr.bf16.mxu1 %v9265_v22 }
0x11cd   :  { %8621 = vmatmul.mubr.msk.f32.vlgmr.msra.gmra.mrb[64].mxu1 %vm1867_vm2, %v7615_v23  ;;  %v5822_v23 = vld [vmem:[#allocation4 + $0x98] sm:$0xff] }
0x11ce   :  { %9268 = vmatpush3.bf16.msra.mxu1 %v9265_v22  ;;  %v5820_v22 = vld [vmem:[#allocation4 + $0x88] sm:$0xff] }
0x11cf   :  { %9270 = vmatprep.subr.bf16.mxu1 %v10949_v19  ;;  %v9291_v26 = vpack.c.bf16 %v5822_v23, %v5820_v22  ;;  %v6059_v22 = vld [vmem:[#allocation4 + $0x100] sm:$0xff]  ;;  %v6061_v23 = vld [vmem:[#allocation4 + $0x110] sm:$0xff] }
0x11d1   :  { %9292 = vmatprep.subr.bf16.mxu0 %v9291_v26  ;;  %v6066_v26 = vld [vmem:[#allocation4 + $0x138] sm:$0xff] }
0x12a0   :  { %v8622_v27 = vpop.f32.mrb[64].mxu1 }
0x12a1   :  { %v5158_v28 = vpop.f32.mrb[65].mxu1 }
0x12a2   :  { %8627 = vmatprep.mubr.msk.f32.mxu1 %vm1867_vm2, %v5158_v28 }
0x12a3   :  { %8628 = vmatmul.mubr.msk.f32.vlgmr.msra.gmra.mrb[52].mxu1 %vm1867_vm2, %v8622_v27  ;;  %v5821_v27 = vld [vmem:[#allocation4 + $0x90] sm:$0xff] }
0x12a4   :  { %9272 = vmatpush3.bf16.msra.mxu1 %v10949_v19  ;;  %8634 = vmatprep.mubr.msk.f32.mxu1 %vm1867_vm2, %v7622_v29  ;;  %v9529_v19 = vld [vmem:[%s11263_s1] sm:$0xff]  ;;  %v9293_v28 = vpack.c.bf16 %v5821_v27, %v5819_v25  ;;  %v5824_v29 = vld [vmem:[#allocation4 + $0xa8] sm:$0xff]  ;;  %v9328_v27 = vpack.c.bf16 %v6061_v23, %v6059_v22 }
0x12a5   :  { %9274 = vmatprep.subr.bf16.mxu1 %v9273_v30  ;;  %v6064_v25 = vld [vmem:[#allocation4 + $0x128] sm:$0xff] }
0x12a6   :  { %9294 = vmatpush1.bf16.msra.mxu0 %v9293_v28  ;;  %v9330_v28 = vpack.c.bf16 %v6066_v26, %v6064_v25 }
0x12a7   :  { %8635 = vmatmul.mubr.msk.f32.vlgmr.msra.gmra.mrb[66].mxu1 %vm1867_vm2, %v7623_v16  ;;  %v5823_v16 = vld [vmem:[#allocation4 + $0xa0] sm:$0xff] }
0x12a8   :  { %9276 = vmatpush3.bf16.msra.mxu1 %v9273_v30  ;;  %v5826_v30 = vld [vmem:[#allocation4 + $0xb8] sm:$0xff] }
0x137a   :  { %v8636_v31 = vpop.f32.mrb[66].mxu1 }
0x137b   :  { %v5328_v2 = vpop.f32.mrb[67].mxu1 }
0x137c   :  { %8641 = vmatprep.mubr.msk.f32.mxu1 %vm1867_vm2, %v5328_v2  ;;  %v9295_v2 = vpack.c.bf16 %v5826_v30, %v5824_v29  ;;  %v6063_v30 = vld [vmem:[#allocation4 + $0x120] sm:$0xff] }
0x137d   :  { %8642 = vmatmul.mubr.msk.f32.vlgmr.msra.gmra.mrb[52].mxu1 %vm1867_vm2, %v8636_v31  ;;  %v5825_v31 = vld [vmem:[#allocation4 + $0xb0] sm:$0xff] }
0x137e   :  { %8648 = vmatprep.mubr.msk.f32.mxu1 %vm1867_vm2, %v9529_v19  ;;  %9296 = vmatprep.subr.bf16.mxu0 %v9295_v2  ;;  %v6068_v2 = vld [vmem:[#allocation4 + $0x148] sm:$0xff] }
0x1450   :  { %v8643_v33 = vpop.f32.mrb[52].mxu1 }
0x1451   :  { %v5436_v18 = vadd.f32 %v8643_v33, %v5433_v32  ;;  %v5412_v35 = vpop.f32.mrb[53].mxu1  ;;  %v5828_v32 = vld [vmem:[#allocation4 + $0xc8] sm:$0xff]  ;;  %v5830_v33 = vld [vmem:[#allocation4 + $0xd8] sm:$0xff] }
0x1452   :  { %v5435_v36 = vadd.f32 %v5428_v34, %v5412_v35  ;;  %v9299_v34 = vpack.c.bf16 %v5830_v33, %v5828_v32  ;;  %v5829_v35 = vld [vmem:[#allocation4 + $0xd0] sm:$0xff] }
0x1453   :  { %v11113_v38 = vmax.f32 %v5436_v18, 0.0  ;;  %v5827_v18 = vld [vmem:[#allocation4 + $0xc0] sm:$0xff] }
0x1454   :  { %v11115_v21 = vmax.f32 %v5435_v36, 0.0  ;;  %v9301_v36 = vpack.c.bf16 %v5829_v35, %v5827_v18  ;;  %v6067_v18 = vld [vmem:[#allocation4 + $0x140] sm:$0xff]  ;;  %v6069_v35 = vld [vmem:[#allocation4 + $0x150] sm:$0xff] }
0x1455   :  { %v5515_v39 = vmul.f32 %v11113_v38, %v11113_v38 }
0x1456   :  { %v5514_v40 = vmul.f32 %v11115_v21, %v11115_v21  ;;  %v9277_v41 = vpack.c.bf16 %v11113_v38, %v11115_v21 }
0x1458   :  { %9278 = vmatprep.subr.bf16.mxu1 %v9277_v41  ;;  %v9281_v42 = vpack.c.bf16 %v5515_v39, %v5514_v40  ;;  %v5832_v39 = vld [vmem:[#allocation4 + $0xe8] sm:$0xff]  ;;  %v5834_v40 = vld [vmem:[#allocation4 + $0xf8] sm:$0xff] }
0x1459   :  { %9280 = vmatpush3.bf16.msra.mxu1 %v9277_v41  ;;  %v5831_v41 = vld [vmem:[#allocation4 + $0xe0] sm:$0xff] }
0x145a   :  { %9282 = vmatprep.subr.bf16.mxu1 %v9281_v42 }
0x145c   :  { %8649 = vmatmul.mubr.msk.f32.vlgmr.msra.gmra.mrb[68].mxu1 %vm1867_vm2, %v9530_v44 }
0x145d   :  { %9284 = vmatpush3.bf16.msra.mxu1 %v9281_v42  ;;  %8655 = vmatprep.mubr.msk.f32.mxu1 %vm1867_vm2, %v9529_v19  ;;  %v9297_v19 = vpack.c.bf16 %v5825_v31, %v5823_v16  ;;  %v9303_v42 = vpack.c.bf16 %v5834_v40, %v5832_v39  ;;  %v6065_v16 = vld [vmem:[#allocation4 + $0x130] sm:$0xff]  ;;  %v6072_v39 = vld [vmem:[#allocation4 + $0x168] sm:$0xff]  ;;  %v6074_v40 = vld [vmem:[#allocation4 + $0x178] sm:$0xff] }
0x145e   :  { %9285 = vmatprep.subr.bf16.mxu1 %v9587_v17  ;;  %v9332_v32 = vpack.c.bf16 %v6065_v16, %v6063_v30  ;;  %v6402_v30 = vld [vmem:[#allocation4 + $0x238] sm:$0xff] }
0x145f   :  { %9298 = vmatpush1.bf16.msra.mxu0 %v9297_v19  ;;  %v6070_v19 = vld [vmem:[#allocation4 + $0x158] sm:$0xff] }
0x1460   :  { %8656 = vmatmul.mubr.msk.f32.vlgmr.msra.gmra.mrb[70].mxu1 %vm1867_vm2, %v9530_v44  ;;  %9300 = vmatprep.subr.bf16.mxu0 %v9299_v34  ;;  %v5833_v44 = vld [vmem:[#allocation4 + $0xf0] sm:$0xff]  ;;  %v9334_v34 = vpack.c.bf16 %v6070_v19, %v6068_v2 }
0x1461   :  { %8662 = vmatprep.mubr.msk.f32.mxu1 %vm9588_vm4, %v9585_v0 }
0x1463   :  { %9302 = vmatpush1.bf16.msra.mxu0 %v9301_v36 }
0x1464   :  { %9304 = vmatprep.subr.bf16.mxu0 %v9303_v42  ;;  %v9336_v42 = vpack.c.bf16 %v6069_v35, %v6067_v18  ;;  %v6406_v18 = vld [vmem:[#allocation4 + $0x258] sm:$0xff] }
0x152f   :  { %v8650_v20 = vpop.f32.mrb[68].mxu1 }
0x1530   :  { %v5505_v45 = vpop.f32.mrb[69].mxu1  ;;  %v5594_v46 = vsel %vm2026_vm3, %v8650_v20, 0.0  ;;  %v9305_v20 = vpack.c.bf16 %v5833_v44, %v5831_v41  ;;  %v7643_v41 = vld [vmem:[%s11274_s12 + $0x4] sm:$0x3]  ;;  %v9338_v44 = vpack.c.bf16 %v6074_v40, %v6072_v39 }
0x1531   :  { %v5591_v47 = vsel %vm2026_vm3, %v5505_v45, 0.0  ;;  %5595 = vadd.xlane.f32.xlu1 %v5594_v46 }
0x1532   :  { %5592 = vadd.xlane.f32.xlu0 %v5591_v47  ;;  %9306 = vmatpush1.bf16.msra.mxu0 %v9305_v20  ;;  %v6071_v20 = vld [vmem:[#allocation4 + $0x160] sm:$0xff] }
0x1533   :  { %v8657_v48 = vpop.f32.mrb[70].mxu1  ;;  %9323 = vmatprep.subr.bf16.mxu0 %v9587_v17 }
0x1534   :  { %v5582_v49 = vpop.f32.mrb[71].mxu1  ;;  %v5602_v51 = vsel %vm2026_vm3, %v8657_v48, 0.0 }
0x1535   :  { %v5599_v50 = vsel %vm2026_vm3, %v5582_v49, 0.0 }
0x1536   :  { %5600 = vadd.xlane.f32.xlu0 %v5599_v50 }
0x153a   :  { %5603 = vadd.xlane.f32.xlu0 %v5602_v51 }
0x15be   :  { %v5596_v56 = vpop.xlane.xlu1 %5595 }
0x15bf   :  { %v5593_v43 = vpop.xlane.xlu0 %5592  ;;  %v5598_v24 = vmul.f32 0.0078125, %v5596_v56  ;;  %v5728_v56 = vld [vmem:[#allocation4 + $0x8] sm:$0xff] }
0x15c0   :  { %v5597_v52 = vmul.f32 0.0078125, %v5593_v43 }
0x15c1   :  { %v5608_v9 = vmul.f32 %v5598_v24, %v5598_v24 }
0x15c2   :  { %v5607_v57 = vmul.f32 %v5597_v52, %v5597_v52 }
0x15c3   :  { %v5601_v53 = vpop.xlane.xlu0 %5600 }
0x15c4   :  { %v5605_v54 = vmul.f32 0.0078125, %v5601_v53  ;;  %v5730_v53 = vld [vmem:[#allocation4 + $0x18] sm:$0xff] }
0x15c6   :  { %v5609_v1 = vsub.f32 %v5605_v54, %v5607_v57  ;;  %v5653_v57 = vld [vmem:[%s11274_s12] sm:$0x3] }
0x15c7   :  { %v5604_v55 = vpop.xlane.xlu0 %5603  ;;  %v5727_v54 = vld [vmem:[#allocation4] sm:$0xff] }
0x15c8   :  { %v5611_v58 = vmax.f32 %v5609_v1, 0.0  ;;  %v5606_v59 = vmul.f32 0.0078125, %v5604_v55  ;;  %v5732_v1 = vld [vmem:[#allocation4 + $0x28] sm:$0xff]  ;;  %v7639_v55 = vld [vmem:[%s11274_s12 + $0x2] sm:$0x3] }
0x15ca   :  { %v5613_v60 = vadd.f32 1e-05, %v5611_v58  ;;  %v5610_v61 = vsub.f32 %v5606_v59, %v5608_v9  ;;  %v5731_v59 = vld [vmem:[#allocation4 + $0x20] sm:$0xff] }
0x15cc   :  { %9524 = vrsqrt.f32 %v5613_v60  ;;  %v5612_v62 = vmax.f32 %v5610_v61, 0.0  ;;  %v5733_v60 = vld [vmem:[#allocation4 + $0x30] sm:$0xff]  ;;  %v5736_v61 = vld [vmem:[#allocation4 + $0x48] sm:$0xff] }
0x15ce   :  { %v5614_v63 = vadd.f32 1e-05, %v5612_v62  ;;  %v5738_v62 = vld [vmem:[#allocation4 + $0x58] sm:$0xff] }
0x15d0   :  { %9526 = vrsqrt.f32 %v5614_v63  ;;  %v9313_v63 = vpack.c.bf16 %v5733_v60, %v5731_v59  ;;  %v6236_v60 = vld [vmem:[#allocation4 + $0x1c8] sm:$0xff] }
0x15d6   :  { %v9525_v4 = vpop.eup %9524 }
0x15d7   :  { %v5620_v37 = vmul.f32 %v9525_v4, %v7634_v3  ;;  %v9315_v3 = vpack.c.bf16 %v5738_v62, %v5736_v61  ;;  %v5735_v4 = vld [vmem:[#allocation4 + $0x40] sm:$0xff]  ;;  %v6238_v61 = vld [vmem:[#allocation4 + $0x1d8] sm:$0xff] }
0x15d9   :  { %5631 = vperm.xlu1 %9515, %v5620_v37   ;;  %v5625_v7 = vmul.f32 %v5620_v37, %v5597_v52  ;;  %v5737_v37 = vld [vmem:[#allocation4 + $0x50] sm:$0xff] }
0x15da   :  { %v9527_v8 = vpop.eup %9526 }
0x15db   :  { %v5627_v10 = vsub.f32 %v7636_v5, %v5625_v7  ;;  %v5621_v11 = vmul.f32 %v9527_v8, %v7635_v6  ;;  %v9317_v5 = vpack.c.bf16 %v5737_v37, %v5735_v4  ;;  %v5740_v6 = vld [vmem:[#allocation4 + $0x68] sm:$0xff]  ;;  %v5742_v7 = vld [vmem:[#allocation4 + $0x78] sm:$0xff]  ;;  %v6235_v4 = vld [vmem:[#allocation4 + $0x1c0] sm:$0xff] }
0x15dc   :  { %v9319_v8 = vpack.c.bf16 %v5742_v7, %v5740_v6  ;;  %v6237_v37 = vld [vmem:[#allocation4 + $0x1d0] sm:$0xff]  ;;  %v6242_v6 = vld [vmem:[#allocation4 + $0x1f8] sm:$0xff] }
0x15dd   :  { %5643 = vperm.xlu1 %9515, %v5627_v10   ;;  %5636 = vperm.xlu0 %9514, %v5621_v11   ;;  %v5626_v13 = vmul.f32 %v5621_v11, %v5598_v24  ;;  %v9307_v24 = vpack.c.bf16 %v5730_v53, %v5728_v56  ;;  %v5739_v10 = vld [vmem:[#allocation4 + $0x60] sm:$0xff]  ;;  %v5741_v11 = vld [vmem:[#allocation4 + $0x70] sm:$0xff]  ;;  %v6228_v56 = vld [vmem:[#allocation4 + $0x188] sm:$0xff] }
0x15de   :  { %v6230_v53 = vld [vmem:[#allocation4 + $0x198] sm:$0xff] }
0x15df   :  { %v5628_v15 = vsub.f32 %v7637_v12, %v5626_v13  ;;  %v9321_v12 = vpack.c.bf16 %v5741_v11, %v5739_v10  ;;  %v6060_v13 = vld [vmem:[#allocation4 + $0x108] sm:$0xff]  ;;  %v9355_v10 = vpack.c.bf16 %v6237_v37, %v6235_v4  ;;  %v6573_v4 = vld [vmem:[#allocation4 + $0x2d0] sm:$0xff] }
0x15e0   :  { %v6576_v37 = vld [vmem:[#allocation4 + $0x2e8] sm:$0xff] }
0x15e1   :  { %7162 = vperm.xlu0 %9514, %v7159_v14   ;;  %5648 = vperm.xlu1 %9515, %v5628_v15   ;;  %v6062_v14 = vld [vmem:[#allocation4 + $0x118] sm:$0xff] }
0x15e2   :  { %v9326_v15 = vpack.c.bf16 %v6062_v14, %v6060_v13  ;;  %v6241_v13 = vld [vmem:[#allocation4 + $0x1f0] sm:$0xff]  ;;  %v6396_v14 = vld [vmem:[#allocation4 + $0x208] sm:$0xff] }
0x1658   :  { %v5632_v45 = vpop.permute.xlu1 %5631 }
0x1659   :  { %v5639_v48 = vmul.f32 %v5632_v45, %v11115_v21  ;;  %v5729_v21 = vld [vmem:[#allocation4 + $0x10] sm:$0xff] }
0x165a   :  { %v9309_v9 = vpack.c.bf16 %v5729_v21, %v5727_v54  ;;  %v6073_v45 = vld [vmem:[#allocation4 + $0x170] sm:$0xff]  ;;  %v6232_v21 = vld [vmem:[#allocation4 + $0x1a8] sm:$0xff] }
0x165b   :  { %v6229_v54 = vld [vmem:[#allocation4 + $0x190] sm:$0xff] }
0x165c   :  { %v5644_v46 = vpop.permute.xlu1 %5643  ;;  %v5637_v47 = vpop.permute.xlu0 %5636 }
0x165d   :  { %v5640_v49 = vmul.f32 %v5637_v47, %v11113_v38  ;;  %v5651_v51 = vadd.f32 %v5644_v46, %v5639_v48  ;;  %v5734_v38 = vld [vmem:[#allocation4 + $0x38] sm:$0xff]  ;;  %v7646_v46 = vld [vmem:[%s11274_s12 + $0x6] sm:$0x3]  ;;  %v9340_v47 = vpack.c.bf16 %v6073_v45, %v6071_v20  ;;  %v7649_v48 = vld [vmem:[%s11274_s12 + $0x8] sm:$0x3] }
0x165e   :  { %v9311_v58 = vpack.c.bf16 %v5734_v38, %v5732_v1  ;;  %v6234_v1 = vld [vmem:[#allocation4 + $0x1b8] sm:$0xff] }
0x165f   :  { %v6410_v20 = vld [vmem:[#allocation4 + $0x278] sm:$0xff] }
0x1660   :  { %v5649_v50 = vpop.permute.xlu1 %5648 }
0x1661   :  { %v5652_v43 = vadd.f32 %v5649_v50, %v5640_v49  ;;  %v7652_v49 = vld [vmem:[%s11274_s12 + $0xa] sm:$0x3]  ;;  %v7655_v50 = vld [vmem:[%s11274_s12 + $0xc] sm:$0x3] }
0x1663   :  { %v11154_v52 = vpack.c.bf16 %v5652_v43, %v5651_v51  ;;  %v7658_v51 = vld [vmem:[%s11274_s12 + $0xe] sm:$0x3]  ;;  %v7661_v43 = vld [vmem:[%s11274_s12 + $0x10] sm:$0x3] }
0x1665   :  { %9287 = vmatpush3.bf16.msra.mxu1 %v11154_v52 }
0x1666   :  { %9288 = vmatprep.subr.bf16.mxu1 %v9587_v17 }
0x1668   :  { %8663 = vmatmul.mubr.msk.f32.vlgmr.msra.gmra.mrb[72].mxu1 %vm1867_vm2, %v5653_v57  ;;  %v9345_v57 = vpack.c.bf16 %v6230_v53, %v6228_v56 }
0x1669   :  { %9290 = vmatpush3.bf16.msra.mxu1 %v11154_v52  ;;  %8669 = vmatprep.mubr.msk.f32.mxu1 %vm9588_vm4, %v9585_v0 }
0x166a   :  { %9308 = vmatprep.subr.bf16.mxu1 %v9307_v24  ;;  %v6227_v24 = vld [vmem:[#allocation4 + $0x180] sm:$0xff] }
0x166b   :  { %v9347_v38 = vpack.c.bf16 %v6229_v54, %v6227_v24  ;;  %v6563_v54 = vld [vmem:[#allocation4 + $0x280] sm:$0xff] }
0x166c   :  { %8670 = vmatmul.mubr.msk.f32.vlgmr.msra.gmra.mrb[74].mxu1 %vm1867_vm2, %v7639_v55  ;;  %v9349_v55 = vpack.c.bf16 %v6234_v1, %v6232_v21  ;;  %v6565_v21 = vld [vmem:[#allocation4 + $0x290] sm:$0xff]  ;;  %v6568_v1 = vld [vmem:[#allocation4 + $0x2a8] sm:$0xff] }
0x166d   :  { %9310 = vmatpush1.bf16.msra.mxu1 %v9309_v9  ;;  %5976 = vmatprep.mubr.f32.mxu1 %v9585_v0  ;;  %v6231_v9 = vld [vmem:[#allocation4 + $0x1a0] sm:$0xff] }
0x166e   :  { %9312 = vmatprep.subr.bf16.mxu1 %v9311_v58  ;;  %v6233_v58 = vld [vmem:[#allocation4 + $0x1b0] sm:$0xff] }
0x1671   :  { %9314 = vmatpush1.bf16.msra.mxu1 %v9313_v63  ;;  %v9351_v63 = vpack.c.bf16 %v6233_v58, %v6231_v9  ;;  %v6567_v58 = vld [vmem:[#allocation4 + $0x2a0] sm:$0xff] }
0x1672   :  { %9316 = vmatprep.subr.bf16.mxu1 %v9315_v3  ;;  %v9353_v3 = vpack.c.bf16 %v6238_v61, %v6236_v60  ;;  %v6572_v60 = vld [vmem:[#allocation4 + $0x2c8] sm:$0xff]  ;;  %v6574_v61 = vld [vmem:[#allocation4 + $0x2d8] sm:$0xff] }
0x1675   :  { %9318 = vmatpush1.bf16.msra.mxu1 %v9317_v5  ;;  %v6240_v5 = vld [vmem:[#allocation4 + $0x1e8] sm:$0xff] }
0x1676   :  { %9320 = vmatprep.subr.bf16.mxu1 %v9319_v8  ;;  %v9357_v11 = vpack.c.bf16 %v6242_v6, %v6240_v5  ;;  %v6578_v5 = vld [vmem:[#allocation4 + $0x2f8] sm:$0xff] }
0x1679   :  { %9322 = vmatpush1.bf16.msra.mxu1 %v9321_v12  ;;  %v6239_v12 = vld [vmem:[#allocation4 + $0x1e0] sm:$0xff] }
0x167a   :  { %9327 = vmatprep.subr.bf16.mxu1 %v9326_v15  ;;  %v6398_v15 = vld [vmem:[#allocation4 + $0x218] sm:$0xff]  ;;  %v9359_v25 = vpack.c.bf16 %v6241_v13, %v6239_v12 }
0x167b   :  { %v9364_v26 = vpack.c.bf16 %v6398_v15, %v6396_v14  ;;  %v6734_v12 = vld [vmem:[#allocation4 + $0x318] sm:$0xff]  ;;  %v6731_v15 = vld [vmem:[#allocation4 + $0x300] sm:$0xff] }
0x173b   :  { %v5723_v29 = vpop.f32.mrb[72].mxu1 }
0x173c   :  { %v8664_v31 = vpop.f32.mrb[73].mxu1  ;;  %7642 = vmatmul.mubr.msk.f32.vlgmr.msra.gmra.mrb[76].mxu1 %vm2026_vm3, %v5723_v29  ;;  %v6400_v29 = vld [vmem:[#allocation4 + $0x228] sm:$0xff] }
0x173d   :  { %9329 = vmatpush1.bf16.msra.mxu1 %v9328_v27  ;;  %6142 = vmatprep.mubr.f32.mxu1 %v9585_v0  ;;  %v6395_v27 = vld [vmem:[#allocation4 + $0x200] sm:$0xff]  ;;  %v9368_v19 = vpack.c.bf16 %v6402_v30, %v6400_v29  ;;  %v6737_v29 = vld [vmem:[#allocation4 + $0x330] sm:$0xff]  ;;  %v6740_v30 = vld [vmem:[#allocation4 + $0x348] sm:$0xff] }
0x173e   :  { %9331 = vmatprep.subr.bf16.mxu1 %v9330_v28  ;;  %v6397_v28 = vld [vmem:[#allocation4 + $0x210] sm:$0xff] }
0x173f   :  { %v5814_v33 = vpop.f32.mrb[74].mxu1  ;;  %v9366_v2 = vpack.c.bf16 %v6397_v28, %v6395_v27  ;;  %v6735_v28 = vld [vmem:[#allocation4 + $0x320] sm:$0xff] }
0x1740   :  { %7641 = vmatmul.mubr.msk.f32.vlgmr.msra.gmra.mrb[52].mxu0 %vm2026_vm3, %v5814_v33  ;;  %v8671_v36 = vpop.f32.mrb[75].mxu1  ;;  %v6401_v33 = vld [vmem:[#allocation4 + $0x230] sm:$0xff] }
0x1741   :  { %9325 = vmatpush3.bf16.msra.mxu0 %v11154_v52  ;;  %8676 = vmatprep.mubr.msk.f32.mxu0 %vm9588_vm4, %v9585_v0 }
0x1742   :  { %9342 = vmatprep.subr.bf16.mxu0 %v9587_v17  ;;  %9333 = vmatpush1.bf16.msra.mxu1 %v9332_v32  ;;  %v6399_v32 = vld [vmem:[#allocation4 + $0x220] sm:$0xff] }
0x1743   :  { %9335 = vmatprep.subr.bf16.mxu1 %v9334_v34  ;;  %v6404_v34 = vld [vmem:[#allocation4 + $0x248] sm:$0xff]  ;;  %v9370_v39 = vpack.c.bf16 %v6401_v33, %v6399_v32  ;;  %v6739_v32 = vld [vmem:[#allocation4 + $0x340] sm:$0xff]  ;;  %v6741_v33 = vld [vmem:[#allocation4 + $0x350] sm:$0xff] }
0x1744   :  { %8677 = vmatmul.mubr.msk.f32.vlgmr.msra.gmra.mrb[54].mxu0 %vm1867_vm2, %v7643_v41  ;;  %v9372_v40 = vpack.c.bf16 %v6406_v18, %v6404_v34  ;;  %v6403_v41 = vld [vmem:[#allocation4 + $0x240] sm:$0xff]  ;;  %v6744_v34 = vld [vmem:[#allocation4 + $0x368] sm:$0xff]  ;;  %v6746_v18 = vld [vmem:[#allocation4 + $0x378] sm:$0xff] }
0x1745   :  { %9344 = vmatpush3.bf16.msra.mxu0 %v11154_v52  ;;  %8683 = vmatprep.mubr.msk.f32.mxu0 %vm9588_vm4, %v9585_v0 }
0x1746   :  { %9361 = vmatprep.subr.bf16.mxu0 %v9587_v17  ;;  %9337 = vmatpush1.bf16.msra.mxu1 %v9336_v42  ;;  %v6405_v42 = vld [vmem:[#allocation4 + $0x250] sm:$0xff] }
0x1747   :  { %9339 = vmatprep.subr.bf16.mxu1 %v9338_v44  ;;  %v6408_v44 = vld [vmem:[#allocation4 + $0x268] sm:$0xff] }
0x1748   :  { %8684 = vmatmul.mubr.msk.f32.vlgmr.msra.gmra.mrb[56].mxu0 %vm1867_vm2, %v7646_v46 }
0x1749   :  { %9363 = vmatpush3.bf16.msra.mxu0 %v11154_v52  ;;  %8690 = vmatprep.mubr.msk.f32.mxu0 %vm9588_vm4, %v9585_v0 }
0x174a   :  { %9380 = vmatprep.subr.bf16.mxu0 %v9587_v17  ;;  %9341 = vmatpush1.bf16.msra.mxu1 %v9340_v47  ;;  %v9374_v47 = vpack.c.bf16 %v6405_v42, %v6403_v41  ;;  %v6745_v41 = vld [vmem:[#allocation4 + $0x370] sm:$0xff]  ;;  %v6900_v42 = vld [vmem:[#allocation4 + $0x388] sm:$0xff] }
0x174b   :  { %9346 = vmatprep.subr.bf16.mxu1 %v9345_v57 }
0x174c   :  { %8691 = vmatmul.mubr.msk.f32.vlgmr.msra.gmra.mrb[58].mxu0 %vm1867_vm2, %v7649_v48  ;;  %v9376_v48 = vpack.c.bf16 %v6410_v20, %v6408_v44  ;;  %v6902_v44 = vld [vmem:[#allocation4 + $0x398] sm:$0xff] }
0x174d   :  { %9382 = vmatpush3.bf16.msra.mxu0 %v11154_v52  ;;  %8697 = vmatprep.mubr.msk.f32.mxu0 %vm9588_vm4, %v9585_v0  ;;  %v9421_v20 = vpack.c.bf16 %v6902_v44, %v6900_v42 }
0x174e   :  { %9399 = vmatprep.subr.bf16.mxu0 %v9587_v17 }
0x1750   :  { %8698 = vmatmul.mubr.msk.f32.vlgmr.msra.gmra.mrb[60].mxu0 %vm1867_vm2, %v7652_v49  ;;  %v6407_v49 = vld [vmem:[#allocation4 + $0x260] sm:$0xff] }
0x1751   :  { %9401 = vmatpush3.bf16.msra.mxu0 %v11154_v52  ;;  %8704 = vmatprep.mubr.msk.f32.mxu0 %vm9588_vm4, %v9585_v0 }
0x1752   :  { %9418 = vmatprep.subr.bf16.mxu0 %v9587_v17 }
0x1754   :  { %8705 = vmatmul.mubr.msk.f32.vlgmr.msra.gmra.mrb[62].mxu0 %vm1867_vm2, %v7655_v50  ;;  %v6409_v50 = vld [vmem:[#allocation4 + $0x270] sm:$0xff] }
0x1755   :  { %9420 = vmatpush3.bf16.msra.mxu0 %v11154_v52  ;;  %8711 = vmatprep.mubr.msk.f32.mxu0 %vm9588_vm4, %v9585_v0  ;;  %v9378_v57 = vpack.c.bf16 %v6409_v50, %v6407_v49  ;;  %v6906_v49 = vld [vmem:[#allocation4 + $0x3b8] sm:$0xff] }
0x1756   :  { %9437 = vmatprep.subr.bf16.mxu0 %v9587_v17 }
0x1758   :  { %8712 = vmatmul.mubr.msk.f32.vlgmr.msra.gmra.mrb[64].mxu0 %vm1867_vm2, %v7658_v51  ;;  %v6564_v51 = vld [vmem:[#allocation4 + $0x288] sm:$0xff] }
0x1759   :  { %9439 = vmatpush3.bf16.msra.mxu0 %v11154_v52  ;;  %8718 = vmatprep.mubr.msk.f32.mxu0 %vm9588_vm4, %v9585_v0 }
0x175c   :  { %8719 = vmatmul.mubr.msk.f32.vlgmr.msra.gmra.mrb[66].mxu0 %vm1867_vm2, %v7661_v43  ;;  %v6566_v43 = vld [vmem:[#allocation4 + $0x298] sm:$0xff] }
0x175d   :  { %v9383_v24 = vpack.c.bf16 %v6566_v43, %v6564_v51  ;;  %v6903_v43 = vld [vmem:[#allocation4 + $0x3a0] sm:$0xff] }
0x1813   :  { %v11228_v17 = vpop.f32.mrb[52].mxu0 }
0x1814   :  { %v11230_v52 = vpop.f32.mrb[53].mxu0 }
0x1817   :  { %v6054_v59 = vpop.f32.mrb[54].mxu0 }
0x1818   :  { %7645 = vmatmul.mubr.msk.f32.vlgmr.msra.gmra.mrb[76].mxu1 %vm2026_vm3, %v6054_v59  ;;  %v8678_v62 = vpop.f32.mrb[55].mxu0  ;;  %v6569_v59 = vld [vmem:[#allocation4 + $0x2b0] sm:$0xff] }
0x1819   :  { %9348 = vmatpush1.bf16.msra.mxu1 %v9347_v38  ;;  %6310 = vmatprep.mubr.f32.mxu1 %v9585_v0  ;;  %v6570_v38 = vld [vmem:[#allocation4 + $0x2b8] sm:$0xff]  ;;  %v9389_v62 = vpack.c.bf16 %v6569_v59, %v6567_v58 }
0x181a   :  { %9350 = vmatprep.subr.bf16.mxu1 %v9349_v55  ;;  %v9385_v55 = vpack.c.bf16 %v6565_v21, %v6563_v54  ;;  %v9387_v9 = vpack.c.bf16 %v6570_v38, %v6568_v1  ;;  %v6907_v1 = vld [vmem:[#allocation4 + $0x3c0] sm:$0xff]  ;;  %v6909_v38 = vld [vmem:[#allocation4 + $0x3d0] sm:$0xff] }
0x181b   :  { %v6222_v7 = vpop.f32.mrb[56].mxu0  ;;  %v9431_v58 = vpack.c.bf16 %v6909_v38, %v6907_v1 }
0x181c   :  { %v8685_v8 = vpop.f32.mrb[57].mxu0 }
0x181d   :  { %9352 = vmatpush1.bf16.msra.mxu1 %v9351_v63  ;;  %v9391_v63 = vpack.c.bf16 %v6574_v61, %v6572_v60  ;;  %v6575_v8 = vld [vmem:[#allocation4 + $0x2e0] sm:$0xff]  ;;  %v6913_v61 = vld [vmem:[#allocation4 + $0x3f0] sm:$0xff] }
0x181e   :  { %9354 = vmatprep.subr.bf16.mxu1 %v9353_v3  ;;  %v6571_v3 = vld [vmem:[#allocation4 + $0x2c0] sm:$0xff] }
0x181f   :  { %v6390_v22 = vpop.f32.mrb[58].mxu0  ;;  %v9393_v6 = vpack.c.bf16 %v6573_v4, %v6571_v3  ;;  %v6911_v60 = vld [vmem:[#allocation4 + $0x3e0] sm:$0xff] }
0x1820   :  { %v8692_v23 = vpop.f32.mrb[59].mxu0  ;;  %v7067_v4 = vld [vmem:[#allocation4 + $0x400] sm:$0xff] }
0x1821   :  { %9356 = vmatpush1.bf16.msra.mxu1 %v9355_v10  ;;  %v6577_v10 = vld [vmem:[#allocation4 + $0x2f0] sm:$0xff]  ;;  %v6736_v23 = vld [vmem:[#allocation4 + $0x328] sm:$0xff] }
0x1822   :  { %9358 = vmatprep.subr.bf16.mxu1 %v9357_v11  ;;  %v6732_v11 = vld [vmem:[#allocation4 + $0x308] sm:$0xff]  ;;  %v9397_v13 = vpack.c.bf16 %v6577_v10, %v6575_v8  ;;  %v7071_v10 = vld [vmem:[#allocation4 + $0x420] sm:$0xff] }
0x1823   :  { %v11234_v16 = vpop.f32.mrb[60].mxu0  ;;  %v9402_v14 = vpack.c.bf16 %v6734_v12, %v6732_v11  ;;  %v7073_v11 = vld [vmem:[#allocation4 + $0x430] sm:$0xff]  ;;  %v7076_v12 = vld [vmem:[#allocation4 + $0x448] sm:$0xff] }
0x1824   :  { %v8699_v31 = vpop.f32.mrb[61].mxu0 }
0x1825   :  { %9360 = vmatpush1.bf16.msra.mxu1 %v9359_v25  ;;  %v6738_v25 = vld [vmem:[#allocation4 + $0x338] sm:$0xff] }
0x1826   :  { %9365 = vmatprep.subr.bf16.mxu1 %v9364_v26  ;;  %v9406_v27 = vpack.c.bf16 %v6738_v25, %v6736_v23  ;;  %v6742_v31 = vld [vmem:[#allocation4 + $0x358] sm:$0xff]  ;;  %v7077_v23 = vld [vmem:[#allocation4 + $0x450] sm:$0xff]  ;;  %v7080_v25 = vld [vmem:[#allocation4 + $0x468] sm:$0xff] }
0x1827   :  { %v11236_v35 = vpop.f32.mrb[62].mxu0 }
0x1828   :  { %7648 = vmatmul.mubr.msk.f32.vlgmr.msra.gmra.mrb[76].mxu1 %vm2026_vm3, %v6222_v7  ;;  %v8706_v36 = vpop.f32.mrb[63].mxu0  ;;  %v9395_v7 = vpack.c.bf16 %v6578_v5, %v6576_v37  ;;  %v7069_v37 = vld [vmem:[#allocation4 + $0x410] sm:$0xff]  ;;  %v7072_v5 = vld [vmem:[#allocation4 + $0x428] sm:$0xff] }
0x1829   :  { %9367 = vmatpush1.bf16.msra.mxu1 %v9366_v2  ;;  %6478 = vmatprep.mubr.f32.mxu1 %v9585_v0  ;;  %v9408_v2 = vpack.c.bf16 %v6737_v29, %v6735_v28  ;;  %v9412_v36 = vpack.c.bf16 %v6741_v33, %v6739_v32  ;;  %v7079_v29 = vld [vmem:[#allocation4 + $0x460] sm:$0xff] }
0x182a   :  { %9369 = vmatprep.subr.bf16.mxu1 %v9368_v19  ;;  %v9410_v19 = vpack.c.bf16 %v6742_v31, %v6740_v30  ;;  %v7081_v30 = vld [vmem:[#allocation4 + $0x470] sm:$0xff] }
0x182b   :  { %v11240_v45 = vpop.f32.mrb[64].mxu0  ;;  %v9454_v31 = vpack.c.bf16 %v7081_v30, %v7079_v29 }
0x182c   :  { %v8713_v46 = vpop.f32.mrb[65].mxu0 }
0x182d   :  { %9371 = vmatpush1.bf16.msra.mxu1 %v9370_v39  ;;  %v9414_v39 = vpack.c.bf16 %v6746_v18, %v6744_v34  ;;  %v6899_v46 = vld [vmem:[#allocation4 + $0x380] sm:$0xff] }
0x182e   :  { %9373 = vmatprep.subr.bf16.mxu1 %v9372_v40  ;;  %v6743_v40 = vld [vmem:[#allocation4 + $0x360] sm:$0xff] }
0x182f   :  { %v11242_v56 = vpop.f32.mrb[66].mxu0 }
0x1830   :  { %v8720_v53 = vpop.f32.mrb[67].mxu0 }
0x1831   :  { %9375 = vmatpush1.bf16.msra.mxu1 %v9374_v47  ;;  %v6901_v47 = vld [vmem:[#allocation4 + $0x390] sm:$0xff] }
0x1832   :  { %9377 = vmatprep.subr.bf16.mxu1 %v9376_v48  ;;  %v6904_v48 = vld [vmem:[#allocation4 + $0x3a8] sm:$0xff]  ;;  %v9423_v50 = vpack.c.bf16 %v6901_v47, %v6899_v46  ;;  %v6905_v53 = vld [vmem:[#allocation4 + $0x3b0] sm:$0xff] }
0x1833   :  { %v9425_v51 = vpack.c.bf16 %v6906_v49, %v6904_v48  ;;  %v9427_v54 = vpack.c.bf16 %v6905_v53, %v6903_v43 }
0x1835   :  { %9379 = vmatpush1.bf16.msra.mxu1 %v9378_v57  ;;  %v6908_v57 = vld [vmem:[#allocation4 + $0x3c8] sm:$0xff] }
0x1836   :  { %9384 = vmatprep.subr.bf16.mxu1 %v9383_v24  ;;  %v6910_v24 = vld [vmem:[#allocation4 + $0x3d8] sm:$0xff] }
0x1837   :  { %v9429_v21 = vpack.c.bf16 %v6910_v24, %v6908_v57 }
0x1838   :  { %7651 = vmatmul.mubr.msk.f32.vlgmr.msra.gmra.mrb[76].mxu1 %vm2026_vm3, %v6390_v22  ;;  %v6733_v22 = vld [vmem:[#allocation4 + $0x310] sm:$0xff] }
0x1839   :  { %9386 = vmatpush1.bf16.msra.mxu1 %v9385_v55  ;;  %6646 = vmatprep.mubr.f32.mxu1 %v9585_v0  ;;  %v9404_v26 = vpack.c.bf16 %v6733_v22, %v6731_v15  ;;  %v6912_v55 = vld [vmem:[#allocation4 + $0x3e8] sm:$0xff]  ;;  %v7075_v22 = vld [vmem:[#allocation4 + $0x440] sm:$0xff] }
0x183a   :  { %9388 = vmatprep.subr.bf16.mxu1 %v9387_v9  ;;  %v6914_v9 = vld [vmem:[#allocation4 + $0x3f8] sm:$0xff] }
0x183b   :  { %v9433_v59 = vpack.c.bf16 %v6914_v9, %v6912_v55 }
0x183d   :  { %9390 = vmatpush1.bf16.msra.mxu1 %v9389_v62  ;;  %v7068_v62 = vld [vmem:[#allocation4 + $0x408] sm:$0xff] }
0x183e   :  { %9392 = vmatprep.subr.bf16.mxu1 %v9391_v63  ;;  %v7070_v63 = vld [vmem:[#allocation4 + $0x418] sm:$0xff] }
0x183f   :  { %v9440_v3 = vpack.c.bf16 %v7070_v63, %v7068_v62 }
0x1841   :  { %9394 = vmatpush1.bf16.msra.mxu1 %v9393_v6  ;;  %v7074_v6 = vld [vmem:[#allocation4 + $0x438] sm:$0xff] }
0x1842   :  { %9396 = vmatprep.subr.bf16.mxu1 %v9395_v7  ;;  %v9442_v7 = vpack.c.bf16 %v7069_v37, %v7067_v4  ;;  %v9444_v8 = vpack.c.bf16 %v7074_v6, %v7072_v5 }
0x1845   :  { %9398 = vmatpush1.bf16.msra.mxu1 %v9397_v13  ;;  %v7078_v13 = vld [vmem:[#allocation4 + $0x458] sm:$0xff] }
0x1846   :  { %9403 = vmatprep.subr.bf16.mxu1 %v9402_v14  ;;  %v9446_v14 = vpack.c.bf16 %v7073_v11, %v7071_v10  ;;  %v9448_v15 = vpack.c.bf16 %v7078_v13, %v7076_v12 }
0x1848   :  { %7654 = vmatmul.mubr.msk.f32.vlgmr.msra.gmra.mrb[76].mxu1 %vm2026_vm3, %v11234_v16  ;;  %v9416_v16 = vpack.c.bf16 %v6745_v41, %v6743_v40 }
0x1849   :  { %9405 = vmatpush1.bf16.msra.mxu1 %v9404_v26  ;;  %6814 = vmatprep.mubr.f32.mxu1 %v9585_v0  ;;  %v7082_v26 = vld [vmem:[#allocation4 + $0x478] sm:$0xff] }
0x184a   :  { %9407 = vmatprep.subr.bf16.mxu1 %v9406_v27  ;;  %v9450_v27 = vpack.c.bf16 %v7077_v23, %v7075_v22  ;;  %v9452_v28 = vpack.c.bf16 %v7082_v26, %v7080_v25 }
0x184d   :  { %9409 = vmatpush1.bf16.msra.mxu1 %v9408_v2 }
0x184e   :  { %9411 = vmatprep.subr.bf16.mxu1 %v9410_v19  ;;  %v7163_v19 = vpop.permute.xlu0 %7162 }
0x1851   :  { %9413 = vmatpush1.bf16.msra.mxu1 %v9412_v36 }
0x1852   :  { %9415 = vmatprep.subr.bf16.mxu1 %v9414_v39 }
0x1855   :  { %9417 = vmatpush1.bf16.msra.mxu1 %v9416_v16 }
0x1856   :  { %9422 = vmatprep.subr.bf16.mxu1 %v9421_v20 }
0x1858   :  { %7657 = vmatmul.mubr.msk.f32.vlgmr.msra.gmra.mrb[76].mxu1 %vm2026_vm3, %v11236_v35  ;;  %v9435_v35 = vpack.c.bf16 %v6913_v61, %v6911_v60 }
0x1859   :  { %9424 = vmatpush1.bf16.msra.mxu1 %v9423_v50  ;;  %6982 = vmatprep.mubr.f32.mxu1 %v9585_v0 }
0x185a   :  { %9426 = vmatprep.subr.bf16.mxu1 %v9425_v51 }
0x185d   :  { %9428 = vmatpush1.bf16.msra.mxu1 %v9427_v54 }
0x185e   :  { %9430 = vmatprep.subr.bf16.mxu1 %v9429_v21 }
0x1861   :  { %9432 = vmatpush1.bf16.msra.mxu1 %v9431_v58 }
0x1862   :  { %9434 = vmatprep.subr.bf16.mxu1 %v9433_v59 }
0x1865   :  { %9436 = vmatpush1.bf16.msra.mxu1 %v9435_v35 }
0x1866   :  { %9441 = vmatprep.subr.bf16.mxu1 %v9440_v3 }
0x1868   :  { %7660 = vmatmul.mubr.msk.f32.vlgmr.msra.gmra.mrb[76].mxu1 %vm2026_vm3, %v11240_v45 }
0x1869   :  { %9443 = vmatpush1.bf16.msra.mxu1 %v9442_v7  ;;  %7150 = vmatprep.mubr.f32.mxu1 %v9585_v0 }
0x186a   :  { %9445 = vmatprep.subr.bf16.mxu1 %v9444_v8 }
0x186d   :  { %9447 = vmatpush1.bf16.msra.mxu1 %v9446_v14 }
0x186e   :  { %9449 = vmatprep.subr.bf16.mxu1 %v9448_v15 }
0x1871   :  { %9451 = vmatpush1.bf16.msra.mxu1 %v9450_v27 }
0x1872   :  { %9453 = vmatprep.subr.bf16.mxu1 %v9452_v28 }
0x1875   :  { %9455 = vmatpush1.bf16.msra.mxu1 %v9454_v31 }
0x1878   :  { %7663 = vmatmul.mubr.msk.f32.vlgmr.msra.gmra.mrb[76].mxu1 %vm2026_vm3, %v11242_v56 }
0x194b   :  { %v7152_v0 = vpop.f32.mrb[76].mxu1 }
0x194c   :  { %v9456_v45 = vadd.f32 %v7152_v0, %v11228_v17  ;;  %v7154_v2 = vpop.f32.mrb[77].mxu1 }
0x194d   :  { %v9457_v32 = vadd.f32 %v7154_v2, %v11230_v52 }
0x194e   :  { %v7165_v33 = vadd.f32 %v9456_v45, %v7163_v19 }
0x194f   :  { %v7166_v34 = vadd.f32 %v9457_v32, %v7163_v19 }
0x1951   :  { %v7169_v18 = vcombine.low %v7165_v33, %v7166_v34 }
0x1953   :  { %7664 = vst.sshfl [vmem:[%s11276_s14] sm:$0x33 pattern:$0x76325410] %v7169_v18 }
0x1954   :  { %7183 = vsyncpa [#allocation3], 1 }
0x1955   :  { %7184 = vsyncpa [#allocation5], 1 }

</bundles_post_ra>
